<compile_context>
chip_gen: v7x
topology: tpu7x:2x2x1
jax: 0.10.0
libtpu: 0.0.40
codegen_flags: <defaults>
</compile_context>

<pallas_src>
import functools

import jax
import jax.numpy as jnp
from jax.experimental import pallas as pl
from jax.experimental.pallas import tpu as pltpu


# ----------------------------------------------------------------------------- kernel ----
def _decoder_kernel(pc_ref, fxz_ref, fxy_ref, fyz_ref,
                    fcpw_ref, fcpb_ref,
                    fccw_ref, fccb_ref,
                    b0w_ref, b0b_ref, b1w_ref, b1b_ref,
                    fow_ref, fob_ref,
                    out_ref,
                    *, C, H, W, TT, n_blocks):
    f32 = jnp.float32

    def sample_plane(xy, feat_ref):
        # xy: (2, TT) normalized coords in [0, 1];  feat_ref: (1, C*H, W) NCHW plane.
        # align_corners=True + vgrid = 2*xy - 1  =>  pixel coord = xy * (dim - 1);
        # padding_mode='border' => clip the source coordinate before weights/corners.
        x = jnp.clip(xy[0:1, :] * (W - 1), 0.0, W - 1.0)                # (1, TT)
        y = jnp.clip(xy[1:2, :] * (H - 1), 0.0, H - 1.0)                # (1, TT)
        x0f = jnp.floor(x)
        y0f = jnp.floor(y)
        wx1 = x - x0f
        wy1 = y - y0f
        x0 = x0f.astype(jnp.int32)
        y0 = y0f.astype(jnp.int32)
        x1 = jnp.minimum(x0 + 1, W - 1)
        y1 = jnp.minimum(y0 + 1, H - 1)

        w_iota = jax.lax.broadcasted_iota(jnp.int32, (W, TT), 0)        # (W, TT)
        h_iota = jax.lax.broadcasted_iota(jnp.int32, (H, TT), 0)        # (H, TT)
        # Factored bilinear weights (f32): border double-hits (x0==x1) sum to weight 1.
        ohx = ((w_iota == x0).astype(f32) * (1.0 - wx1) +
               (w_iota == x1).astype(f32) * wx1)                        # (W, TT)
        ohy = ((h_iota == y0).astype(f32) * (1.0 - wy1) +
               (h_iota == y1).astype(f32) * wy1)                        # (H, TT)

        feat = feat_ref[0].astype(f32)                                  # (C*H, W)
        g = jnp.dot(feat, ohx, preferred_element_type=f32)              # (C*H, TT)   MXU
        g = g.reshape(C, H, TT)
        return jnp.sum(g * ohy[None, :, :], axis=1)                     # (C, TT)     VPU+XLU

    # Packed per-point inputs: rows 0:3 = p^T, 3:5 / 5:7 / 7:9 = plane coords^T.
    pc = pc_ref[0].astype(f32)                                          # (9, TT)

    # Sum of the three bilinearly-sampled plane features, kept feature-major: (C, TT).
    ct = (sample_plane(pc[3:5, :], fxz_ref) +
          sample_plane(pc[5:7, :], fxy_ref) +
          sample_plane(pc[7:9, :], fyz_ref))

    # fc_p on the VPU (a K=3 matmul would waste >97% of the MXU):  net = W^T p^T + b^T.
    net = (fcpw_ref[:, 0:1] * pc[0:1, :] + fcpw_ref[:, 1:2] * pc[1:2, :] +
           fcpw_ref[:, 2:3] * pc[2:3, :] + fcpb_ref[...])               # (Hd, TT)

    for i in range(n_blocks):
        # net = net + fc_c[i](c)   (feature-major: (Hd, C) @ (C, TT))
        net = net + jnp.dot(fccw_ref[i], ct, preferred_element_type=f32) + fccb_ref[i]
        # ResnetBlockFC (size_in == size_out -> identity shortcut)
        h = jnp.dot(b0w_ref[i], jax.nn.relu(net), preferred_element_type=f32) + b0b_ref[i]
        dx = jnp.dot(b1w_ref[i], jax.nn.relu(h), preferred_element_type=f32) + b1b_ref[i]
        net = net + dx

    # fc_out on the VPU: (Hd, 1) weights, reduce over Hd -> lane-dense (1, TT) output row.
    out = jnp.sum(jax.nn.relu(net) * fow_ref[...], axis=0, keepdims=True) + fob_ref[...]
    out_ref[...] = out[None].astype(out_ref.dtype)                      # (1, 1, TT)


# ----------------------------------------------------------------------------- wrapper ---
def patch_local_decoder(p, p_n, c_plane, params, *, n_blocks, feat_dtype=jnp.float32):
    """p: (B,T,3) f32; p_n: dict plane->(B,T,2) in [0,1]; c_plane: dict plane->(B,C,H,W).

    feat_dtype=jnp.bfloat16 halves plane HBM traffic (the dominant DMA cost); interpolation
    weights / coordinate math stay f32 either way. Default f32 for exact parity with ref.
    """
    B, T, _ = p.shape
    planes = ('xz', 'xy', 'yz')
    C, H, W = c_plane[planes[0]].shape[1:]
    Hd = params['fc_p_w'].shape[1]

    # T tile: lane-dense, keeps per-step intermediates O(TT*(C*H + Hd)) so they fit scoped
    # VMEM on v5e (16 MiB) through v7x (64 MiB).  T is padded to a multiple of TT with
    # zero coords/points (valid, clipped samples) and the pad is sliced off at the end.
    TT = 256 if T >= 256 else 128
    n_t = -(-T // TT)
    T_pad = n_t * TT

    f32 = jnp.float32
    # One packed (B, 9, T_pad) array: [p^T (3) | xz^T (2) | xy^T (2) | yz^T (2)].
    pc = jnp.concatenate(
        [jnp.transpose(p.astype(f32), (0, 2, 1))] +
        [jnp.transpose(p_n[k].astype(f32), (0, 2, 1)) for k in planes], axis=1)  # (B, 9, T)
    if T_pad != T:
        pc = jnp.pad(pc, ((0, 0), (0, 0), (0, T_pad - T)))
    # Planes stay in native NCHW layout; (B, C, H, W) -> (B, C*H, W) is a free reshape.
    feats = [c_plane[k].reshape(B, C * H, W).astype(feat_dtype) for k in planes]

    # Tiny weight transposes so the whole MLP runs feature-major (out = W^T @ x^T + b^T).
    fcpw_t = jnp.transpose(params['fc_p_w']).astype(f32)                # (Hd, 3)
    fcpb_t = jnp.transpose(params['fc_p_b']).astype(f32)                # (Hd, 1)
    fccw_t = jnp.transpose(params['fc_c_w'], (0, 2, 1)).astype(f32)     # (nb, Hd, C)
    fccb_t = jnp.transpose(params['fc_c_b'], (0, 2, 1)).astype(f32)     # (nb, Hd, 1)
    b0w_t = jnp.transpose(params['blk0_w'], (0, 2, 1)).astype(f32)      # (nb, Hd, Hd)
    b0b_t = jnp.transpose(params['blk0_b'], (0, 2, 1)).astype(f32)      # (nb, Hd, 1)
    b1w_t = jnp.transpose(params['blk1_w'], (0, 2, 1)).astype(f32)      # (nb, Hd, Hd)
    b1b_t = jnp.transpose(params['blk1_b'], (0, 2, 1)).astype(f32)      # (nb, Hd, 1)
    fow = params['fc_out_w'].astype(f32)                                # (Hd, 1)
    fob = params['fc_out_b'].astype(f32)                                # (1, 1)

    kernel = functools.partial(_decoder_kernel, C=C, H=H, W=W, TT=TT, n_blocks=n_blocks)

    pc_spec = pl.BlockSpec((1, 9, TT), lambda b, t: (b, 0, t))           # tiled over T
    plane_spec = pl.BlockSpec((1, C * H, W), lambda b, t: (b, 0, 0))     # resident across T
    w2 = lambda shape: pl.BlockSpec(shape, lambda b, t: (0, 0))
    w3 = lambda shape: pl.BlockSpec(shape, lambda b, t: (0, 0, 0))

    inputs = (pc, *feats,
              fcpw_t, fcpb_t, fccw_t, fccb_t, b0w_t, b0b_t, b1w_t, b1b_t, fow, fob)

    flops = int(B * (3 * (2 * C * H * W * T_pad + 2 * C * H * T_pad)      # plane sampling
                     + 6 * T_pad * Hd                                     # fc_p (VPU)
                     + n_blocks * (2 * T_pad * C * Hd + 4 * T_pad * Hd * Hd)
                     + 2 * T_pad * Hd))                                   # fc_out
    bytes_accessed = int(sum(int(x.size) * x.dtype.itemsize for x in inputs) + B * T_pad * 4)

    out = pl.pallas_call(
        kernel,
        out_shape=jax.ShapeDtypeStruct((B, n_t, TT), jnp.float32),
        grid_spec=pltpu.PrefetchScalarGridSpec(
            num_scalar_prefetch=0,
            grid=(B, n_t),
            in_specs=[
                pc_spec,                           # packed p^T + plane coords^T
                plane_spec,                        # plane xz (C*H, W)
                plane_spec,                        # plane xy
                plane_spec,                        # plane yz
                w2((Hd, 3)),                       # fc_p W^T
                w2((Hd, 1)),                       # fc_p b^T
                w3((n_blocks, Hd, C)),             # fc_c W^T
                w3((n_blocks, Hd, 1)),             # fc_c b^T
                w3((n_blocks, Hd, Hd)),            # block fc_0 W^T
                w3((n_blocks, Hd, 1)),             # block fc_0 b^T
                w3((n_blocks, Hd, Hd)),            # block fc_1 W^T
                w3((n_blocks, Hd, 1)),             # block fc_1 b^T
                w2((Hd, 1)),                       # fc_out W
                w2((1, 1)),                        # fc_out b
            ],
            out_specs=pl.BlockSpec((1, 1, TT), lambda b, t: (b, t, 0)),
        ),
        compiler_params=pltpu.CompilerParams(
            dimension_semantics=("parallel", "parallel"),
            vmem_limit_bytes=32 * 1024 * 1024),
        cost_estimate=pl.CostEstimate(flops=flops, transcendentals=0,
                                      bytes_accessed=bytes_accessed),
    )(*inputs)
    return out.reshape(B, T_pad)[:, :T]            # free reshape + pad slice -> (B, T)


# ----------------------------------------------------------------------------- reference -
def reference(p, p_n, c_plane, params, *, n_blocks):
    def sample(coords, feat):                      # coords (B,T,2), feat (B,C,H,W)
        _, _, H, W = feat.shape
        x = jnp.clip(coords[..., 0] * (W - 1), 0.0, W - 1.0)
        y = jnp.clip(coords[..., 1] * (H - 1), 0.0, H - 1.0)
        x0f, y0f = jnp.floor(x), jnp.floor(y)
        wx1, wy1 = x - x0f, y - y0f
        wx0, wy0 = 1.0 - wx1, 1.0 - wy1
        x0 = jnp.clip(x0f.astype(jnp.int32), 0, W - 1)
        y0 = jnp.clip(y0f.astype(jnp.int32), 0, H - 1)
        x1 = jnp.clip(x0 + 1, 0, W - 1)
        y1 = jnp.clip(y0 + 1, 0, H - 1)

        def gather(yi, xi):                        # -> (B, T, C)
            return jax.vmap(lambda f, yy, xx: f[:, yy, xx].T)(feat, yi, xi)

        return (gather(y0, x0) * (wy0 * wx0)[..., None] +
                gather(y0, x1) * (wy0 * wx1)[..., None] +
                gather(y1, x0) * (wy1 * wx0)[..., None] +
                gather(y1, x1) * (wy1 * wx1)[..., None])

    c = (sample(p_n['xz'], c_plane['xz']) +
         sample(p_n['xy'], c_plane['xy']) +
         sample(p_n['yz'], c_plane['yz']))         # (B, T, C)

    net = p @ params['fc_p_w'] + params['fc_p_b']
    for i in range(n_blocks):
        net = net + c @ params['fc_c_w'][i] + params['fc_c_b'][i]
        h = jax.nn.relu(net) @ params['blk0_w'][i] + params['blk0_b'][i]
        dx = jax.nn.relu(h) @ params['blk1_w'][i] + params['blk1_b'][i]
        net = net + dx
    out = jax.nn.relu(net) @ params['fc_out_w'] + params['fc_out_b']
    return out[..., 0]


# ----------------------------------------------------------------------------- main ------
if __name__ == "__main__":
    B, T, dim = 2, 8, 3
    C, Hd, n_blocks = 32, 64, 5
    H_sp = W_sp = 16

    key = jax.random.PRNGKey(0)
    ks = jax.random.split(key, 20)

    # Deterministic synthetic parameters (weights stored as (in, out) so reference does x @ W).
    params = {
        'fc_p_w':  0.1 * jax.random.normal(ks[0], (dim, Hd), jnp.float32),
        'fc_p_b':  0.1 * jax.random.normal(ks[1], (1, Hd), jnp.float32),
        'fc_c_w':  0.1 * jax.random.normal(ks[2], (n_blocks, C, Hd), jnp.float32),
        'fc_c_b':  0.1 * jax.random.normal(ks[3], (n_blocks, 1, Hd), jnp.float32),
        'blk0_w':  0.1 * jax.random.normal(ks[4], (n_blocks, Hd, Hd), jnp.float32),
        'blk0_b':  0.1 * jax.random.normal(ks[5], (n_blocks, 1, Hd), jnp.float32),
        'blk1_w':  0.1 * jax.random.normal(ks[6], (n_blocks, Hd, Hd), jnp.float32),
        'blk1_b':  0.1 * jax.random.normal(ks[7], (n_blocks, 1, Hd), jnp.float32),
        'fc_out_w': 0.1 * jax.random.normal(ks[8], (Hd, 1), jnp.float32),
        'fc_out_b': 0.1 * jax.random.normal(ks[9], (1, 1), jnp.float32),
    }

    p = jax.random.uniform(ks[10], (B, T, dim), jnp.float32, minval=-0.5, maxval=0.5)
    p_n = {
        'xz': jax.random.uniform(ks[11], (B, T, 2), jnp.float32),
        'xy': jax.random.uniform(ks[12], (B, T, 2), jnp.float32),
        'yz': jax.random.uniform(ks[13], (B, T, 2), jnp.float32),
    }
    c_plane = {
        'xz': 0.5 * jax.random.normal(ks[14], (B, C, H_sp, W_sp), jnp.float32),
        'xy': 0.5 * jax.random.normal(ks[15], (B, C, H_sp, W_sp), jnp.float32),
        'yz': 0.5 * jax.random.normal(ks[16], (B, C, H_sp, W_sp), jnp.float32),
    }

    out = patch_local_decoder(p, p_n, c_plane, params, n_blocks=n_blocks)
    out = jax.block_until_ready(out)

    ref = reference(p, p_n, c_plane, params, n_blocks=n_blocks)
    assert out.shape == (B, T), out.shape
    assert jnp.allclose(out, ref, atol=2e-3, rtol=2e-3), (out, ref)
    print("KERNEL_OK")
</pallas_src>

<mosaic_0001>
module attributes {stable_mosaic.version = 11 : i64} {
  func.func @_decoder_kernel(%arg0: i32, %arg1: i32, %arg2: memref<1x9x128xf32, #tpu.memory_space<vmem>>, %arg3: memref<1x512x16xf32, #tpu.memory_space<vmem>>, %arg4: memref<1x512x16xf32, #tpu.memory_space<vmem>>, %arg5: memref<1x512x16xf32, #tpu.memory_space<vmem>>, %arg6: memref<64x3xf32, #tpu.memory_space<vmem>>, %arg7: memref<64x1xf32, #tpu.memory_space<vmem>>, %arg8: memref<5x64x32xf32, #tpu.memory_space<vmem>>, %arg9: memref<5x64x1xf32, #tpu.memory_space<vmem>>, %arg10: memref<5x64x64xf32, #tpu.memory_space<vmem>>, %arg11: memref<5x64x1xf32, #tpu.memory_space<vmem>>, %arg12: memref<5x64x64xf32, #tpu.memory_space<vmem>>, %arg13: memref<5x64x1xf32, #tpu.memory_space<vmem>>, %arg14: memref<64x1xf32, #tpu.memory_space<vmem>>, %arg15: memref<1x1xf32, #tpu.memory_space<vmem>>, %arg16: memref<1x1x128xf32, #tpu.memory_space<vmem>>) attributes {dimension_semantics = [#tpu.dimension_semantics<parallel>, #tpu.dimension_semantics<parallel>], iteration_bounds = array<i64: 2, 1>, scalar_prefetch = 0 : i64, scratch_operands = 0 : i64, tpu.core_type = #tpu.core_type<tc>, window_params = [{transform_indices = @transform_0, window_bounds = array<i64: 1, 9, 128>}, {transform_indices = @transform_1, window_bounds = array<i64: 1, 512, 16>}, {transform_indices = @transform_2, window_bounds = array<i64: 1, 512, 16>}, {transform_indices = @transform_3, window_bounds = array<i64: 1, 512, 16>}, {pipeline_mode = #tpu.pipeline_mode<synchronous>, transform_indices = @transform_4, window_bounds = array<i64: 64, 3>}, {pipeline_mode = #tpu.pipeline_mode<synchronous>, transform_indices = @transform_5, window_bounds = array<i64: 64, 1>}, {pipeline_mode = #tpu.pipeline_mode<synchronous>, transform_indices = @transform_6, window_bounds = array<i64: 5, 64, 32>}, {pipeline_mode = #tpu.pipeline_mode<synchronous>, transform_indices = @transform_7, window_bounds = array<i64: 5, 64, 1>}, {pipeline_mode = #tpu.pipeline_mode<synchronous>, transform_indices = @transform_8, window_bounds = array<i64: 5, 64, 64>}, {pipeline_mode = #tpu.pipeline_mode<synchronous>, transform_indices = @transform_9, window_bounds = array<i64: 5, 64, 1>}, {pipeline_mode = #tpu.pipeline_mode<synchronous>, transform_indices = @transform_10, window_bounds = array<i64: 5, 64, 64>}, {pipeline_mode = #tpu.pipeline_mode<synchronous>, transform_indices = @transform_11, window_bounds = array<i64: 5, 64, 1>}, {pipeline_mode = #tpu.pipeline_mode<synchronous>, transform_indices = @transform_12, window_bounds = array<i64: 64, 1>}, {pipeline_mode = #tpu.pipeline_mode<synchronous>, transform_indices = @transform_13, window_bounds = array<i64: 1, 1>}, {transform_indices = @transform_14, window_bounds = array<i64: 1, 1, 128>}]} {
    %c0 = arith.constant 0 : index
    %c0_0 = arith.constant 0 : index
    %c0_1 = arith.constant 0 : index
    %0 = vector.load %arg2[%c0, %c0_0, %c0_1] : memref<1x9x128xf32, #tpu.memory_space<vmem>>, vector<1x9x128xf32>
    %1 = vector.shape_cast %0 : vector<1x9x128xf32> to vector<9x128xf32>
    %2 = vector.extract_strided_slice %1 {offsets = [3, 0], sizes = [2, 128], strides = [1, 1]} : vector<9x128xf32> to vector<2x128xf32>
    %3 = vector.extract_strided_slice %2 {offsets = [0, 0], sizes = [1, 128], strides = [1, 1]} : vector<2x128xf32> to vector<1x128xf32>
    %cst = arith.constant 1.500000e+01 : f32
    %4 = vector.broadcast %cst : f32 to vector<1x128xf32>
    %5 = arith.mulf %3, %4 : vector<1x128xf32>
    %cst_2 = arith.constant 0.000000e+00 : f32
    %cst_3 = arith.constant 1.500000e+01 : f32
    %6 = vector.broadcast %cst_2 : f32 to vector<1x128xf32>
    %7 = arith.maximumf %6, %5 : vector<1x128xf32>
    %8 = vector.broadcast %cst_3 : f32 to vector<1x128xf32>
    %9 = arith.minimumf %8, %7 : vector<1x128xf32>
    %10 = vector.extract_strided_slice %2 {offsets = [1, 0], sizes = [1, 128], strides = [1, 1]} : vector<2x128xf32> to vector<1x128xf32>
    %cst_4 = arith.constant 1.500000e+01 : f32
    %11 = vector.broadcast %cst_4 : f32 to vector<1x128xf32>
    %12 = arith.mulf %10, %11 : vector<1x128xf32>
    %cst_5 = arith.constant 0.000000e+00 : f32
    %cst_6 = arith.constant 1.500000e+01 : f32
    %13 = vector.broadcast %cst_5 : f32 to vector<1x128xf32>
    %14 = arith.maximumf %13, %12 : vector<1x128xf32>
    %15 = vector.broadcast %cst_6 : f32 to vector<1x128xf32>
    %16 = arith.minimumf %15, %14 : vector<1x128xf32>
    %17 = math.floor %9 : vector<1x128xf32>
    %18 = math.floor %16 : vector<1x128xf32>
    %19 = arith.subf %9, %17 : vector<1x128xf32>
    %20 = arith.subf %16, %18 : vector<1x128xf32>
    %21 = arith.fptosi %17 : vector<1x128xf32> to vector<1x128xi32>
    %22 = arith.fptosi %18 : vector<1x128xf32> to vector<1x128xi32>
    %c1_i32 = arith.constant 1 : i32
    %23 = vector.broadcast %c1_i32 : i32 to vector<1x128xi32>
    %24 = arith.addi %21, %23 : vector<1x128xi32>
    %c15_i32 = arith.constant 15 : i32
    %25 = vector.broadcast %c15_i32 : i32 to vector<1x128xi32>
    %26 = arith.minsi %24, %25 : vector<1x128xi32>
    %c1_i32_7 = arith.constant 1 : i32
    %27 = vector.broadcast %c1_i32_7 : i32 to vector<1x128xi32>
    %28 = arith.addi %22, %27 : vector<1x128xi32>
    %c15_i32_8 = arith.constant 15 : i32
    %29 = vector.broadcast %c15_i32_8 : i32 to vector<1x128xi32>
    %30 = arith.minsi %28, %29 : vector<1x128xi32>
    %31 = tpu.iota {dimensions = array<i32: 0>} : vector<16x128xi32>
    %32 = tpu.iota {dimensions = array<i32: 0>} : vector<16x128xi32>
    %33 = vector.broadcast %21 : vector<1x128xi32> to vector<16x128xi32>
    %34 = arith.cmpi eq, %31, %33 : vector<16x128xi32>
    %35 = arith.extui %34 : vector<16x128xi1> to vector<16x128xi32>
    %36 = arith.sitofp %35 : vector<16x128xi32> to vector<16x128xf32>
    %cst_9 = arith.constant 1.000000e+00 : f32
    %37 = vector.broadcast %cst_9 : f32 to vector<1x128xf32>
    %38 = arith.subf %37, %19 : vector<1x128xf32>
    %39 = vector.broadcast %38 : vector<1x128xf32> to vector<16x128xf32>
    %40 = arith.mulf %36, %39 : vector<16x128xf32>
    %41 = vector.broadcast %26 : vector<1x128xi32> to vector<16x128xi32>
    %42 = arith.cmpi eq, %31, %41 : vector<16x128xi32>
    %43 = arith.extui %42 : vector<16x128xi1> to vector<16x128xi32>
    %44 = arith.sitofp %43 : vector<16x128xi32> to vector<16x128xf32>
    %45 = vector.broadcast %19 : vector<1x128xf32> to vector<16x128xf32>
    %46 = arith.mulf %44, %45 : vector<16x128xf32>
    %47 = arith.addf %40, %46 : vector<16x128xf32>
    %48 = vector.broadcast %22 : vector<1x128xi32> to vector<16x128xi32>
    %49 = arith.cmpi eq, %32, %48 : vector<16x128xi32>
    %50 = arith.extui %49 : vector<16x128xi1> to vector<16x128xi32>
    %51 = arith.sitofp %50 : vector<16x128xi32> to vector<16x128xf32>
    %cst_10 = arith.constant 1.000000e+00 : f32
    %52 = vector.broadcast %cst_10 : f32 to vector<1x128xf32>
    %53 = arith.subf %52, %20 : vector<1x128xf32>
    %54 = vector.broadcast %53 : vector<1x128xf32> to vector<16x128xf32>
    %55 = arith.mulf %51, %54 : vector<16x128xf32>
    %56 = vector.broadcast %30 : vector<1x128xi32> to vector<16x128xi32>
    %57 = arith.cmpi eq, %32, %56 : vector<16x128xi32>
    %58 = arith.extui %57 : vector<16x128xi1> to vector<16x128xi32>
    %59 = arith.sitofp %58 : vector<16x128xi32> to vector<16x128xf32>
    %60 = vector.broadcast %20 : vector<1x128xf32> to vector<16x128xf32>
    %61 = arith.mulf %59, %60 : vector<16x128xf32>
    %62 = arith.addf %55, %61 : vector<16x128xf32>
    %c0_11 = arith.constant 0 : index
    %c0_12 = arith.constant 0 : index
    %c0_13 = arith.constant 0 : index
    %63 = vector.load %arg3[%c0_11, %c0_12, %c0_13] : memref<1x512x16xf32, #tpu.memory_space<vmem>>, vector<1x512x16xf32>
    %64 = vector.shape_cast %63 : vector<1x512x16xf32> to vector<512x16xf32>
    %cst_14 = arith.constant dense<0.000000e+00> : vector<512x128xf32>
    %65 = tpu.matmul %64, %47, %cst_14 {dimension_numbers = #tpu.dot_dimension_numbers<[1], [0], [0], [1], [0, 0, 1, 1], [], []>} : vector<512x16xf32>, vector<16x128xf32>, vector<512x128xf32> -> vector<512x128xf32>
    %66 = vector.shape_cast %65 : vector<512x128xf32> to vector<32x16x128xf32>
    %67 = vector.shape_cast %62 : vector<16x128xf32> to vector<1x16x128xf32>
    %68 = vector.broadcast %67 : vector<1x16x128xf32> to vector<32x16x128xf32>
    %69 = arith.mulf %66, %68 : vector<32x16x128xf32>
    %cst_15 = arith.constant dense<0.000000e+00> : vector<32x128xf32>
    %70 = vector.multi_reduction <add>, %69, %cst_15 [1] : vector<32x16x128xf32> to vector<32x128xf32>
    %71 = vector.extract_strided_slice %1 {offsets = [5, 0], sizes = [2, 128], strides = [1, 1]} : vector<9x128xf32> to vector<2x128xf32>
    %72 = vector.extract_strided_slice %71 {offsets = [0, 0], sizes = [1, 128], strides = [1, 1]} : vector<2x128xf32> to vector<1x128xf32>
    %cst_16 = arith.constant 1.500000e+01 : f32
    %73 = vector.broadcast %cst_16 : f32 to vector<1x128xf32>
    %74 = arith.mulf %72, %73 : vector<1x128xf32>
    %cst_17 = arith.constant 0.000000e+00 : f32
    %cst_18 = arith.constant 1.500000e+01 : f32
    %75 = vector.broadcast %cst_17 : f32 to vector<1x128xf32>
    %76 = arith.maximumf %75, %74 : vector<1x128xf32>
    %77 = vector.broadcast %cst_18 : f32 to vector<1x128xf32>
    %78 = arith.minimumf %77, %76 : vector<1x128xf32>
    %79 = vector.extract_strided_slice %71 {offsets = [1, 0], sizes = [1, 128], strides = [1, 1]} : vector<2x128xf32> to vector<1x128xf32>
    %cst_19 = arith.constant 1.500000e+01 : f32
    %80 = vector.broadcast %cst_19 : f32 to vector<1x128xf32>
    %81 = arith.mulf %79, %80 : vector<1x128xf32>
    %cst_20 = arith.constant 0.000000e+00 : f32
    %cst_21 = arith.constant 1.500000e+01 : f32
    %82 = vector.broadcast %cst_20 : f32 to vector<1x128xf32>
    %83 = arith.maximumf %82, %81 : vector<1x128xf32>
    %84 = vector.broadcast %cst_21 : f32 to vector<1x128xf32>
    %85 = arith.minimumf %84, %83 : vector<1x128xf32>
    %86 = math.floor %78 : vector<1x128xf32>
    %87 = math.floor %85 : vector<1x128xf32>
    %88 = arith.subf %78, %86 : vector<1x128xf32>
    %89 = arith.subf %85, %87 : vector<1x128xf32>
    %90 = arith.fptosi %86 : vector<1x128xf32> to vector<1x128xi32>
    %91 = arith.fptosi %87 : vector<1x128xf32> to vector<1x128xi32>
    %c1_i32_22 = arith.constant 1 : i32
    %92 = vector.broadcast %c1_i32_22 : i32 to vector<1x128xi32>
    %93 = arith.addi %90, %92 : vector<1x128xi32>
    %c15_i32_23 = arith.constant 15 : i32
    %94 = vector.broadcast %c15_i32_23 : i32 to vector<1x128xi32>
    %95 = arith.minsi %93, %94 : vector<1x128xi32>
    %c1_i32_24 = arith.constant 1 : i32
    %96 = vector.broadcast %c1_i32_24 : i32 to vector<1x128xi32>
    %97 = arith.addi %91, %96 : vector<1x128xi32>
    %c15_i32_25 = arith.constant 15 : i32
    %98 = vector.broadcast %c15_i32_25 : i32 to vector<1x128xi32>
    %99 = arith.minsi %97, %98 : vector<1x128xi32>
    %100 = tpu.iota {dimensions = array<i32: 0>} : vector<16x128xi32>
    %101 = tpu.iota {dimensions = array<i32: 0>} : vector<16x128xi32>
    %102 = vector.broadcast %90 : vector<1x128xi32> to vector<16x128xi32>
    %103 = arith.cmpi eq, %100, %102 : vector<16x128xi32>
    %104 = arith.extui %103 : vector<16x128xi1> to vector<16x128xi32>
    %105 = arith.sitofp %104 : vector<16x128xi32> to vector<16x128xf32>
    %cst_26 = arith.constant 1.000000e+00 : f32
    %106 = vector.broadcast %cst_26 : f32 to vector<1x128xf32>
    %107 = arith.subf %106, %88 : vector<1x128xf32>
    %108 = vector.broadcast %107 : vector<1x128xf32> to vector<16x128xf32>
    %109 = arith.mulf %105, %108 : vector<16x128xf32>
    %110 = vector.broadcast %95 : vector<1x128xi32> to vector<16x128xi32>
    %111 = arith.cmpi eq, %100, %110 : vector<16x128xi32>
    %112 = arith.extui %111 : vector<16x128xi1> to vector<16x128xi32>
    %113 = arith.sitofp %112 : vector<16x128xi32> to vector<16x128xf32>
    %114 = vector.broadcast %88 : vector<1x128xf32> to vector<16x128xf32>
    %115 = arith.mulf %113, %114 : vector<16x128xf32>
    %116 = arith.addf %109, %115 : vector<16x128xf32>
    %117 = vector.broadcast %91 : vector<1x128xi32> to vector<16x128xi32>
    %118 = arith.cmpi eq, %101, %117 : vector<16x128xi32>
    %119 = arith.extui %118 : vector<16x128xi1> to vector<16x128xi32>
    %120 = arith.sitofp %119 : vector<16x128xi32> to vector<16x128xf32>
    %cst_27 = arith.constant 1.000000e+00 : f32
    %121 = vector.broadcast %cst_27 : f32 to vector<1x128xf32>
    %122 = arith.subf %121, %89 : vector<1x128xf32>
    %123 = vector.broadcast %122 : vector<1x128xf32> to vector<16x128xf32>
    %124 = arith.mulf %120, %123 : vector<16x128xf32>
    %125 = vector.broadcast %99 : vector<1x128xi32> to vector<16x128xi32>
    %126 = arith.cmpi eq, %101, %125 : vector<16x128xi32>
    %127 = arith.extui %126 : vector<16x128xi1> to vector<16x128xi32>
    %128 = arith.sitofp %127 : vector<16x128xi32> to vector<16x128xf32>
    %129 = vector.broadcast %89 : vector<1x128xf32> to vector<16x128xf32>
    %130 = arith.mulf %128, %129 : vector<16x128xf32>
    %131 = arith.addf %124, %130 : vector<16x128xf32>
    %c0_28 = arith.constant 0 : index
    %c0_29 = arith.constant 0 : index
    %c0_30 = arith.constant 0 : index
    %132 = vector.load %arg4[%c0_28, %c0_29, %c0_30] : memref<1x512x16xf32, #tpu.memory_space<vmem>>, vector<1x512x16xf32>
    %133 = vector.shape_cast %132 : vector<1x512x16xf32> to vector<512x16xf32>
    %cst_31 = arith.constant dense<0.000000e+00> : vector<512x128xf32>
    %134 = tpu.matmul %133, %116, %cst_31 {dimension_numbers = #tpu.dot_dimension_numbers<[1], [0], [0], [1], [0, 0, 1, 1], [], []>} : vector<512x16xf32>, vector<16x128xf32>, vector<512x128xf32> -> vector<512x128xf32>
    %135 = vector.shape_cast %134 : vector<512x128xf32> to vector<32x16x128xf32>
    %136 = vector.shape_cast %131 : vector<16x128xf32> to vector<1x16x128xf32>
    %137 = vector.broadcast %136 : vector<1x16x128xf32> to vector<32x16x128xf32>
    %138 = arith.mulf %135, %137 : vector<32x16x128xf32>
    %cst_32 = arith.constant dense<0.000000e+00> : vector<32x128xf32>
    %139 = vector.multi_reduction <add>, %138, %cst_32 [1] : vector<32x16x128xf32> to vector<32x128xf32>
    %140 = arith.addf %70, %139 : vector<32x128xf32>
    %141 = vector.extract_strided_slice %1 {offsets = [7, 0], sizes = [2, 128], strides = [1, 1]} : vector<9x128xf32> to vector<2x128xf32>
    %142 = vector.extract_strided_slice %141 {offsets = [0, 0], sizes = [1, 128], strides = [1, 1]} : vector<2x128xf32> to vector<1x128xf32>
    %cst_33 = arith.constant 1.500000e+01 : f32
    %143 = vector.broadcast %cst_33 : f32 to vector<1x128xf32>
    %144 = arith.mulf %142, %143 : vector<1x128xf32>
    %cst_34 = arith.constant 0.000000e+00 : f32
    %cst_35 = arith.constant 1.500000e+01 : f32
    %145 = vector.broadcast %cst_34 : f32 to vector<1x128xf32>
    %146 = arith.maximumf %145, %144 : vector<1x128xf32>
    %147 = vector.broadcast %cst_35 : f32 to vector<1x128xf32>
    %148 = arith.minimumf %147, %146 : vector<1x128xf32>
    %149 = vector.extract_strided_slice %141 {offsets = [1, 0], sizes = [1, 128], strides = [1, 1]} : vector<2x128xf32> to vector<1x128xf32>
    %cst_36 = arith.constant 1.500000e+01 : f32
    %150 = vector.broadcast %cst_36 : f32 to vector<1x128xf32>
    %151 = arith.mulf %149, %150 : vector<1x128xf32>
    %cst_37 = arith.constant 0.000000e+00 : f32
    %cst_38 = arith.constant 1.500000e+01 : f32
    %152 = vector.broadcast %cst_37 : f32 to vector<1x128xf32>
    %153 = arith.maximumf %152, %151 : vector<1x128xf32>
    %154 = vector.broadcast %cst_38 : f32 to vector<1x128xf32>
    %155 = arith.minimumf %154, %153 : vector<1x128xf32>
    %156 = math.floor %148 : vector<1x128xf32>
    %157 = math.floor %155 : vector<1x128xf32>
    %158 = arith.subf %148, %156 : vector<1x128xf32>
    %159 = arith.subf %155, %157 : vector<1x128xf32>
    %160 = arith.fptosi %156 : vector<1x128xf32> to vector<1x128xi32>
    %161 = arith.fptosi %157 : vector<1x128xf32> to vector<1x128xi32>
    %c1_i32_39 = arith.constant 1 : i32
    %162 = vector.broadcast %c1_i32_39 : i32 to vector<1x128xi32>
    %163 = arith.addi %160, %162 : vector<1x128xi32>
    %c15_i32_40 = arith.constant 15 : i32
    %164 = vector.broadcast %c15_i32_40 : i32 to vector<1x128xi32>
    %165 = arith.minsi %163, %164 : vector<1x128xi32>
    %c1_i32_41 = arith.constant 1 : i32
    %166 = vector.broadcast %c1_i32_41 : i32 to vector<1x128xi32>
    %167 = arith.addi %161, %166 : vector<1x128xi32>
    %c15_i32_42 = arith.constant 15 : i32
    %168 = vector.broadcast %c15_i32_42 : i32 to vector<1x128xi32>
    %169 = arith.minsi %167, %168 : vector<1x128xi32>
    %170 = tpu.iota {dimensions = array<i32: 0>} : vector<16x128xi32>
    %171 = tpu.iota {dimensions = array<i32: 0>} : vector<16x128xi32>
    %172 = vector.broadcast %160 : vector<1x128xi32> to vector<16x128xi32>
    %173 = arith.cmpi eq, %170, %172 : vector<16x128xi32>
    %174 = arith.extui %173 : vector<16x128xi1> to vector<16x128xi32>
    %175 = arith.sitofp %174 : vector<16x128xi32> to vector<16x128xf32>
    %cst_43 = arith.constant 1.000000e+00 : f32
    %176 = vector.broadcast %cst_43 : f32 to vector<1x128xf32>
    %177 = arith.subf %176, %158 : vector<1x128xf32>
    %178 = vector.broadcast %177 : vector<1x128xf32> to vector<16x128xf32>
    %179 = arith.mulf %175, %178 : vector<16x128xf32>
    %180 = vector.broadcast %165 : vector<1x128xi32> to vector<16x128xi32>
    %181 = arith.cmpi eq, %170, %180 : vector<16x128xi32>
    %182 = arith.extui %181 : vector<16x128xi1> to vector<16x128xi32>
    %183 = arith.sitofp %182 : vector<16x128xi32> to vector<16x128xf32>
    %184 = vector.broadcast %158 : vector<1x128xf32> to vector<16x128xf32>
    %185 = arith.mulf %183, %184 : vector<16x128xf32>
    %186 = arith.addf %179, %185 : vector<16x128xf32>
    %187 = vector.broadcast %161 : vector<1x128xi32> to vector<16x128xi32>
    %188 = arith.cmpi eq, %171, %187 : vector<16x128xi32>
    %189 = arith.extui %188 : vector<16x128xi1> to vector<16x128xi32>
    %190 = arith.sitofp %189 : vector<16x128xi32> to vector<16x128xf32>
    %cst_44 = arith.constant 1.000000e+00 : f32
    %191 = vector.broadcast %cst_44 : f32 to vector<1x128xf32>
    %192 = arith.subf %191, %159 : vector<1x128xf32>
    %193 = vector.broadcast %192 : vector<1x128xf32> to vector<16x128xf32>
    %194 = arith.mulf %190, %193 : vector<16x128xf32>
    %195 = vector.broadcast %169 : vector<1x128xi32> to vector<16x128xi32>
    %196 = arith.cmpi eq, %171, %195 : vector<16x128xi32>
    %197 = arith.extui %196 : vector<16x128xi1> to vector<16x128xi32>
    %198 = arith.sitofp %197 : vector<16x128xi32> to vector<16x128xf32>
    %199 = vector.broadcast %159 : vector<1x128xf32> to vector<16x128xf32>
    %200 = arith.mulf %198, %199 : vector<16x128xf32>
    %201 = arith.addf %194, %200 : vector<16x128xf32>
    %c0_45 = arith.constant 0 : index
    %c0_46 = arith.constant 0 : index
    %c0_47 = arith.constant 0 : index
    %202 = vector.load %arg5[%c0_45, %c0_46, %c0_47] : memref<1x512x16xf32, #tpu.memory_space<vmem>>, vector<1x512x16xf32>
    %203 = vector.shape_cast %202 : vector<1x512x16xf32> to vector<512x16xf32>
    %cst_48 = arith.constant dense<0.000000e+00> : vector<512x128xf32>
    %204 = tpu.matmul %203, %186, %cst_48 {dimension_numbers = #tpu.dot_dimension_numbers<[1], [0], [0], [1], [0, 0, 1, 1], [], []>} : vector<512x16xf32>, vector<16x128xf32>, vector<512x128xf32> -> vector<512x128xf32>
    %205 = vector.shape_cast %204 : vector<512x128xf32> to vector<32x16x128xf32>
    %206 = vector.shape_cast %201 : vector<16x128xf32> to vector<1x16x128xf32>
    %207 = vector.broadcast %206 : vector<1x16x128xf32> to vector<32x16x128xf32>
    %208 = arith.mulf %205, %207 : vector<32x16x128xf32>
    %cst_49 = arith.constant dense<0.000000e+00> : vector<32x128xf32>
    %209 = vector.multi_reduction <add>, %208, %cst_49 [1] : vector<32x16x128xf32> to vector<32x128xf32>
    %210 = arith.addf %140, %209 : vector<32x128xf32>
    %c0_50 = arith.constant 0 : index
    %c0_51 = arith.constant 0 : index
    %211 = vector.load %arg6[%c0_50, %c0_51] : memref<64x3xf32, #tpu.memory_space<vmem>>, vector<64x1xf32>
    %212 = vector.extract_strided_slice %1 {offsets = [0, 0], sizes = [1, 128], strides = [1, 1]} : vector<9x128xf32> to vector<1x128xf32>
    %213 = vector.broadcast %211 : vector<64x1xf32> to vector<64x128xf32>
    %214 = vector.broadcast %212 : vector<1x128xf32> to vector<64x128xf32>
    %215 = arith.mulf %213, %214 : vector<64x128xf32>
    %c0_52 = arith.constant 0 : index
    %c1 = arith.constant 1 : index
    %216 = vector.load %arg6[%c0_52, %c1] : memref<64x3xf32, #tpu.memory_space<vmem>>, vector<64x1xf32>
    %217 = vector.extract_strided_slice %1 {offsets = [1, 0], sizes = [1, 128], strides = [1, 1]} : vector<9x128xf32> to vector<1x128xf32>
    %218 = vector.broadcast %216 : vector<64x1xf32> to vector<64x128xf32>
    %219 = vector.broadcast %217 : vector<1x128xf32> to vector<64x128xf32>
    %220 = arith.mulf %218, %219 : vector<64x128xf32>
    %221 = arith.addf %215, %220 : vector<64x128xf32>
    %c0_53 = arith.constant 0 : index
    %c2 = arith.constant 2 : index
    %222 = vector.load %arg6[%c0_53, %c2] : memref<64x3xf32, #tpu.memory_space<vmem>>, vector<64x1xf32>
    %223 = vector.extract_strided_slice %1 {offsets = [2, 0], sizes = [1, 128], strides = [1, 1]} : vector<9x128xf32> to vector<1x128xf32>
    %224 = vector.broadcast %222 : vector<64x1xf32> to vector<64x128xf32>
    %225 = vector.broadcast %223 : vector<1x128xf32> to vector<64x128xf32>
    %226 = arith.mulf %224, %225 : vector<64x128xf32>
    %227 = arith.addf %221, %226 : vector<64x128xf32>
    %c0_54 = arith.constant 0 : index
    %c0_55 = arith.constant 0 : index
    %228 = vector.load %arg7[%c0_54, %c0_55] : memref<64x1xf32, #tpu.memory_space<vmem>>, vector<64x1xf32>
    %229 = vector.broadcast %228 : vector<64x1xf32> to vector<64x128xf32>
    %230 = arith.addf %227, %229 : vector<64x128xf32>
    %c0_56 = arith.constant 0 : index
    %c0_57 = arith.constant 0 : index
    %c0_58 = arith.constant 0 : index
    %231 = vector.load %arg8[%c0_56, %c0_57, %c0_58] : memref<5x64x32xf32, #tpu.memory_space<vmem>>, vector<1x64x32xf32>
    %232 = vector.shape_cast %231 : vector<1x64x32xf32> to vector<64x32xf32>
    %cst_59 = arith.constant dense<0.000000e+00> : vector<64x128xf32>
    %233 = tpu.matmul %232, %210, %cst_59 {dimension_numbers = #tpu.dot_dimension_numbers<[1], [0], [0], [1], [0, 0, 1, 1], [], []>} : vector<64x32xf32>, vector<32x128xf32>, vector<64x128xf32> -> vector<64x128xf32>
    %234 = arith.addf %230, %233 : vector<64x128xf32>
    %c0_60 = arith.constant 0 : index
    %c0_61 = arith.constant 0 : index
    %c0_62 = arith.constant 0 : index
    %235 = vector.load %arg9[%c0_60, %c0_61, %c0_62] : memref<5x64x1xf32, #tpu.memory_space<vmem>>, vector<1x64x1xf32>
    %236 = vector.shape_cast %235 : vector<1x64x1xf32> to vector<64x1xf32>
    %237 = vector.broadcast %236 : vector<64x1xf32> to vector<64x128xf32>
    %238 = arith.addf %234, %237 : vector<64x128xf32>
    %c0_63 = arith.constant 0 : index
    %c0_64 = arith.constant 0 : index
    %c0_65 = arith.constant 0 : index
    %239 = vector.load %arg10[%c0_63, %c0_64, %c0_65] : memref<5x64x64xf32, #tpu.memory_space<vmem>>, vector<1x64x64xf32>
    %240 = vector.shape_cast %239 : vector<1x64x64xf32> to vector<64x64xf32>
    %cst_66 = arith.constant 0.000000e+00 : f32
    %241 = vector.broadcast %cst_66 : f32 to vector<64x128xf32>
    %242 = arith.maximumf %238, %241 : vector<64x128xf32>
    %cst_67 = arith.constant dense<0.000000e+00> : vector<64x128xf32>
    %243 = tpu.matmul %240, %242, %cst_67 {dimension_numbers = #tpu.dot_dimension_numbers<[1], [0], [0], [1], [0, 0, 1, 1], [], []>} : vector<64x64xf32>, vector<64x128xf32>, vector<64x128xf32> -> vector<64x128xf32>
    %c0_68 = arith.constant 0 : index
    %c0_69 = arith.constant 0 : index
    %c0_70 = arith.constant 0 : index
    %244 = vector.load %arg11[%c0_68, %c0_69, %c0_70] : memref<5x64x1xf32, #tpu.memory_space<vmem>>, vector<1x64x1xf32>
    %245 = vector.shape_cast %244 : vector<1x64x1xf32> to vector<64x1xf32>
    %246 = vector.broadcast %245 : vector<64x1xf32> to vector<64x128xf32>
    %247 = arith.addf %243, %246 : vector<64x128xf32>
    %c0_71 = arith.constant 0 : index
    %c0_72 = arith.constant 0 : index
    %c0_73 = arith.constant 0 : index
    %248 = vector.load %arg12[%c0_71, %c0_72, %c0_73] : memref<5x64x64xf32, #tpu.memory_space<vmem>>, vector<1x64x64xf32>
    %249 = vector.shape_cast %248 : vector<1x64x64xf32> to vector<64x64xf32>
    %cst_74 = arith.constant 0.000000e+00 : f32
    %250 = vector.broadcast %cst_74 : f32 to vector<64x128xf32>
    %251 = arith.maximumf %247, %250 : vector<64x128xf32>
    %cst_75 = arith.constant dense<0.000000e+00> : vector<64x128xf32>
    %252 = tpu.matmul %249, %251, %cst_75 {dimension_numbers = #tpu.dot_dimension_numbers<[1], [0], [0], [1], [0, 0, 1, 1], [], []>} : vector<64x64xf32>, vector<64x128xf32>, vector<64x128xf32> -> vector<64x128xf32>
    %c0_76 = arith.constant 0 : index
    %c0_77 = arith.constant 0 : index
    %c0_78 = arith.constant 0 : index
    %253 = vector.load %arg13[%c0_76, %c0_77, %c0_78] : memref<5x64x1xf32, #tpu.memory_space<vmem>>, vector<1x64x1xf32>
    %254 = vector.shape_cast %253 : vector<1x64x1xf32> to vector<64x1xf32>
    %255 = vector.broadcast %254 : vector<64x1xf32> to vector<64x128xf32>
    %256 = arith.addf %252, %255 : vector<64x128xf32>
    %257 = arith.addf %238, %256 : vector<64x128xf32>
    %c1_79 = arith.constant 1 : index
    %c0_80 = arith.constant 0 : index
    %c0_81 = arith.constant 0 : index
    %258 = vector.load %arg8[%c1_79, %c0_80, %c0_81] : memref<5x64x32xf32, #tpu.memory_space<vmem>>, vector<1x64x32xf32>
    %259 = vector.shape_cast %258 : vector<1x64x32xf32> to vector<64x32xf32>
    %cst_82 = arith.constant dense<0.000000e+00> : vector<64x128xf32>
    %260 = tpu.matmul %259, %210, %cst_82 {dimension_numbers = #tpu.dot_dimension_numbers<[1], [0], [0], [1], [0, 0, 1, 1], [], []>} : vector<64x32xf32>, vector<32x128xf32>, vector<64x128xf32> -> vector<64x128xf32>
    %261 = arith.addf %257, %260 : vector<64x128xf32>
    %c1_83 = arith.constant 1 : index
    %c0_84 = arith.constant 0 : index
    %c0_85 = arith.constant 0 : index
    %262 = vector.load %arg9[%c1_83, %c0_84, %c0_85] : memref<5x64x1xf32, #tpu.memory_space<vmem>>, vector<1x64x1xf32>
    %263 = vector.shape_cast %262 : vector<1x64x1xf32> to vector<64x1xf32>
    %264 = vector.broadcast %263 : vector<64x1xf32> to vector<64x128xf32>
    %265 = arith.addf %261, %264 : vector<64x128xf32>
    %c1_86 = arith.constant 1 : index
    %c0_87 = arith.constant 0 : index
    %c0_88 = arith.constant 0 : index
    %266 = vector.load %arg10[%c1_86, %c0_87, %c0_88] : memref<5x64x64xf32, #tpu.memory_space<vmem>>, vector<1x64x64xf32>
    %267 = vector.shape_cast %266 : vector<1x64x64xf32> to vector<64x64xf32>
    %cst_89 = arith.constant 0.000000e+00 : f32
    %268 = vector.broadcast %cst_89 : f32 to vector<64x128xf32>
    %269 = arith.maximumf %265, %268 : vector<64x128xf32>
    %cst_90 = arith.constant dense<0.000000e+00> : vector<64x128xf32>
    %270 = tpu.matmul %267, %269, %cst_90 {dimension_numbers = #tpu.dot_dimension_numbers<[1], [0], [0], [1], [0, 0, 1, 1], [], []>} : vector<64x64xf32>, vector<64x128xf32>, vector<64x128xf32> -> vector<64x128xf32>
    %c1_91 = arith.constant 1 : index
    %c0_92 = arith.constant 0 : index
    %c0_93 = arith.constant 0 : index
    %271 = vector.load %arg11[%c1_91, %c0_92, %c0_93] : memref<5x64x1xf32, #tpu.memory_space<vmem>>, vector<1x64x1xf32>
    %272 = vector.shape_cast %271 : vector<1x64x1xf32> to vector<64x1xf32>
    %273 = vector.broadcast %272 : vector<64x1xf32> to vector<64x128xf32>
    %274 = arith.addf %270, %273 : vector<64x128xf32>
    %c1_94 = arith.constant 1 : index
    %c0_95 = arith.constant 0 : index
    %c0_96 = arith.constant 0 : index
    %275 = vector.load %arg12[%c1_94, %c0_95, %c0_96] : memref<5x64x64xf32, #tpu.memory_space<vmem>>, vector<1x64x64xf32>
    %276 = vector.shape_cast %275 : vector<1x64x64xf32> to vector<64x64xf32>
    %cst_97 = arith.constant 0.000000e+00 : f32
    %277 = vector.broadcast %cst_97 : f32 to vector<64x128xf32>
    %278 = arith.maximumf %274, %277 : vector<64x128xf32>
    %cst_98 = arith.constant dense<0.000000e+00> : vector<64x128xf32>
    %279 = tpu.matmul %276, %278, %cst_98 {dimension_numbers = #tpu.dot_dimension_numbers<[1], [0], [0], [1], [0, 0, 1, 1], [], []>} : vector<64x64xf32>, vector<64x128xf32>, vector<64x128xf32> -> vector<64x128xf32>
    %c1_99 = arith.constant 1 : index
    %c0_100 = arith.constant 0 : index
    %c0_101 = arith.constant 0 : index
    %280 = vector.load %arg13[%c1_99, %c0_100, %c0_101] : memref<5x64x1xf32, #tpu.memory_space<vmem>>, vector<1x64x1xf32>
    %281 = vector.shape_cast %280 : vector<1x64x1xf32> to vector<64x1xf32>
    %282 = vector.broadcast %281 : vector<64x1xf32> to vector<64x128xf32>
    %283 = arith.addf %279, %282 : vector<64x128xf32>
    %284 = arith.addf %265, %283 : vector<64x128xf32>
    %c2_102 = arith.constant 2 : index
    %c0_103 = arith.constant 0 : index
    %c0_104 = arith.constant 0 : index
    %285 = vector.load %arg8[%c2_102, %c0_103, %c0_104] : memref<5x64x32xf32, #tpu.memory_space<vmem>>, vector<1x64x32xf32>
    %286 = vector.shape_cast %285 : vector<1x64x32xf32> to vector<64x32xf32>
    %cst_105 = arith.constant dense<0.000000e+00> : vector<64x128xf32>
    %287 = tpu.matmul %286, %210, %cst_105 {dimension_numbers = #tpu.dot_dimension_numbers<[1], [0], [0], [1], [0, 0, 1, 1], [], []>} : vector<64x32xf32>, vector<32x128xf32>, vector<64x128xf32> -> vector<64x128xf32>
    %288 = arith.addf %284, %287 : vector<64x128xf32>
    %c2_106 = arith.constant 2 : index
    %c0_107 = arith.constant 0 : index
    %c0_108 = arith.constant 0 : index
    %289 = vector.load %arg9[%c2_106, %c0_107, %c0_108] : memref<5x64x1xf32, #tpu.memory_space<vmem>>, vector<1x64x1xf32>
    %290 = vector.shape_cast %289 : vector<1x64x1xf32> to vector<64x1xf32>
    %291 = vector.broadcast %290 : vector<64x1xf32> to vector<64x128xf32>
    %292 = arith.addf %288, %291 : vector<64x128xf32>
    %c2_109 = arith.constant 2 : index
    %c0_110 = arith.constant 0 : index
    %c0_111 = arith.constant 0 : index
    %293 = vector.load %arg10[%c2_109, %c0_110, %c0_111] : memref<5x64x64xf32, #tpu.memory_space<vmem>>, vector<1x64x64xf32>
    %294 = vector.shape_cast %293 : vector<1x64x64xf32> to vector<64x64xf32>
    %cst_112 = arith.constant 0.000000e+00 : f32
    %295 = vector.broadcast %cst_112 : f32 to vector<64x128xf32>
    %296 = arith.maximumf %292, %295 : vector<64x128xf32>
    %cst_113 = arith.constant dense<0.000000e+00> : vector<64x128xf32>
    %297 = tpu.matmul %294, %296, %cst_113 {dimension_numbers = #tpu.dot_dimension_numbers<[1], [0], [0], [1], [0, 0, 1, 1], [], []>} : vector<64x64xf32>, vector<64x128xf32>, vector<64x128xf32> -> vector<64x128xf32>
    %c2_114 = arith.constant 2 : index
    %c0_115 = arith.constant 0 : index
    %c0_116 = arith.constant 0 : index
    %298 = vector.load %arg11[%c2_114, %c0_115, %c0_116] : memref<5x64x1xf32, #tpu.memory_space<vmem>>, vector<1x64x1xf32>
    %299 = vector.shape_cast %298 : vector<1x64x1xf32> to vector<64x1xf32>
    %300 = vector.broadcast %299 : vector<64x1xf32> to vector<64x128xf32>
    %301 = arith.addf %297, %300 : vector<64x128xf32>
    %c2_117 = arith.constant 2 : index
    %c0_118 = arith.constant 0 : index
    %c0_119 = arith.constant 0 : index
    %302 = vector.load %arg12[%c2_117, %c0_118, %c0_119] : memref<5x64x64xf32, #tpu.memory_space<vmem>>, vector<1x64x64xf32>
    %303 = vector.shape_cast %302 : vector<1x64x64xf32> to vector<64x64xf32>
    %cst_120 = arith.constant 0.000000e+00 : f32
    %304 = vector.broadcast %cst_120 : f32 to vector<64x128xf32>
    %305 = arith.maximumf %301, %304 : vector<64x128xf32>
    %cst_121 = arith.constant dense<0.000000e+00> : vector<64x128xf32>
    %306 = tpu.matmul %303, %305, %cst_121 {dimension_numbers = #tpu.dot_dimension_numbers<[1], [0], [0], [1], [0, 0, 1, 1], [], []>} : vector<64x64xf32>, vector<64x128xf32>, vector<64x128xf32> -> vector<64x128xf32>
    %c2_122 = arith.constant 2 : index
    %c0_123 = arith.constant 0 : index
    %c0_124 = arith.constant 0 : index
    %307 = vector.load %arg13[%c2_122, %c0_123, %c0_124] : memref<5x64x1xf32, #tpu.memory_space<vmem>>, vector<1x64x1xf32>
    %308 = vector.shape_cast %307 : vector<1x64x1xf32> to vector<64x1xf32>
    %309 = vector.broadcast %308 : vector<64x1xf32> to vector<64x128xf32>
    %310 = arith.addf %306, %309 : vector<64x128xf32>
    %311 = arith.addf %292, %310 : vector<64x128xf32>
    %c3 = arith.constant 3 : index
    %c0_125 = arith.constant 0 : index
    %c0_126 = arith.constant 0 : index
    %312 = vector.load %arg8[%c3, %c0_125, %c0_126] : memref<5x64x32xf32, #tpu.memory_space<vmem>>, vector<1x64x32xf32>
    %313 = vector.shape_cast %312 : vector<1x64x32xf32> to vector<64x32xf32>
    %cst_127 = arith.constant dense<0.000000e+00> : vector<64x128xf32>
    %314 = tpu.matmul %313, %210, %cst_127 {dimension_numbers = #tpu.dot_dimension_numbers<[1], [0], [0], [1], [0, 0, 1, 1], [], []>} : vector<64x32xf32>, vector<32x128xf32>, vector<64x128xf32> -> vector<64x128xf32>
    %315 = arith.addf %311, %314 : vector<64x128xf32>
    %c3_128 = arith.constant 3 : index
    %c0_129 = arith.constant 0 : index
    %c0_130 = arith.constant 0 : index
    %316 = vector.load %arg9[%c3_128, %c0_129, %c0_130] : memref<5x64x1xf32, #tpu.memory_space<vmem>>, vector<1x64x1xf32>
    %317 = vector.shape_cast %316 : vector<1x64x1xf32> to vector<64x1xf32>
    %318 = vector.broadcast %317 : vector<64x1xf32> to vector<64x128xf32>
    %319 = arith.addf %315, %318 : vector<64x128xf32>
    %c3_131 = arith.constant 3 : index
    %c0_132 = arith.constant 0 : index
    %c0_133 = arith.constant 0 : index
    %320 = vector.load %arg10[%c3_131, %c0_132, %c0_133] : memref<5x64x64xf32, #tpu.memory_space<vmem>>, vector<1x64x64xf32>
    %321 = vector.shape_cast %320 : vector<1x64x64xf32> to vector<64x64xf32>
    %cst_134 = arith.constant 0.000000e+00 : f32
    %322 = vector.broadcast %cst_134 : f32 to vector<64x128xf32>
    %323 = arith.maximumf %319, %322 : vector<64x128xf32>
    %cst_135 = arith.constant dense<0.000000e+00> : vector<64x128xf32>
    %324 = tpu.matmul %321, %323, %cst_135 {dimension_numbers = #tpu.dot_dimension_numbers<[1], [0], [0], [1], [0, 0, 1, 1], [], []>} : vector<64x64xf32>, vector<64x128xf32>, vector<64x128xf32> -> vector<64x128xf32>
    %c3_136 = arith.constant 3 : index
    %c0_137 = arith.constant 0 : index
    %c0_138 = arith.constant 0 : index
    %325 = vector.load %arg11[%c3_136, %c0_137, %c0_138] : memref<5x64x1xf32, #tpu.memory_space<vmem>>, vector<1x64x1xf32>
    %326 = vector.shape_cast %325 : vector<1x64x1xf32> to vector<64x1xf32>
    %327 = vector.broadcast %326 : vector<64x1xf32> to vector<64x128xf32>
    %328 = arith.addf %324, %327 : vector<64x128xf32>
    %c3_139 = arith.constant 3 : index
    %c0_140 = arith.constant 0 : index
    %c0_141 = arith.constant 0 : index
    %329 = vector.load %arg12[%c3_139, %c0_140, %c0_141] : memref<5x64x64xf32, #tpu.memory_space<vmem>>, vector<1x64x64xf32>
    %330 = vector.shape_cast %329 : vector<1x64x64xf32> to vector<64x64xf32>
    %cst_142 = arith.constant 0.000000e+00 : f32
    %331 = vector.broadcast %cst_142 : f32 to vector<64x128xf32>
    %332 = arith.maximumf %328, %331 : vector<64x128xf32>
    %cst_143 = arith.constant dense<0.000000e+00> : vector<64x128xf32>
    %333 = tpu.matmul %330, %332, %cst_143 {dimension_numbers = #tpu.dot_dimension_numbers<[1], [0], [0], [1], [0, 0, 1, 1], [], []>} : vector<64x64xf32>, vector<64x128xf32>, vector<64x128xf32> -> vector<64x128xf32>
    %c3_144 = arith.constant 3 : index
    %c0_145 = arith.constant 0 : index
    %c0_146 = arith.constant 0 : index
    %334 = vector.load %arg13[%c3_144, %c0_145, %c0_146] : memref<5x64x1xf32, #tpu.memory_space<vmem>>, vector<1x64x1xf32>
    %335 = vector.shape_cast %334 : vector<1x64x1xf32> to vector<64x1xf32>
    %336 = vector.broadcast %335 : vector<64x1xf32> to vector<64x128xf32>
    %337 = arith.addf %333, %336 : vector<64x128xf32>
    %338 = arith.addf %319, %337 : vector<64x128xf32>
    %c4 = arith.constant 4 : index
    %c0_147 = arith.constant 0 : index
    %c0_148 = arith.constant 0 : index
    %339 = vector.load %arg8[%c4, %c0_147, %c0_148] : memref<5x64x32xf32, #tpu.memory_space<vmem>>, vector<1x64x32xf32>
    %340 = vector.shape_cast %339 : vector<1x64x32xf32> to vector<64x32xf32>
    %cst_149 = arith.constant dense<0.000000e+00> : vector<64x128xf32>
    %341 = tpu.matmul %340, %210, %cst_149 {dimension_numbers = #tpu.dot_dimension_numbers<[1], [0], [0], [1], [0, 0, 1, 1], [], []>} : vector<64x32xf32>, vector<32x128xf32>, vector<64x128xf32> -> vector<64x128xf32>
    %342 = arith.addf %338, %341 : vector<64x128xf32>
    %c4_150 = arith.constant 4 : index
    %c0_151 = arith.constant 0 : index
    %c0_152 = arith.constant 0 : index
    %343 = vector.load %arg9[%c4_150, %c0_151, %c0_152] : memref<5x64x1xf32, #tpu.memory_space<vmem>>, vector<1x64x1xf32>
    %344 = vector.shape_cast %343 : vector<1x64x1xf32> to vector<64x1xf32>
    %345 = vector.broadcast %344 : vector<64x1xf32> to vector<64x128xf32>
    %346 = arith.addf %342, %345 : vector<64x128xf32>
    %c4_153 = arith.constant 4 : index
    %c0_154 = arith.constant 0 : index
    %c0_155 = arith.constant 0 : index
    %347 = vector.load %arg10[%c4_153, %c0_154, %c0_155] : memref<5x64x64xf32, #tpu.memory_space<vmem>>, vector<1x64x64xf32>
    %348 = vector.shape_cast %347 : vector<1x64x64xf32> to vector<64x64xf32>
    %cst_156 = arith.constant 0.000000e+00 : f32
    %349 = vector.broadcast %cst_156 : f32 to vector<64x128xf32>
    %350 = arith.maximumf %346, %349 : vector<64x128xf32>
    %cst_157 = arith.constant dense<0.000000e+00> : vector<64x128xf32>
    %351 = tpu.matmul %348, %350, %cst_157 {dimension_numbers = #tpu.dot_dimension_numbers<[1], [0], [0], [1], [0, 0, 1, 1], [], []>} : vector<64x64xf32>, vector<64x128xf32>, vector<64x128xf32> -> vector<64x128xf32>
    %c4_158 = arith.constant 4 : index
    %c0_159 = arith.constant 0 : index
    %c0_160 = arith.constant 0 : index
    %352 = vector.load %arg11[%c4_158, %c0_159, %c0_160] : memref<5x64x1xf32, #tpu.memory_space<vmem>>, vector<1x64x1xf32>
    %353 = vector.shape_cast %352 : vector<1x64x1xf32> to vector<64x1xf32>
    %354 = vector.broadcast %353 : vector<64x1xf32> to vector<64x128xf32>
    %355 = arith.addf %351, %354 : vector<64x128xf32>
    %c4_161 = arith.constant 4 : index
    %c0_162 = arith.constant 0 : index
    %c0_163 = arith.constant 0 : index
    %356 = vector.load %arg12[%c4_161, %c0_162, %c0_163] : memref<5x64x64xf32, #tpu.memory_space<vmem>>, vector<1x64x64xf32>
    %357 = vector.shape_cast %356 : vector<1x64x64xf32> to vector<64x64xf32>
    %cst_164 = arith.constant 0.000000e+00 : f32
    %358 = vector.broadcast %cst_164 : f32 to vector<64x128xf32>
    %359 = arith.maximumf %355, %358 : vector<64x128xf32>
    %cst_165 = arith.constant dense<0.000000e+00> : vector<64x128xf32>
    %360 = tpu.matmul %357, %359, %cst_165 {dimension_numbers = #tpu.dot_dimension_numbers<[1], [0], [0], [1], [0, 0, 1, 1], [], []>} : vector<64x64xf32>, vector<64x128xf32>, vector<64x128xf32> -> vector<64x128xf32>
    %c4_166 = arith.constant 4 : index
    %c0_167 = arith.constant 0 : index
    %c0_168 = arith.constant 0 : index
    %361 = vector.load %arg13[%c4_166, %c0_167, %c0_168] : memref<5x64x1xf32, #tpu.memory_space<vmem>>, vector<1x64x1xf32>
    %362 = vector.shape_cast %361 : vector<1x64x1xf32> to vector<64x1xf32>
    %363 = vector.broadcast %362 : vector<64x1xf32> to vector<64x128xf32>
    %364 = arith.addf %360, %363 : vector<64x128xf32>
    %365 = arith.addf %346, %364 : vector<64x128xf32>
    %cst_169 = arith.constant 0.000000e+00 : f32
    %366 = vector.broadcast %cst_169 : f32 to vector<64x128xf32>
    %367 = arith.maximumf %365, %366 : vector<64x128xf32>
    %c0_170 = arith.constant 0 : index
    %c0_171 = arith.constant 0 : index
    %368 = vector.load %arg14[%c0_170, %c0_171] : memref<64x1xf32, #tpu.memory_space<vmem>>, vector<64x1xf32>
    %369 = vector.broadcast %368 : vector<64x1xf32> to vector<64x128xf32>
    %370 = arith.mulf %367, %369 : vector<64x128xf32>
    %cst_172 = arith.constant dense<0.000000e+00> : vector<128xf32>
    %371 = vector.multi_reduction <add>, %370, %cst_172 [0] : vector<64x128xf32> to vector<128xf32>
    %372 = vector.shape_cast %371 : vector<128xf32> to vector<1x128xf32>
    %c0_173 = arith.constant 0 : index
    %c0_174 = arith.constant 0 : index
    %373 = vector.load %arg15[%c0_173, %c0_174] : memref<1x1xf32, #tpu.memory_space<vmem>>, vector<1x1xf32>
    %374 = vector.broadcast %373 : vector<1x1xf32> to vector<1x128xf32>
    %375 = arith.addf %372, %374 : vector<1x128xf32>
    %376 = vector.shape_cast %375 : vector<1x128xf32> to vector<1x1x128xf32>
    %c0_175 = arith.constant 0 : index
    %c0_176 = arith.constant 0 : index
    %c0_177 = arith.constant 0 : index
    %377 = vector.load %arg16[%c0_175, %c0_176, %c0_177] : memref<1x1x128xf32, #tpu.memory_space<vmem>>, vector<1x1x128xf32>
    tpu.vector_store %arg16[%c0_175, %c0_176, %c0_177], %376 {strides = array<i32>} : memref<1x1x128xf32, #tpu.memory_space<vmem>>, vector<1x1x128xf32>,
    return
  }
  func.func @transform_0(%arg0: i32, %arg1: i32) -> (i32, i32, i32) {
    %c0_i32 = arith.constant 0 : i32
    %c0_i32_0 = arith.constant 0 : i32
    return %arg0, %c0_i32, %arg1 : i32, i32, i32
  }
  func.func @transform_1(%arg0: i32, %arg1: i32) -> (i32, i32, i32) {
    %c0_i32 = arith.constant 0 : i32
    %c0_i32_0 = arith.constant 0 : i32
    %c0_i32_1 = arith.constant 0 : i32
    return %arg0, %c0_i32, %c0_i32_0 : i32, i32, i32
  }
  func.func @transform_2(%arg0: i32, %arg1: i32) -> (i32, i32, i32) {
    %c0_i32 = arith.constant 0 : i32
    %c0_i32_0 = arith.constant 0 : i32
    %c0_i32_1 = arith.constant 0 : i32
    return %arg0, %c0_i32, %c0_i32_0 : i32, i32, i32
  }
  func.func @transform_3(%arg0: i32, %arg1: i32) -> (i32, i32, i32) {
    %c0_i32 = arith.constant 0 : i32
    %c0_i32_0 = arith.constant 0 : i32
    %c0_i32_1 = arith.constant 0 : i32
    return %arg0, %c0_i32, %c0_i32_0 : i32, i32, i32
  }
  func.func @transform_4(%arg0: i32, %arg1: i32) -> (i32, i32) {
    %c0_i32 = arith.constant 0 : i32
    %c0_i32_0 = arith.constant 0 : i32
    %c0_i32_1 = arith.constant 0 : i32
    return %c0_i32, %c0_i32_0 : i32, i32
  }
  func.func @transform_5(%arg0: i32, %arg1: i32) -> (i32, i32) {
    %c0_i32 = arith.constant 0 : i32
    %c0_i32_0 = arith.constant 0 : i32
    %c0_i32_1 = arith.constant 0 : i32
    return %c0_i32, %c0_i32_0 : i32, i32
  }
  func.func @transform_6(%arg0: i32, %arg1: i32) -> (i32, i32, i32) {
    %c0_i32 = arith.constant 0 : i32
    %c0_i32_0 = arith.constant 0 : i32
    %c0_i32_1 = arith.constant 0 : i32
    %c0_i32_2 = arith.constant 0 : i32
    return %c0_i32, %c0_i32_0, %c0_i32_1 : i32, i32, i32
  }
  func.func @transform_7(%arg0: i32, %arg1: i32) -> (i32, i32, i32) {
    %c0_i32 = arith.constant 0 : i32
    %c0_i32_0 = arith.constant 0 : i32
    %c0_i32_1 = arith.constant 0 : i32
    %c0_i32_2 = arith.constant 0 : i32
    return %c0_i32, %c0_i32_0, %c0_i32_1 : i32, i32, i32
  }
  func.func @transform_8(%arg0: i32, %arg1: i32) -> (i32, i32, i32) {
    %c0_i32 = arith.constant 0 : i32
    %c0_i32_0 = arith.constant 0 : i32
    %c0_i32_1 = arith.constant 0 : i32
    %c0_i32_2 = arith.constant 0 : i32
    return %c0_i32, %c0_i32_0, %c0_i32_1 : i32, i32, i32
  }
  func.func @transform_9(%arg0: i32, %arg1: i32) -> (i32, i32, i32) {
    %c0_i32 = arith.constant 0 : i32
    %c0_i32_0 = arith.constant 0 : i32
    %c0_i32_1 = arith.constant 0 : i32
    %c0_i32_2 = arith.constant 0 : i32
    return %c0_i32, %c0_i32_0, %c0_i32_1 : i32, i32, i32
  }
  func.func @transform_10(%arg0: i32, %arg1: i32) -> (i32, i32, i32) {
    %c0_i32 = arith.constant 0 : i32
    %c0_i32_0 = arith.constant 0 : i32
    %c0_i32_1 = arith.constant 0 : i32
    %c0_i32_2 = arith.constant 0 : i32
    return %c0_i32, %c0_i32_0, %c0_i32_1 : i32, i32, i32
  }
  func.func @transform_11(%arg0: i32, %arg1: i32) -> (i32, i32, i32) {
    %c0_i32 = arith.constant 0 : i32
    %c0_i32_0 = arith.constant 0 : i32
    %c0_i32_1 = arith.constant 0 : i32
    %c0_i32_2 = arith.constant 0 : i32
    return %c0_i32, %c0_i32_0, %c0_i32_1 : i32, i32, i32
  }
  func.func @transform_12(%arg0: i32, %arg1: i32) -> (i32, i32) {
    %c0_i32 = arith.constant 0 : i32
    %c0_i32_0 = arith.constant 0 : i32
    %c0_i32_1 = arith.constant 0 : i32
    return %c0_i32, %c0_i32_0 : i32, i32
  }
  func.func @transform_13(%arg0: i32, %arg1: i32) -> (i32, i32) {
    %c0_i32 = arith.constant 0 : i32
    %c0_i32_0 = arith.constant 0 : i32
    %c0_i32_1 = arith.constant 0 : i32
    return %c0_i32, %c0_i32_0 : i32, i32
  }
  func.func @transform_14(%arg0: i32, %arg1: i32) -> (i32, i32, i32) {
    %c0_i32 = arith.constant 0 : i32
    %c0_i32_0 = arith.constant 0 : i32
    return %arg0, %arg1, %c0_i32 : i32, i32, i32
  }
}

</mosaic_0001>

<bundles_post_ra>
// kernel: tpu_custom_call.1
= control target key start
LH: loop header
LB: loop body
LE: loop exit
PB: predicated region body
PF: predicated region fallthrough
CT: control target
= control target key end

     0   :  { %s12023_s0 = inlined_call_operand.vmem [shape: f32[2,9,128], index: 0, kind: input, shape index: {}]   ;;  %s12024_s1 = inlined_call_operand.vmem [shape: f32[2,512,16], index: 1, kind: input, shape index: {}]   ;;  %s12025_s2 = inlined_call_operand.vmem [shape: f32[2,512,16], index: 2, kind: input, shape index: {}]   ;;  %s12026_s3 = inlined_call_operand.vmem [shape: f32[2,512,16], index: 3, kind: input, shape index: {}]   ;;  %s12027_s4 = inlined_call_operand.vmem [shape: f32[64,3], index: 4, kind: input, shape index: {}]   ;;  %s12028_s5 = inlined_call_operand.vmem [shape: f32[64,1], index: 5, kind: input, shape index: {}]   ;;  %s12029_s6 = inlined_call_operand.vmem [shape: f32[5,64,32], index: 6, kind: input, shape index: {}]   ;;  %s12030_s7 = inlined_call_operand.vmem [shape: f32[5,64,1], index: 7, kind: input, shape index: {}]   ;;  %s12031_s8 = inlined_call_operand.vmem [shape: f32[5,64,64], index: 8, kind: input, shape index: {}]   ;;  %s12032_s9 = inlined_call_operand.vmem [shape: f32[5,64,1], index: 9, kind: input, shape index: {}]   ;;  %s12033_s10 = inlined_call_operand.vmem [shape: f32[5,64,64], index: 10, kind: input, shape index: {}]   ;;  %s12034_s11 = inlined_call_operand.vmem [shape: f32[5,64,1], index: 11, kind: input, shape index: {}]   ;;  %s12035_s12 = inlined_call_operand.vmem [shape: f32[64,1], index: 12, kind: input, shape index: {}]   ;;  %s12036_s13 = inlined_call_operand.<no memory space> [shape: f32[1,1], index: 13, kind: input, shape index: {}]   ;;  %s12037_s14 = inlined_call_operand.hbm [shape: f32[2,1,128], index: 14, kind: output, shape index: {}]  }
   0x1   :  { %12044 = sst [smem:[#allocation58_spill]] %s12023_s0  ;;  %v19_v0 = vstv %s12036_s13 }
   0x2   :  { %12045 = sst [smem:[#allocation59_spill]] %s12024_s1  ;;  %20 = vst [vmem:[#allocation2] sm:$0x1] %v19_v0 }
   0x3   :  { %21 = vsyncpa [#allocation4], 0 }
   0x4   :  { %23 = vsyncpa [#allocation4 + $0x1], 0  ;;  %s9332_s15 = smov 0   ;;  %s9334_s16 = smov 0  }
   0x5   :  { %s9336_s17 = smov 0   ;;  %s9338_s18 = smov 0  }
   0x6   :  { %s9340_s19 = smov 0   ;;  %s9342_s20 = smov 0  }
   0x7 LB: > { %12046 = sst [smem:[#allocation6_spill]] %s9243_s19  ;;  %s7134_s13 = sadd.s32 4294967295, %s9247_s20   ;;  %s9247_s20 = sphi %s9342_s20, %s29_s20   ;;  %s9243_s19 = sphi %s9340_s19, %s12178_s19   ;;  %s9239_s18 = sphi %s9338_s18, %s12177_s18   ;;  %s9235_s17 = sphi %s9336_s17, %s12181_s17   ;;  %s9231_s16 = sphi %s9334_s16, %s12180_s16   ;;  %s9227_s15 = sphi %s9332_s15, %s12179_s15  }
   0x8   : > { %s7135_s21 = sadd.s32 4294967294, %s9247_s20   ;;  %s41_s22 = sadd.s32 1, %s9243_s19 }
   0x9   : > { %s366_s23 = sadd.s32 1, %s9235_s17  ;;  %p43_p0 = scmp.ge.s32.totalorder %s41_s22, 2 }
   0xa   : > { %p376_p1 = scmp.ne.s32.totalorder %s9235_s17, %s9231_s16  ;;  %p377_p2 = scmp.eq.s32.totalorder %s7134_s13, 1 }
   0xb   : > { %p382_p3 = scmp.ne.s32.totalorder %s9231_s16, %s9227_s15  ;;  %s12183_s22 = smov (%p43_p0, %s41_s22), 0 }
   0xc   : > { %12047 = sst [smem:[#allocation7_spill]] %s12183_s22  ;;  %p9372_p4 = por %p377_p2, %p376_p1 }
   0xd   : > { %p383_p5 = scmp.eq.s32.totalorder %s7135_s21, 1  ;;  %s361_s25 = ssub.s32 %s9243_s19, %s12183_s22 }
   0xe   : > { %p7138_p6 = scmp.ge.s32.totalorder %s9247_s20, 1  ;;  %p364_p7 = scmp.eq.s32.totalorder %s361_s25, 0 }
   0xf   : > { %p9379_p8 = por %p383_p5, %p382_p3  ;;  %p466_p9 = scmp.lt.s32.totalorder %s9247_s20, 3 }
  0x10   : > { %s9385_s27 = scalar_select %p364_p7, %s9235_s17, %s366_s23  }
  0x11   : > { %p467_p10 = pnand %p7138_p6, %p466_p9 }
  0x13   : > { %470 = sbr.rel (%p467_p10) target bundleno = 3235 (0xca3), region = 76 }
  0x1a   : > { %p529_p11 = scmp.lt.s32.totalorder %s9239_s18, 1  ;;  %vm699_vm0 = vcmask 130048   ;;  %s12050_s0 = sld [smem:[#allocation58_spill]]  ;;  %v563_v3 = vlaneseq  ;;  %v9249_v42 = vmov 0.0  }
  0x1b   : > { %s12051_s1 = sld [smem:[#allocation59_spill]]  ;;  %s7675_s21 = sshll.u32 %s9239_s18, 4 }
  0x1c   : > { %s530_s28 = scalar_select %p529_p11, %s9239_s18, 1  ;;  %v9408_v10 = vshrl.u32 %v563_v3, 7 }
  0x1d   : > { %s9253_s18 = smov [#allocation3]  }
  0x1e   : > { %s7678_s29 = sshll.u32 %s530_s28, 4  ;;  %s9389_s30 = sshll.u32 %s530_s28, 9  ;;  %12052 = vst [vmem:[#allocation8_spill] sm:$0xff] %v9408_v10  ;;  %v568_v15 = vsub.s32 3, %v9408_v10  ;;  %v603_v16 = vsub.s32 4, %v9408_v10  ;;  %v9419_v21 = vadd.s32 8, %v9408_v10 }
  0x1f   : > { %v1601_v22 = vsub.s32 6, %v9408_v10  ;;  %v9423_v23 = vsub.s32 0, %v9408_v10  ;;  %v9426_v24 = vsub.s32 5, %v9408_v10  ;;  %s9505_s28 = scalar_lea.vmem %s12025_s2, %s9389_s30  ;;  %s9783_s13 = scalar_lea.vmem %s12026_s3, %s9389_s30 }
  0x20   : > { %s9394_s25 = scalar_lea.vmem %s12050_s0, %s7678_s29  ;;  %s9173_s0 = sshll.u32 %s9253_s18, 4  ;;  %s9174_s0 = int_to_ptr.vmem [resolvable:$false] %s9173_s0 }
  0x21   : > { %s9400_s23 = scalar_lea.vmem %s12051_s1, %s9389_s30  ;;  %v552_v1 = vld [vmem:[%s9394_s25] sm:$0xff]  ;;  %v553_v2 = vld [vmem:[%s9394_s25 + $0x8] sm:$0x1]  ;;  %12053 = vst [vmem:[#allocation9_spill] sm:$0xff] %v9423_v23  ;;  %s9175_s1 = scalar_lea.vmem %s9174_s0, 32 }
  0x22   : > { %v635_v4 = vld [vmem:[%s9400_s23] sm:$0xff]  ;;  %v554_v5 = vmul.f32 15.0, %v552_v1  ;;  %v2594_v6 = vmul.f32 15.0, %v553_v2 }
  0x23   : > { %8104 = vmatprep.mubr.msk.f32.mxu0 %vm699_vm0, %v635_v4  ;;  %v695_v7 = vld [vmem:[%s9400_s23 + $0x1e0] sm:$0xff] }
  0x24   : > { %8194 = vmatprep.mubr.msk.f32.mxu1 %vm699_vm0, %v695_v7  ;;  %v555_v8 = vmax.f32 %v554_v5, 0.0  ;;  %v2595_v9 = vmax.f32 %v2594_v6, 0.0 }
  0x26   : > { %v556_v11 = vmin.f32 %v555_v8, 15.0  ;;  %v2596_v12 = vmin.f32 %v2595_v9, 15.0 }
  0x28   : > { %v557_v13 = vfloor.f32 %v556_v11  ;;  %v2597_v14 = vfloor.f32 %v2596_v12 }
  0x2a   : > { %v9412_v17 = vsub.f32 %v556_v11, %v557_v13  ;;  %v9090_v18 = vtrunc.f32 %v557_v13  ;;  %v9414_v19 = vsub.f32 %v2596_v12, %v2597_v14  ;;  %v9416_v20 = vtrunc.f32 %v2597_v14 }
  0x2c   : > { %v9428_v25 = vcvt.f32.s32 %v9090_v18  ;;  %v9431_v26 = vsub.f32 1.0, %v9412_v17  ;;  %v596_v27 = vrot.slane %v9412_v17, %v568_v15  ;;  %v630_v28 = vrot.slane %v9412_v17, %v603_v16 }
  0x2d   : > { %v9436_v29 = vrot.slane %v9412_v17, %v1601_v22  ;;  %v9093_v30 = vcvt.f32.s32 %v9416_v20  ;;  %v2647_v31 = vsub.f32 1.0, %v9414_v19  ;;  %v9442_v32 = vrot.slane %v9414_v19, %v9423_v23  ;;  %v636_v20 = vld [vmem:[%s9400_s23 + $0x8] sm:$0xff] }
  0x2e   : > { %v560_v33 = vadd.s32 1, %v9428_v25  ;;  %v569_v34 = vrot.slane %v9428_v25, %v568_v15  ;;  %v580_v35 = vrot.slane %v9431_v26, %v568_v15  ;;  %v604_v36 = vrot.slane %v9428_v25, %v603_v16 }
  0x2f   : > { %v614_v37 = vrot.slane %v9431_v26, %v603_v16  ;;  %v1602_v38 = vrot.slane %v9428_v25, %v1601_v22  ;;  %v1612_v39 = vrot.slane %v9431_v26, %v1601_v22  ;;  %v2600_v40 = vadd.s32 1, %v9093_v30 }
  0x30   : > { %vm561_vm1 = vcmp.lt.s32.totalorder %v560_v33, 15  ;;  %vm570_vm2 = vcmp.eq.s32.totalorder %v9408_v10, %v569_v34  ;;  %vm571_vm3 = vcmp.eq.s32.totalorder %v9419_v21, %v569_v34  ;;  %vm605_vm4 = vcmp.eq.s32.totalorder %v9408_v10, %v604_v36 }
  0x31   : > { %v9454_v41 = vsel %vm561_vm1, %v560_v33, 15  ;;  %v7147_v43 = vsel %vm570_vm2, 1.0, %v9249_v42  ;;  %v7148_v44 = vsel %vm571_vm3, 1.0, %v9249_v42  ;;  %vm606_vm5 = vcmp.eq.s32.totalorder %v9419_v21, %v604_v36 }
  0x32   : > { %v581_v45 = vmul.f32 %v7147_v43, %v580_v35  ;;  %v582_v46 = vmul.f32 %v7148_v44, %v580_v35  ;;  %v586_v47 = vrot.slane %v9454_v41, %v568_v15  ;;  %v7151_v48 = vsel %vm605_vm4, 1.0, %v9249_v42 }
  0x33   : > { %v7152_v49 = vsel %vm606_vm5, 1.0, %v9249_v42  ;;  %v615_v50 = vmul.f32 %v7151_v48, %v614_v37  ;;  %v620_v51 = vrot.slane %v9454_v41, %v603_v16  ;;  %vm1603_vm6 = vcmp.eq.s32.totalorder %v9408_v10, %v1602_v38 }
  0x34   : > { %vm587_vm7 = vcmp.eq.s32.totalorder %v9408_v10, %v586_v47  ;;  %vm588_vm8 = vcmp.eq.s32.totalorder %v9419_v21, %v586_v47  ;;  %v616_v52 = vmul.f32 %v7152_v49, %v614_v37  ;;  %vm1604_vm9 = vcmp.eq.s32.totalorder %v9419_v21, %v1602_v38  ;;  %v639_v49 = vld [vmem:[%s9400_s23 + $0x20] sm:$0xff] }
  0x35   : > { %v7149_v53 = vsel %vm587_vm7, 1.0, %v9249_v42  ;;  %v7150_v54 = vsel %vm588_vm8, 1.0, %v9249_v42  ;;  %vm621_vm10 = vcmp.eq.s32.totalorder %v9408_v10, %v620_v51  ;;  %vm622_vm11 = vcmp.eq.s32.totalorder %v9419_v21, %v620_v51 }
  0x36   : > { %v597_v55 = vmul.f32 %v7149_v53, %v596_v27  ;;  %v598_v56 = vmul.f32 %v7150_v54, %v596_v27  ;;  %v7153_v57 = vsel %vm621_vm10, 1.0, %v9249_v42  ;;  %v7154_v58 = vsel %vm622_vm11, 1.0, %v9249_v42 }
  0x37   : > { %v631_v59 = vmul.f32 %v7153_v57, %v630_v28  ;;  %v632_v60 = vmul.f32 %v7154_v58, %v630_v28  ;;  %v7223_v61 = vsel %vm1603_vm6, 1.0, %v9249_v42  ;;  %v7224_v62 = vsel %vm1604_vm9, 1.0, %v9249_v42  ;;  %v640_v58 = vld [vmem:[%s9400_s23 + $0x28] sm:$0xff] }
  0x38   : > { %v599_v63 = vadd.f32 %v597_v55, %v581_v45  ;;  %v600_v0 = vadd.f32 %v598_v56, %v582_v46  ;;  %v1613_v1 = vmul.f32 %v7223_v61, %v1612_v39  ;;  %v1614_v2 = vmul.f32 %v7224_v62, %v1612_v39  ;;  %v638_v39 = vld [vmem:[%s9400_s23 + $0x18] sm:$0xff] }
  0x39   : > { %v9475_v3 = vadd.f32 %v631_v59, %v615_v50  ;;  %v9477_v4 = vadd.f32 %v632_v60, %v616_v52  ;;  %v1618_v5 = vrot.slane %v9454_v41, %v1601_v22  ;;  %vm2601_vm12 = vcmp.lt.s32.totalorder %v2600_v40, 15  ;;  %v696_v22 = vld [vmem:[%s9400_s23 + $0x1e8] sm:$0xff]  ;;  %v1633_v50 = vld [vmem:[%s9505_s28] sm:$0xff]  ;;  %v641_v60 = vld [vmem:[%s9400_s23 + $0x30] sm:$0xff] }
  0x3a   : > { %v8780_v6 = vpack.c.bf16 %v600_v0, %v599_v63  ;;  %v2602_v7 = vsel %vm2601_vm12, %v2600_v40, 15  ;;  %v2640_v8 = vrot.slane %v9093_v30, %v9423_v23  ;;  %v2651_v9 = vrot.slane %v2647_v31, %v9423_v23  ;;  %v637_v30 = vld [vmem:[%s9400_s23 + $0x10] sm:$0xff]  ;;  %v698_v40 = vld [vmem:[%s9400_s23 + $0x1f8] sm:$0xff] }
  0x3b   : > { %vm1619_vm13 = vcmp.eq.s32.totalorder %v9408_v10, %v1618_v5  ;;  %vm1620_vm14 = vcmp.eq.s32.totalorder %v9419_v21, %v1618_v5  ;;  %v2657_v11 = vrot.slane %v2602_v7, %v9423_v23  ;;  %v1568_v12 = vrot.slane %v9428_v25, %v9426_v24  ;;  %v697_v31 = vld [vmem:[%s9400_s23 + $0x1f0] sm:$0xff] }
  0x3c   : > { %8781 = vmatprep.subr.bf16.mxu0 %v8780_v6  ;;  %v7225_v13 = vsel %vm1619_vm13, 1.0, %v9249_v42  ;;  %v7226_v14 = vsel %vm1620_vm14, 1.0, %v9249_v42  ;;  %vm2641_vm15 = vcmp.eq.s32.totalorder %v9408_v10, %v2640_v8  ;;  %vm2642_vm1 = vcmp.eq.s32.totalorder %v9419_v21, %v2640_v8  ;;  %8992 = vmatprep.subr.bf16.mxu1 %v8780_v6 }
  0x3d   : > { %v1629_v15 = vmul.f32 %v7225_v13, %v9436_v29  ;;  %v1630_v16 = vmul.f32 %v7226_v14, %v9436_v29  ;;  %v7295_v18 = vsel %vm2641_vm15, 1.0, %v9249_v42  ;;  %v7296_v19 = vsel %vm2642_vm1, 1.0, %v9249_v42  ;;  %8783 = vmatpush3.bf16.msra.mxu0 %v8780_v6  ;;  %8993 = vmatpush3.bf16.msra.mxu1 %v8780_v6  ;;  %v643_v6 = vld [vmem:[%s9400_s23 + $0x40] sm:$0xff]  ;;  %v644_v13 = vld [vmem:[%s9400_s23 + $0x48] sm:$0xff] }
  0x3e   : > { %v2652_v27 = vmul.f32 %v7295_v18, %v2651_v9  ;;  %v2653_v28 = vmul.f32 %v7296_v19, %v2651_v9  ;;  %vm2658_vm2 = vcmp.eq.s32.totalorder %v9408_v10, %v2657_v11  ;;  %vm2659_vm3 = vcmp.eq.s32.totalorder %v9419_v21, %v2657_v11  ;;  %v1634_v9 = vld [vmem:[%s9505_s28 + $0x8] sm:$0xff]  ;;  %v646_v18 = vld [vmem:[%s9400_s23 + $0x58] sm:$0xff]  ;;  %v647_v19 = vld [vmem:[%s9400_s23 + $0x60] sm:$0xff] }
  0x3f   : > { %v9507_v29 = vadd.f32 %v1629_v15, %v1613_v1  ;;  %v9509_v33 = vadd.f32 %v1630_v16, %v1614_v2  ;;  %v7297_v34 = vsel %vm2658_vm2, 1.0, %v9249_v42  ;;  %v7298_v35 = vsel %vm2659_vm3, 1.0, %v9249_v42  ;;  %v1636_v15 = vld [vmem:[%s9505_s28 + $0x18] sm:$0xff]  ;;  %v1637_v16 = vld [vmem:[%s9505_s28 + $0x20] sm:$0xff] }
  0x40   : > { %v2668_v36 = vmul.f32 %v7297_v34, %v9442_v32  ;;  %v2669_v37 = vmul.f32 %v7298_v35, %v9442_v32  ;;  %8105 = vmatmul.mubr.msk.f32.vlgmr.msra.gmra.mrb[0].mxu0 %vm699_vm0, %v636_v20  ;;  %8195 = vmatmul.mubr.msk.f32.vlgmr.msra.gmra.mrb[0].mxu1 %vm699_vm0, %v696_v22  ;;  %vm1569_vm4 = vcmp.eq.s32.totalorder %v9408_v10, %v1568_v12  ;;  %v2605_v38 = vsub.s32 7, %v9408_v10  ;;  %v1638_v20 = vld [vmem:[%s9505_s28 + $0x28] sm:$0xff]  ;;  %v1639_v22 = vld [vmem:[%s9505_s28 + $0x30] sm:$0xff]  ;;  %v650_v34 = vld [vmem:[%s9400_s23 + $0x78] sm:$0xff] }
  0x41   : > { %8107 = vmatprep.mubr.msk.f32.mxu0 %vm699_vm0, %v637_v30  ;;  %8197 = vmatprep.mubr.msk.f32.mxu1 %vm699_vm0, %v697_v31  ;;  %vm1570_vm5 = vcmp.eq.s32.totalorder %v9419_v21, %v1568_v12  ;;  %v7219_v32 = vsel %vm1569_vm4, 1.0, %v9249_v42  ;;  %v1578_v43 = vrot.slane %v9431_v26, %v9426_v24  ;;  %v1584_v44 = vrot.slane %v9454_v41, %v9426_v24  ;;  %v1635_v12 = vld [vmem:[%s9505_s28 + $0x10] sm:$0xff]  ;;  %v1640_v30 = vld [vmem:[%s9505_s28 + $0x38] sm:$0xff]  ;;  %v1641_v31 = vld [vmem:[%s9505_s28 + $0x40] sm:$0xff] }
  0x42   : > { %v9529_v45 = vadd.f32 %v2668_v36, %v2652_v27  ;;  %v9531_v46 = vadd.f32 %v2669_v37, %v2653_v28  ;;  %v7220_v47 = vsel %vm1570_vm5, 1.0, %v9249_v42  ;;  %v1594_v48 = vrot.slane %v9412_v17, %v9426_v24  ;;  %v648_v27 = vld [vmem:[%s9400_s23 + $0x68] sm:$0xff]  ;;  %v649_v28 = vld [vmem:[%s9400_s23 + $0x70] sm:$0xff]  ;;  %v651_v35 = vld [vmem:[%s9400_s23 + $0x80] sm:$0xff] }
  0x43   : > { %v1579_v51 = vmul.f32 %v7219_v32, %v1578_v43  ;;  %v1580_v52 = vmul.f32 %v7220_v47, %v1578_v43  ;;  %vm1585_vm6 = vcmp.eq.s32.totalorder %v9408_v10, %v1584_v44  ;;  %vm1586_vm7 = vcmp.eq.s32.totalorder %v9419_v21, %v1584_v44  ;;  %v1642_v36 = vld [vmem:[%s9505_s28 + $0x48] sm:$0xff]  ;;  %v1643_v37 = vld [vmem:[%s9505_s28 + $0x50] sm:$0xff]  ;;  %v1645_v32 = vld [vmem:[%s9505_s28 + $0x60] sm:$0xff] }
  0x44   : > { %8108 = vmatmul.mubr.msk.f32.gmra.mrb[2].mxu0 %vm699_vm0, %v638_v39  ;;  %8198 = vmatmul.mubr.msk.f32.gmra.mrb[2].mxu1 %vm699_vm0, %v698_v40  ;;  %v7221_v53 = vsel %vm1585_vm6, 1.0, %v9249_v42  ;;  %v7222_v54 = vsel %vm1586_vm7, 1.0, %v9249_v42  ;;  %v2606_v24 = vrot.slane %v9428_v25, %v2605_v38  ;;  %v2616_v55 = vrot.slane %v9431_v26, %v2605_v38  ;;  %v653_v39 = vld [vmem:[%s9400_s23 + $0x90] sm:$0xff]  ;;  %v1644_v40 = vld [vmem:[%s9505_s28 + $0x58] sm:$0xff]  ;;  %v655_v44 = vld [vmem:[%s9400_s23 + $0xa0] sm:$0xff] }
  0x45   : > { %v1595_v56 = vmul.f32 %v7221_v53, %v1594_v48  ;;  %v1596_v57 = vmul.f32 %v7222_v54, %v1594_v48  ;;  %8110 = vmatprep.mubr.msk.f32.mxu0 %vm699_vm0, %v639_v49  ;;  %8204 = vmatprep.mubr.msk.f32.mxu1 %vm699_vm0, %v1633_v50  ;;  %v2622_v59 = vrot.slane %v9454_v41, %v2605_v38  ;;  %v654_v43 = vld [vmem:[%s9400_s23 + $0x98] sm:$0xff]  ;;  %v1646_v47 = vld [vmem:[%s9505_s28 + $0x68] sm:$0xff]  ;;  %v1647_v48 = vld [vmem:[%s9505_s28 + $0x70] sm:$0xff]  ;;  %vm3895_vm12 = vcmask 1042434  }
  0x46   : > { %vm2607_vm8 = vcmp.eq.s32.totalorder %v9408_v10, %v2606_v24  ;;  %vm2608_vm9 = vcmp.eq.s32.totalorder %v9419_v21, %v2606_v24  ;;  %v2632_v25 = vrot.slane %v9412_v17, %v2605_v38  ;;  %v642_v17 = vld [vmem:[%s9400_s23 + $0x38] sm:$0xff]  ;;  %v652_v38 = vld [vmem:[%s9400_s23 + $0x88] sm:$0xff]  ;;  %v657_v50 = vld [vmem:[%s9400_s23 + $0xb0] sm:$0xff]  ;;  %vm3897_vm13 = vcmask 1043459  }
  0x47   : > { %v1597_v61 = vadd.f32 %v1595_v56, %v1579_v51  ;;  %v1598_v26 = vadd.f32 %v1596_v57, %v1580_v52  ;;  %v7291_v62 = vsel %vm2607_vm8, 1.0, %v9249_v42  ;;  %v7292_v63 = vsel %vm2608_vm9, 1.0, %v9249_v42  ;;  %v656_v49 = vld [vmem:[%s9400_s23 + $0xa8] sm:$0xff]  ;;  %v1648_v51 = vld [vmem:[%s9505_s28 + $0x78] sm:$0xff]  ;;  %v1649_v52 = vld [vmem:[%s9505_s28 + $0x80] sm:$0xff] }
  0x48   : > { %8111 = vmatmul.mubr.msk.f32.gmra.mrb[4].mxu0 %vm699_vm0, %v640_v58  ;;  %v2617_v0 = vmul.f32 %v7291_v62, %v2616_v55  ;;  %v2618_v41 = vmul.f32 %v7292_v63, %v2616_v55  ;;  %vm2623_vm10 = vcmp.eq.s32.totalorder %v9408_v10, %v2622_v59  ;;  %vm2624_vm11 = vcmp.eq.s32.totalorder %v9419_v21, %v2622_v59  ;;  %v658_v53 = vld [vmem:[%s9400_s23 + $0xb8] sm:$0xff]  ;;  %v659_v54 = vld [vmem:[%s9400_s23 + $0xc0] sm:$0xff]  ;;  %v1650_v24 = vld [vmem:[%s9505_s28 + $0x88] sm:$0xff] }
  0x49   : > { %v8784_v1 = vpack.c.bf16 %v1598_v26, %v1597_v61  ;;  %8113 = vmatprep.mubr.msk.f32.mxu0 %vm699_vm0, %v641_v60  ;;  %v7293_v2 = vsel %vm2623_vm10, 1.0, %v9249_v42  ;;  %v7294_v5 = vsel %vm2624_vm11, 1.0, %v9249_v42  ;;  %v645_v42 = vld [vmem:[%s9400_s23 + $0x50] sm:$0xff]  ;;  %v660_v56 = vld [vmem:[%s9400_s23 + $0xc8] sm:$0xff]  ;;  %v1652_v58 = vld [vmem:[%s9505_s28 + $0x98] sm:$0xff]  ;;  %vm3899_vm14 = vcmask 1044484  }
  0x4a   : > { %v2633_v7 = vmul.f32 %v7293_v2, %v2632_v25  ;;  %v2634_v8 = vmul.f32 %v7294_v5, %v2632_v25  ;;  %v1651_v55 = vld [vmem:[%s9505_s28 + $0x90] sm:$0xff]  ;;  %v1653_v59 = vld [vmem:[%s9505_s28 + $0xa0] sm:$0xff]  ;;  %v662_v60 = vld [vmem:[%s9400_s23 + $0xd8] sm:$0xff]  ;;  %vm3901_vm15 = vcmask 1045509   ;;  %vm3903_vm1 = vcmask 1046534  }
  0x4b   : > { %8785 = vmatprep.subr.bf16.mxu1 %v8784_v1  ;;  %v661_v57 = vld [vmem:[%s9400_s23 + $0xd0] sm:$0xff]  ;;  %v663_v25 = vld [vmem:[%s9400_s23 + $0xe0] sm:$0xff]  ;;  %v1654_v61 = vld [vmem:[%s9505_s28 + $0xa8] sm:$0xff]  ;;  %vm3905_vm2 = vcmask 1047559   ;;  %vm3932_vm3 = vcmask 261120   ;;  %vm4190_vm4 = vcmask 523264  }
  0x4c   : > { %8787 = vmatpush3.bf16.msra.mxu1 %v8784_v1  ;;  %8114 = vmatmul.mubr.msk.f32.gmra.mrb[6].mxu0 %vm699_vm0, %v642_v17  ;;  %v2635_v21 = vadd.f32 %v2633_v7, %v2617_v0  ;;  %v2636_v11 = vadd.f32 %v2634_v8, %v2618_v41  ;;  %v1655_v26 = vld [vmem:[%s9505_s28 + $0xb0] sm:$0xff]  ;;  %v664_v62 = vld [vmem:[%s9400_s23 + $0xe8] sm:$0xff]  ;;  %v1656_v0 = vld [vmem:[%s9505_s28 + $0xb8] sm:$0xff] }
  0x4d   : > { %8116 = vmatprep.mubr.msk.f32.mxu0 %vm699_vm0, %v643_v6  ;;  %v665_v63 = vld [vmem:[%s9400_s23 + $0xf0] sm:$0xff]  ;;  %v1657_v41 = vld [vmem:[%s9505_s28 + $0xc0] sm:$0xff]  ;;  %v666_v1 = vld [vmem:[%s9400_s23 + $0xf8] sm:$0xff] }
  0x4e   : > { %v8788_v14 = vpack.c.bf16 %v2636_v11, %v2635_v21  ;;  %v667_v17 = vld [vmem:[%s9400_s23 + $0x100] sm:$0xff]  ;;  %v1658_v2 = vld [vmem:[%s9505_s28 + $0xc8] sm:$0xff]  ;;  %v1659_v5 = vld [vmem:[%s9505_s28 + $0xd0] sm:$0xff] }
  0x4f   : > { %8205 = vmatmul.mubr.msk.f32.vlgmr.msra.gmra.mrb[4].mxu1 %vm699_vm0, %v1634_v9  ;;  %v668_v6 = vld [vmem:[%s9400_s23 + $0x108] sm:$0xff]  ;;  %v669_v7 = vld [vmem:[%s9400_s23 + $0x110] sm:$0xff]  ;;  %v1660_v8 = vld [vmem:[%s9505_s28 + $0xd8] sm:$0xff] }
  0x50   : > { %8207 = vmatprep.mubr.msk.f32.mxu1 %vm699_vm0, %v1635_v12  ;;  %8117 = vmatmul.mubr.msk.f32.gmra.mrb[8].mxu0 %vm699_vm0, %v644_v13  ;;  %v1661_v9 = vld [vmem:[%s9505_s28 + $0xe0] sm:$0xff]  ;;  %v670_v21 = vld [vmem:[%s9400_s23 + $0x118] sm:$0xff]  ;;  %v1662_v12 = vld [vmem:[%s9505_s28 + $0xe8] sm:$0xff] }
  0x51   : > { %8119 = vmatprep.mubr.msk.f32.mxu0 %vm699_vm0, %v645_v42  ;;  %8789 = vmatprep.subr.bf16.mxu0 %v8788_v14  ;;  %v671_v11 = vld [vmem:[%s9400_s23 + $0x120] sm:$0xff]  ;;  %v1663_v13 = vld [vmem:[%s9505_s28 + $0xf0] sm:$0xff]  ;;  %v672_v42 = vld [vmem:[%s9400_s23 + $0x128] sm:$0xff] }
  0x52   : > { %8791 = vmatpush3.bf16.msra.mxu0 %v8788_v14  ;;  %v673_v14 = vld [vmem:[%s9400_s23 + $0x130] sm:$0xff] }
  0x53   : > { %8208 = vmatmul.mubr.msk.f32.gmra.mrb[6].mxu1 %vm699_vm0, %v1636_v15  ;;  %v1664_v15 = vld [vmem:[%s9505_s28 + $0xf8] sm:$0xff] }
  0x54   : > { %8210 = vmatprep.mubr.msk.f32.mxu1 %vm699_vm0, %v1637_v16  ;;  %8120 = vmatmul.mubr.msk.f32.gmra.mrb[10].mxu0 %vm699_vm0, %v646_v18  ;;  %v1665_v16 = vld [vmem:[%s9505_s28 + $0x100] sm:$0xff]  ;;  %v674_v18 = vld [vmem:[%s9400_s23 + $0x138] sm:$0xff] }
  0x55   : > { %8122 = vmatprep.mubr.msk.f32.mxu0 %vm699_vm0, %v647_v19  ;;  %v675_v19 = vld [vmem:[%s9400_s23 + $0x140] sm:$0xff] }
  0x57   : > { %8211 = vmatmul.mubr.msk.f32.gmra.mrb[8].mxu1 %vm699_vm0, %v1638_v20  ;;  %v1666_v20 = vld [vmem:[%s9505_s28 + $0x108] sm:$0xff] }
  0x58   : > { %8213 = vmatprep.mubr.msk.f32.mxu1 %vm699_vm0, %v1639_v22  ;;  %8123 = vmatmul.mubr.msk.f32.gmra.mrb[12].mxu0 %vm699_vm0, %v648_v27  ;;  %v1667_v22 = vld [vmem:[%s9505_s28 + $0x110] sm:$0xff]  ;;  %v676_v27 = vld [vmem:[%s9400_s23 + $0x148] sm:$0xff] }
  0x59   : > { %8125 = vmatprep.mubr.msk.f32.mxu0 %vm699_vm0, %v649_v28  ;;  %v677_v28 = vld [vmem:[%s9400_s23 + $0x150] sm:$0xff] }
  0x5b   : > { %8214 = vmatmul.mubr.msk.f32.gmra.mrb[10].mxu1 %vm699_vm0, %v1640_v30  ;;  %v1668_v30 = vld [vmem:[%s9505_s28 + $0x118] sm:$0xff] }
  0x5c   : > { %8216 = vmatprep.mubr.msk.f32.mxu1 %vm699_vm0, %v1641_v31  ;;  %8126 = vmatmul.mubr.msk.f32.gmra.mrb[14].mxu0 %vm699_vm0, %v650_v34  ;;  %v1669_v31 = vld [vmem:[%s9505_s28 + $0x120] sm:$0xff]  ;;  %v678_v34 = vld [vmem:[%s9400_s23 + $0x158] sm:$0xff] }
  0x5d   : > { %8128 = vmatprep.mubr.msk.f32.mxu0 %vm699_vm0, %v651_v35  ;;  %v679_v35 = vld [vmem:[%s9400_s23 + $0x160] sm:$0xff] }
  0x5f   : > { %8217 = vmatmul.mubr.msk.f32.gmra.mrb[12].mxu1 %vm699_vm0, %v1642_v36  ;;  %v1670_v36 = vld [vmem:[%s9505_s28 + $0x128] sm:$0xff] }
  0x60   : > { %8219 = vmatprep.mubr.msk.f32.mxu1 %vm699_vm0, %v1643_v37  ;;  %8129 = vmatmul.mubr.msk.f32.gmra.mrb[16].mxu0 %vm699_vm0, %v652_v38  ;;  %v1671_v37 = vld [vmem:[%s9505_s28 + $0x130] sm:$0xff]  ;;  %v680_v38 = vld [vmem:[%s9400_s23 + $0x168] sm:$0xff] }
  0x61   : > { %8131 = vmatprep.mubr.msk.f32.mxu0 %vm699_vm0, %v653_v39  ;;  %v681_v39 = vld [vmem:[%s9400_s23 + $0x170] sm:$0xff] }
  0x63   : > { %8220 = vmatmul.mubr.msk.f32.gmra.mrb[14].mxu1 %vm699_vm0, %v1644_v40  ;;  %v1672_v40 = vld [vmem:[%s9505_s28 + $0x138] sm:$0xff] }
  0x64   : > { %8222 = vmatprep.mubr.msk.f32.mxu1 %vm699_vm0, %v1645_v32  ;;  %8132 = vmatmul.mubr.msk.f32.gmra.mrb[18].mxu0 %vm699_vm0, %v654_v43  ;;  %v1673_v32 = vld [vmem:[%s9505_s28 + $0x140] sm:$0xff]  ;;  %v682_v43 = vld [vmem:[%s9400_s23 + $0x178] sm:$0xff] }
  0x65   : > { %8134 = vmatprep.mubr.msk.f32.mxu0 %vm699_vm0, %v655_v44  ;;  %v683_v44 = vld [vmem:[%s9400_s23 + $0x180] sm:$0xff] }
  0x67   : > { %8223 = vmatmul.mubr.msk.f32.gmra.mrb[16].mxu1 %vm699_vm0, %v1646_v47  ;;  %v1674_v47 = vld [vmem:[%s9505_s28 + $0x148] sm:$0xff] }
  0x68   : > { %8225 = vmatprep.mubr.msk.f32.mxu1 %vm699_vm0, %v1647_v48  ;;  %8135 = vmatmul.mubr.msk.f32.gmra.mrb[20].mxu0 %vm699_vm0, %v656_v49  ;;  %v1675_v48 = vld [vmem:[%s9505_s28 + $0x150] sm:$0xff]  ;;  %v684_v49 = vld [vmem:[%s9400_s23 + $0x188] sm:$0xff] }
  0x69   : > { %8137 = vmatprep.mubr.msk.f32.mxu0 %vm699_vm0, %v657_v50  ;;  %v685_v50 = vld [vmem:[%s9400_s23 + $0x190] sm:$0xff] }
  0x6b   : > { %8226 = vmatmul.mubr.msk.f32.gmra.mrb[18].mxu1 %vm699_vm0, %v1648_v51  ;;  %v1676_v51 = vld [vmem:[%s9505_s28 + $0x158] sm:$0xff] }
  0x6c   : > { %8228 = vmatprep.mubr.msk.f32.mxu1 %vm699_vm0, %v1649_v52  ;;  %8138 = vmatmul.mubr.msk.f32.gmra.mrb[22].mxu0 %vm699_vm0, %v658_v53  ;;  %v9737_v52 = vld [vmem:[%s12027_s4] sm:$0xff] }
  0x6d   : > { %8140 = vmatprep.mubr.msk.f32.mxu0 %vm699_vm0, %v659_v54  ;;  %v1677_v53 = vld [vmem:[%s9505_s28 + $0x160] sm:$0xff]  ;;  %v686_v54 = vld [vmem:[%s9400_s23 + $0x198] sm:$0xff] }
  0x6f   : > { %8229 = vmatmul.mubr.msk.f32.gmra.mrb[20].mxu1 %vm699_vm0, %v1650_v24  ;;  %v9250_v24 = vmov 1  }
  0x70   : > { %8231 = vmatprep.mubr.msk.f32.mxu1 %vm699_vm0, %v1651_v55  ;;  %8141 = vmatmul.mubr.msk.f32.gmra.mrb[24].mxu0 %vm699_vm0, %v660_v56  ;;  %v687_v55 = vld [vmem:[%s9400_s23 + $0x1a0] sm:$0xff]  ;;  %v1678_v56 = vld [vmem:[%s9505_s28 + $0x168] sm:$0xff] }
  0x71   : > { %8143 = vmatprep.mubr.msk.f32.mxu0 %vm699_vm0, %v661_v57  ;;  %9153 = vset.pattern.permute.xlu1 %v9250_v24  ;;  %v9752_v57 = vld [vmem:[%s12027_s4 + $0x8] sm:$0xff] }
  0x72   : > { %3694 = vperm.xlu1 %9153, %v9737_v52  }
  0x73   : > { %8232 = vmatmul.mubr.msk.f32.gmra.mrb[22].mxu1 %vm699_vm0, %v1652_v58  ;;  %v1679_v58 = vld [vmem:[%s9505_s28 + $0x170] sm:$0xff] }
  0x74   : > { %8234 = vmatprep.mubr.msk.f32.mxu1 %vm699_vm0, %v1653_v59  ;;  %8144 = vmatmul.mubr.msk.f32.gmra.mrb[26].mxu0 %vm699_vm0, %v662_v60  ;;  %v688_v59 = vld [vmem:[%s9400_s23 + $0x1a8] sm:$0xff]  ;;  %v689_v60 = vld [vmem:[%s9400_s23 + $0x1b0] sm:$0xff] }
  0x75   : > { %8146 = vmatprep.mubr.msk.f32.mxu0 %vm699_vm0, %v663_v25  ;;  %v1680_v25 = vld [vmem:[%s9505_s28 + $0x178] sm:$0xff] }
  0x76   : > { %3698 = vperm.xlu1 %9153, %v9752_v57  }
  0x77   : > { %8235 = vmatmul.mubr.msk.f32.gmra.mrb[24].mxu1 %vm699_vm0, %v1654_v61  ;;  %v1681_v61 = vld [vmem:[%s9505_s28 + $0x180] sm:$0xff] }
  0x78   : > { %8237 = vmatprep.mubr.msk.f32.mxu1 %vm699_vm0, %v1655_v26  ;;  %8147 = vmatmul.mubr.msk.f32.gmra.mrb[28].mxu0 %vm699_vm0, %v664_v62  ;;  %v690_v26 = vld [vmem:[%s9400_s23 + $0x1b8] sm:$0xff]  ;;  %v9251_v62 = vmov 2  }
  0x79   : > { %8149 = vmatprep.mubr.msk.f32.mxu0 %vm699_vm0, %v665_v63  ;;  %9154 = vset.pattern.permute.xlu0 %v9251_v62  ;;  %v691_v63 = vld [vmem:[%s9400_s23 + $0x1c0] sm:$0xff] }
  0x7a   : > { %9155 = vset.pattern.permute.xlu1 %v9251_v62  ;;  %3746 = vperm.xlu0 %9154, %v9737_v52  }
  0x7b   : > { %8238 = vmatmul.mubr.msk.f32.gmra.mrb[26].mxu1 %vm699_vm0, %v1656_v0  ;;  %3750 = vperm.xlu1 %9155, %v9752_v57   ;;  %v1682_v0 = vld [vmem:[%s9505_s28 + $0x188] sm:$0xff] }
  0x7c   : > { %8240 = vmatprep.mubr.msk.f32.mxu1 %vm699_vm0, %v1657_v41  ;;  %8150 = vmatmul.mubr.msk.f32.gmra.mrb[30].mxu0 %vm699_vm0, %v666_v1  ;;  %v1683_v41 = vld [vmem:[%s9505_s28 + $0x190] sm:$0xff]  ;;  %v692_v1 = vld [vmem:[%s9400_s23 + $0x1c8] sm:$0xff] }
  0x7d   : > { %8152 = vmatprep.mubr.msk.f32.mxu0 %vm699_vm0, %v667_v17  ;;  %v693_v17 = vld [vmem:[%s9400_s23 + $0x1d0] sm:$0xff] }
  0x7f   : > { %8241 = vmatmul.mubr.msk.f32.gmra.mrb[28].mxu1 %vm699_vm0, %v1658_v2  ;;  %v9252_v2 = vmov 0  }
  0x80   : > { %8243 = vmatprep.mubr.msk.f32.mxu1 %vm699_vm0, %v1659_v5  ;;  %8153 = vmatmul.mubr.msk.f32.gmra.mrb[32].mxu0 %vm699_vm0, %v668_v6  ;;  %v3635_v5 = vld [vmem:[%s12027_s4 + $0x10] sm:$0xff]  ;;  %v1684_v6 = vld [vmem:[%s9505_s28 + $0x198] sm:$0xff] }
  0x81   : > { %8155 = vmatprep.mubr.msk.f32.mxu0 %vm699_vm0, %v669_v7  ;;  %9156 = vset.pattern.permute.xlu1 %v9252_v2  ;;  %v1685_v7 = vld [vmem:[%s9505_s28 + $0x1a0] sm:$0xff] }
  0x82   : > { %3653 = vperm.xlu1 %9156, %v3635_v5   ;;  %3754 = vperm.xlu0 %9154, %v3635_v5  }
  0x83   : > { %8244 = vmatmul.mubr.msk.f32.gmra.mrb[30].mxu1 %vm699_vm0, %v1660_v8  ;;  %v694_v8 = vld [vmem:[%s9400_s23 + $0x1d8] sm:$0xff]  ;;  %s11976_s23 = scalar_lea.hbm %s12037_s14, %s7675_s21 }
  0x84   : > { %8246 = vmatprep.mubr.msk.f32.mxu1 %vm699_vm0, %v1661_v9  ;;  %8156 = vmatmul.mubr.msk.f32.gmra.mrb[34].mxu0 %vm699_vm0, %v670_v21  ;;  %v2672_v9 = vld [vmem:[%s9783_s13] sm:$0xff]  ;;  %v1686_v21 = vld [vmem:[%s9505_s28 + $0x1a8] sm:$0xff] }
  0x85   : > { %8158 = vmatprep.mubr.msk.f32.mxu0 %vm699_vm0, %v671_v11  ;;  %v1687_v11 = vld [vmem:[%s9505_s28 + $0x1b0] sm:$0xff] }
  0x86   : > { %9157 = vset.pattern.permute.xlu1 %v9250_v24 }
  0x87   : > { %8247 = vmatmul.mubr.msk.f32.gmra.mrb[32].mxu1 %vm699_vm0, %v1662_v12  ;;  %v2673_v12 = vld [vmem:[%s9783_s13 + $0x8] sm:$0xff]  ;;  %3702 = vperm.xlu1 %9157, %v3635_v5   ;;  %v2700_v5 = vld [vmem:[%s9783_s13 + $0xe0] sm:$0xff] }
  0x88   : > { %8249 = vmatprep.mubr.msk.f32.mxu1 %vm699_vm0, %v1663_v13  ;;  %8159 = vmatmul.mubr.msk.f32.gmra.mrb[36].mxu0 %vm699_vm0, %v672_v42  ;;  %v2674_v13 = vld [vmem:[%s9783_s13 + $0x10] sm:$0xff]  ;;  %v1688_v42 = vld [vmem:[%s9505_s28 + $0x1b8] sm:$0xff] }
  0x89   : > { %8161 = vmatprep.mubr.msk.f32.mxu0 %vm699_vm0, %v673_v14  ;;  %v9813_v14 = vld [vmem:[%s12027_s4 + $0x18] sm:$0xff] }
  0x8b   : > { %8250 = vmatmul.mubr.msk.f32.gmra.mrb[34].mxu1 %vm699_vm0, %v1664_v15  ;;  %v1689_v15 = vld [vmem:[%s9505_s28 + $0x1c0] sm:$0xff]  ;;  %3706 = vperm.xlu1 %9157, %v9813_v14  }
  0x8c   : > { %8252 = vmatprep.mubr.msk.f32.mxu1 %vm699_vm0, %v1665_v16  ;;  %8162 = vmatmul.mubr.msk.f32.gmra.mrb[38].mxu0 %vm699_vm0, %v674_v18  ;;  %v2675_v16 = vld [vmem:[%s9783_s13 + $0x18] sm:$0xff]  ;;  %v2676_v18 = vld [vmem:[%s9783_s13 + $0x20] sm:$0xff] }
  0x8d   : > { %8164 = vmatprep.mubr.msk.f32.mxu0 %vm699_vm0, %v675_v19  ;;  %v1690_v19 = vld [vmem:[%s9505_s28 + $0x1c8] sm:$0xff] }
  0x8f   : > { %8253 = vmatmul.mubr.msk.f32.gmra.mrb[36].mxu1 %vm699_vm0, %v1666_v20  ;;  %v1691_v20 = vld [vmem:[%s9505_s28 + $0x1d0] sm:$0xff]  ;;  %9158 = vset.pattern.permute.xlu1 %v9251_v62 }
  0x90   : > { %8255 = vmatprep.mubr.msk.f32.mxu1 %vm699_vm0, %v1667_v22  ;;  %8165 = vmatmul.mubr.msk.f32.gmra.mrb[40].mxu0 %vm699_vm0, %v676_v27  ;;  %v2677_v22 = vld [vmem:[%s9783_s13 + $0x28] sm:$0xff]  ;;  %v2678_v27 = vld [vmem:[%s9783_s13 + $0x30] sm:$0xff] }
  0x91   : > { %8167 = vmatprep.mubr.msk.f32.mxu0 %vm699_vm0, %v677_v28  ;;  %v3638_v28 = vld [vmem:[%s12027_s4 + $0x28] sm:$0xff]  ;;  %3758 = vperm.xlu1 %9158, %v9813_v14  }
  0x92   : > { %3766 = vperm.xlu0 %9154, %v3638_v28  }
  0x93   : > { %8256 = vmatmul.mubr.msk.f32.gmra.mrb[38].mxu1 %vm699_vm0, %v1668_v30  ;;  %v1692_v30 = vld [vmem:[%s9505_s28 + $0x1d8] sm:$0xff] }
  0x94   : > { %8258 = vmatprep.mubr.msk.f32.mxu1 %vm699_vm0, %v1669_v31  ;;  %8168 = vmatmul.mubr.msk.f32.gmra.mrb[42].mxu0 %vm699_vm0, %v678_v34  ;;  %v1693_v31 = vld [vmem:[%s9505_s28 + $0x1e0] sm:$0xff]  ;;  %v2679_v34 = vld [vmem:[%s9783_s13 + $0x38] sm:$0xff] }
  0x95   : > { %8170 = vmatprep.mubr.msk.f32.mxu0 %vm699_vm0, %v679_v35  ;;  %v2680_v35 = vld [vmem:[%s9783_s13 + $0x40] sm:$0xff]  ;;  %9159 = vset.pattern.permute.xlu1 %v9252_v2 }
  0x96   : > { %9162 = vset.pattern.permute.xlu0 %v9250_v24 }
  0x97   : > { %8259 = vmatmul.mubr.msk.f32.gmra.mrb[40].mxu1 %vm699_vm0, %v1670_v36  ;;  %v3797_v36 = vld [vmem:[%s12028_s5] sm:$0xff] }
  0x98   : > { %8261 = vmatprep.mubr.msk.f32.mxu1 %vm699_vm0, %v1671_v37  ;;  %8171 = vmatmul.mubr.msk.f32.gmra.mrb[44].mxu0 %vm699_vm0, %v680_v38  ;;  %v3637_v37 = vld [vmem:[%s12027_s4 + $0x20] sm:$0xff]  ;;  %v1694_v38 = vld [vmem:[%s9505_s28 + $0x1e8] sm:$0xff] }
  0x99   : > { %8173 = vmatprep.mubr.msk.f32.mxu0 %vm699_vm0, %v681_v39  ;;  %v1695_v39 = vld [vmem:[%s9505_s28 + $0x1f0] sm:$0xff]  ;;  %3807 = vperm.xlu1 %9159, %v3797_v36   ;;  %v2716_v36 = vld [vmem:[%s9783_s13 + $0x160] sm:$0xff] }
  0x9a   : > { %3710 = vperm.xlu0 %9162, %v3637_v37  }
  0x9b   : > { %8262 = vmatmul.mubr.msk.f32.gmra.mrb[42].mxu1 %vm699_vm0, %v1672_v40  ;;  %v2681_v40 = vld [vmem:[%s9783_s13 + $0x48] sm:$0xff] }
  0x9c   : > { %8264 = vmatprep.mubr.msk.f32.mxu1 %vm699_vm0, %v1673_v32  ;;  %8174 = vmatmul.mubr.msk.f32.gmra.mrb[46].mxu0 %vm699_vm0, %v682_v43  ;;  %v2682_v32 = vld [vmem:[%s9783_s13 + $0x50] sm:$0xff]  ;;  %v1696_v43 = vld [vmem:[%s9505_s28 + $0x1f8] sm:$0xff]  ;;  %s527_s28 = sand.u32 1, %s9231_s16  }
  0x9d   : > { %8176 = vmatprep.mubr.msk.f32.mxu0 %vm699_vm0, %v683_v44  ;;  %v9864_v44 = vld [vmem:[%s12027_s4 + $0x38] sm:$0xff]  ;;  %3663 = vperm.xlu1 %9159, %v3637_v37   ;;  %s7015_s22 = scalar_lea.sflag [#allocation4], %s527_s28 }
  0x9e   : > { %3722 = vperm.xlu0 %9162, %v9864_v44  }
  0x9f   : > { %8265 = vmatmul.mubr.msk.f32.gmra.mrb[44].mxu1 %vm699_vm0, %v1674_v47  ;;  %v2683_v47 = vld [vmem:[%s9783_s13 + $0x58] sm:$0xff] }
  0xa0   : > { %8267 = vmatprep.mubr.msk.f32.mxu1 %vm699_vm0, %v1675_v48  ;;  %8177 = vmatmul.mubr.msk.f32.gmra.mrb[48].mxu0 %vm699_vm0, %v684_v49  ;;  %v2684_v48 = vld [vmem:[%s9783_s13 + $0x60] sm:$0xff]  ;;  %v2685_v49 = vld [vmem:[%s9783_s13 + $0x68] sm:$0xff] }
  0xa1   : > { %8179 = vmatprep.mubr.msk.f32.mxu0 %vm699_vm0, %v685_v50  ;;  %v2686_v50 = vld [vmem:[%s9783_s13 + $0x70] sm:$0xff]  ;;  %3668 = vperm.xlu1 %9159, %v3638_v28  }
  0xa2   : > { %9165 = vset.pattern.permute.xlu0 %v9252_v2 }
  0xa3   : > { %8268 = vmatmul.mubr.msk.f32.gmra.mrb[46].mxu1 %vm699_vm0, %v1676_v51  ;;  %3643 = vperm.xlu0 %9165, %v9737_v52   ;;  %v2687_v51 = vld [vmem:[%s9783_s13 + $0x78] sm:$0xff]  ;;  %v2689_v52 = vld [vmem:[%s9783_s13 + $0x88] sm:$0xff] }
  0xa4   : > { %8270 = vmatprep.mubr.msk.f32.mxu1 %vm699_vm0, %v1677_v53  ;;  %8180 = vmatmul.mubr.msk.f32.gmra.mrb[50].mxu0 %vm699_vm0, %v686_v54  ;;  %v2688_v53 = vld [vmem:[%s9783_s13 + $0x80] sm:$0xff]  ;;  %v2690_v54 = vld [vmem:[%s9783_s13 + $0x90] sm:$0xff] }
  0xa5   : > { %8182 = vmatprep.mubr.msk.f32.mxu0 %vm699_vm0, %v687_v55  ;;  %9160 = vset.pattern.permute.xlu1 %v9250_v24  ;;  %v2691_v55 = vld [vmem:[%s9783_s13 + $0x98] sm:$0xff] }
  0xa6   : > { %3714 = vperm.xlu1 %9160, %v3638_v28   ;;  %v3802_v28 = vld [vmem:[%s12028_s5 + $0x28] sm:$0xff] }
  0xa7   : > { %8271 = vmatmul.mubr.msk.f32.gmra.mrb[48].mxu1 %vm699_vm0, %v1678_v56  ;;  %3648 = vperm.xlu0 %9165, %v9752_v57   ;;  %v2692_v56 = vld [vmem:[%s9783_s13 + $0xa0] sm:$0xff]  ;;  %v2693_v57 = vld [vmem:[%s9783_s13 + $0xa8] sm:$0xff] }
  0xa8   : > { %8273 = vmatprep.mubr.msk.f32.mxu1 %vm699_vm0, %v1679_v58  ;;  %8183 = vmatmul.mubr.msk.f32.gmra.mrb[52].mxu0 %vm699_vm0, %v688_v59  ;;  %v3798_v58 = vld [vmem:[%s12028_s5 + $0x8] sm:$0xff]  ;;  %v2694_v59 = vld [vmem:[%s9783_s13 + $0xb0] sm:$0xff] }
  0xa9   : > { %8185 = vmatprep.mubr.msk.f32.mxu0 %vm699_vm0, %v689_v60  ;;  %v3799_v60 = vld [vmem:[%s12028_s5 + $0x10] sm:$0xff] }
  0xaa   : > { %9161 = vset.pattern.permute.xlu1 %v9251_v62 }
  0xab   : > { %8274 = vmatmul.mubr.msk.f32.gmra.mrb[50].mxu1 %vm699_vm0, %v1680_v25  ;;  %3658 = vperm.xlu0 %9165, %v9813_v14   ;;  %v2695_v25 = vld [vmem:[%s9783_s13 + $0xb8] sm:$0xff]  ;;  %v2706_v14 = vld [vmem:[%s9783_s13 + $0x110] sm:$0xff] }
  0xac   : > { %8276 = vmatprep.mubr.msk.f32.mxu1 %vm699_vm0, %v1681_v61  ;;  %8186 = vmatmul.mubr.msk.f32.gmra.mrb[54].mxu0 %vm699_vm0, %v690_v26  ;;  %v2696_v61 = vld [vmem:[%s9783_s13 + $0xc0] sm:$0xff] }
  0xad   : > { %8188 = vmatprep.mubr.msk.f32.mxu0 %vm699_vm0, %v691_v63  ;;  %3762 = vperm.xlu1 %9161, %v3637_v37   ;;  %v4070_v26 = vld [vmem:[%s12030_s7] sm:$0xff]  ;;  %v3800_v63 = vld [vmem:[%s12028_s5 + $0x18] sm:$0xff]  ;;  %v4147_v37 = vld [vmem:[%s12032_s9 + $0x28] sm:$0xff] }
  0xaf   : > { %8277 = vmatmul.mubr.msk.f32.gmra.mrb[52].mxu1 %vm699_vm0, %v1682_v0  ;;  %3812 = vperm.xlu0 %9165, %v3798_v58   ;;  %v2697_v0 = vld [vmem:[%s9783_s13 + $0xc8] sm:$0xff] }
  0xb0   : > { %8279 = vmatprep.mubr.msk.f32.mxu1 %vm699_vm0, %v1683_v41  ;;  %8189 = vmatmul.mubr.msk.f32.gmra.mrb[56].mxu0 %vm699_vm0, %v692_v1  ;;  %v2698_v41 = vld [vmem:[%s9783_s13 + $0xd0] sm:$0xff]  ;;  %v4071_v1 = vld [vmem:[%s12030_s7 + $0x8] sm:$0xff] }
  0xb1   : > { %8191 = vmatprep.mubr.msk.f32.mxu0 %vm699_vm0, %v693_v17  ;;  %9163 = vset.pattern.permute.xlu1 %v9252_v2  ;;  %v2699_v17 = vld [vmem:[%s9783_s13 + $0xd8] sm:$0xff]  ;;  %v4337_v58 = vld [vmem:[%s12034_s11 + $0x8] sm:$0xff] }
  0xb2   : > { %3817 = vperm.xlu1 %9163, %v3799_v60  }
  0xb3   : > { %8280 = vmatmul.mubr.msk.f32.gmra.mrb[54].mxu1 %vm699_vm0, %v1684_v6  ;;  %4080 = vperm.xlu0 %9165, %v4070_v26   ;;  %v3801_v6 = vld [vmem:[%s12028_s5 + $0x20] sm:$0xff] }
  0xb4   : > { %8282 = vmatprep.mubr.msk.f32.mxu1 %vm699_vm0, %v1685_v7  ;;  %8192 = vmatmul.mubr.msk.f32.gmra.mrb[58].mxu0 %vm699_vm0, %v694_v8  ;;  %v3639_v7 = vld [vmem:[%s12027_s4 + $0x30] sm:$0xff]  ;;  %v2701_v8 = vld [vmem:[%s9783_s13 + $0xe8] sm:$0xff] }
  0xb5   : > { %8304 = vmatprep.mubr.msk.f32.mxu0 %vm699_vm0, %v2672_v9  ;;  %v2702_v9 = vld [vmem:[%s9783_s13 + $0xf0] sm:$0xff] }
  0xb6   : > { %3822 = vperm.xlu1 %9163, %v3800_v63  }
  0xb7   : > { %8283 = vmatmul.mubr.msk.f32.gmra.mrb[56].mxu1 %vm699_vm0, %v1686_v21  ;;  %3678 = vperm.xlu0 %9165, %v9864_v44   ;;  %v4073_v21 = vld [vmem:[%s12030_s7 + $0x18] sm:$0xff] }
  0xb8   : > { %8285 = vmatprep.mubr.msk.f32.mxu1 %vm699_vm0, %v1687_v11  ;;  %8305 = vmatmul.mubr.msk.f32.vlgmr.msra.gmra.mrb[60].mxu0 %vm699_vm0, %v2673_v12  ;;  %v2703_v11 = vld [vmem:[%s9783_s13 + $0xf8] sm:$0xff]  ;;  %v2704_v12 = vld [vmem:[%s9783_s13 + $0x100] sm:$0xff] }
  0xb9   : > { %8307 = vmatprep.mubr.msk.f32.mxu0 %vm699_vm0, %v2674_v13  ;;  %v3804_v13 = vld [vmem:[%s12028_s5 + $0x38] sm:$0xff] }
  0xba   : > { %4085 = vperm.xlu1 %9163, %v4071_v1  }
  0xbb   : > { %8286 = vmatmul.mubr.msk.f32.gmra.mrb[58].mxu1 %vm699_vm0, %v1688_v42  ;;  %3827 = vperm.xlu0 %9165, %v3801_v6   ;;  %v2705_v42 = vld [vmem:[%s9783_s13 + $0x108] sm:$0xff] }
  0xbc   : > { %8288 = vmatprep.mubr.msk.f32.mxu1 %vm699_vm0, %v1689_v15  ;;  %8308 = vmatmul.mubr.msk.f32.gmra.mrb[62].mxu0 %vm699_vm0, %v2675_v16  ;;  %v4075_v15 = vld [vmem:[%s12030_s7 + $0x28] sm:$0xff]  ;;  %v2708_v16 = vld [vmem:[%s9783_s13 + $0x120] sm:$0xff] }
  0xbd   : > { %8310 = vmatprep.mubr.msk.f32.mxu0 %vm699_vm0, %v2676_v18  ;;  %v2710_v18 = vld [vmem:[%s9783_s13 + $0x130] sm:$0xff] }
  0xbe   : > { %3673 = vperm.xlu1 %9163, %v3639_v7  }
  0xbf   : > { %8289 = vmatmul.mubr.msk.f32.gmra.mrb[60].mxu1 %vm699_vm0, %v1690_v19  ;;  %4095 = vperm.xlu0 %9165, %v4073_v21   ;;  %v4077_v19 = vld [vmem:[%s12030_s7 + $0x38] sm:$0xff] }
  0xc0   : > { %8291 = vmatprep.mubr.msk.f32.mxu1 %vm699_vm0, %v1691_v20  ;;  %8311 = vmatmul.mubr.msk.f32.gmra.mrb[64].mxu0 %vm699_vm0, %v2677_v22  ;;  %v2711_v20 = vld [vmem:[%s9783_s13 + $0x138] sm:$0xff]  ;;  %v2712_v22 = vld [vmem:[%s9783_s13 + $0x140] sm:$0xff] }
  0xc1   : > { %8313 = vmatprep.mubr.msk.f32.mxu0 %vm699_vm0, %v2678_v27  ;;  %v4143_v27 = vld [vmem:[%s12032_s9 + $0x8] sm:$0xff]  ;;  %v4339_v21 = vld [vmem:[%s12034_s11 + $0x18] sm:$0xff] }
  0xc2   : > { %9164 = vset.pattern.permute.xlu1 %v9250_v24  ;;  %v2707_v24 = vld [vmem:[%s9783_s13 + $0x118] sm:$0xff] }
  0xc3   : > { %8292 = vmatmul.mubr.msk.f32.gmra.mrb[62].mxu1 %vm699_vm0, %v1692_v30  ;;  %3718 = vperm.xlu1 %9164, %v3639_v7   ;;  %v2713_v30 = vld [vmem:[%s9783_s13 + $0x148] sm:$0xff] }
  0xc4   : > { %8294 = vmatprep.mubr.msk.f32.mxu1 %vm699_vm0, %v1693_v31  ;;  %8314 = vmatmul.mubr.msk.f32.gmra.mrb[66].mxu0 %vm699_vm0, %v2679_v34  ;;  %v4145_v31 = vld [vmem:[%s12032_s9 + $0x18] sm:$0xff]  ;;  %v4072_v34 = vld [vmem:[%s12030_s7 + $0x10] sm:$0xff] }
  0xc5   : > { %8316 = vmatprep.mubr.msk.f32.mxu0 %vm699_vm0, %v2680_v35  ;;  %3842 = vperm.xlu0 %9165, %v3804_v13   ;;  %v2715_v35 = vld [vmem:[%s9783_s13 + $0x158] sm:$0xff] }
  0xc7   : > { %8295 = vmatmul.mubr.msk.f32.gmra.mrb[64].mxu1 %vm699_vm0, %v1694_v38  ;;  %9166 = vset.pattern.permute.xlu1 %v9251_v62  ;;  %v2709_v62 = vld [vmem:[%s9783_s13 + $0x128] sm:$0xff]  ;;  %v3803_v38 = vld [vmem:[%s12028_s5 + $0x30] sm:$0xff] }
  0xc8   : > { %8297 = vmatprep.mubr.msk.f32.mxu1 %vm699_vm0, %v1695_v39  ;;  %8317 = vmatmul.mubr.msk.f32.gmra.mrb[68].mxu0 %vm699_vm0, %v2681_v40  ;;  %v2717_v39 = vld [vmem:[%s9783_s13 + $0x168] sm:$0xff]  ;;  %v2718_v40 = vld [vmem:[%s9783_s13 + $0x170] sm:$0xff] }
  0xc9   : > { %8319 = vmatprep.mubr.msk.f32.mxu0 %vm699_vm0, %v2682_v32  ;;  %3770 = vperm.xlu1 %9166, %v3639_v7   ;;  %v2719_v32 = vld [vmem:[%s9783_s13 + $0x178] sm:$0xff] }
  0xca   : > { %4105 = vperm.xlu0 %9165, %v4075_v15  }
  0xcb   : > { %8298 = vmatmul.mubr.msk.f32.gmra.mrb[66].mxu1 %vm699_vm0, %v1696_v43  ;;  %v4149_v43 = vld [vmem:[%s12032_s9 + $0x38] sm:$0xff] }
  0xcc   : > { %8320 = vmatmul.mubr.msk.f32.gmra.mrb[70].mxu0 %vm699_vm0, %v2683_v47  ;;  %v2720_v47 = vld [vmem:[%s9783_s13 + $0x180] sm:$0xff] }
  0xcd   : > { %8322 = vmatprep.mubr.msk.f32.mxu0 %vm699_vm0, %v2684_v48  ;;  %3774 = vperm.xlu1 %9166, %v9864_v44   ;;  %v4074_v44 = vld [vmem:[%s12030_s7 + $0x20] sm:$0xff] }
  0xce   : > { %4115 = vperm.xlu0 %9165, %v4077_v19   ;;  %v2725_v19 = vld [vmem:[%s9783_s13 + $0x1a8] sm:$0xff] }
  0xd0   : > { %8323 = vmatmul.mubr.msk.f32.gmra.mrb[72].mxu0 %vm699_vm0, %v2685_v49 }
  0xd1   : > { %8325 = vmatprep.mubr.msk.f32.mxu0 %vm699_vm0, %v2686_v50  ;;  %9167 = vset.pattern.permute.xlu1 %v9252_v2  ;;  %v2714_v2 = vld [vmem:[%s9783_s13 + $0x150] sm:$0xff] }
  0xd2   : > { %4157 = vperm.xlu0 %9165, %v4143_v27   ;;  %3832 = vperm.xlu1 %9167, %v3802_v28  }
  0xd4   : > { %8326 = vmatmul.mubr.msk.f32.gmra.mrb[74].mxu0 %vm699_vm0, %v2687_v51 }
  0xd5   : > { %8328 = vmatprep.mubr.msk.f32.mxu0 %vm699_vm0, %v2688_v53 }
  0xd6   : > { %4167 = vperm.xlu0 %9165, %v4145_v31   ;;  %4090 = vperm.xlu1 %9167, %v4072_v34   ;;  %v7404_v31 = vld [vmem:[%s12030_s7 + $0x48] sm:$0xff]  ;;  %v4144_v34 = vld [vmem:[%s12032_s9 + $0x10] sm:$0xff] }
  0xd8   : > { %8329 = vmatmul.mubr.msk.f32.gmra.mrb[76].mxu0 %vm699_vm0, %v2689_v52 }
  0xd9   : > { %8331 = vmatprep.mubr.msk.f32.mxu0 %vm699_vm0, %v2690_v54 }
  0xda   : > { %4177 = vperm.xlu0 %9165, %v4147_v37   ;;  %3837 = vperm.xlu1 %9167, %v3803_v38  }
  0xdc   : > { %8332 = vmatmul.mubr.msk.f32.gmra.mrb[78].mxu0 %vm699_vm0, %v2691_v55 }
  0xdd   : > { %8334 = vmatprep.mubr.msk.f32.mxu0 %vm699_vm0, %v2692_v56  ;;  %v2721_v56 = vld [vmem:[%s9783_s13 + $0x188] sm:$0xff] }
  0xde   : > { %4187 = vperm.xlu0 %9165, %v4149_v43   ;;  %4100 = vperm.xlu1 %9167, %v4074_v44  }
  0xe0   : > { %8335 = vmatmul.mubr.msk.f32.gmra.mrb[80].mxu0 %vm699_vm0, %v2693_v57  ;;  %v2722_v57 = vld [vmem:[%s9783_s13 + $0x190] sm:$0xff] }
  0xe1   : > { %8337 = vmatprep.mubr.msk.f32.mxu0 %vm699_vm0, %v2694_v59  ;;  %v4076_v59 = vld [vmem:[%s12030_s7 + $0x30] sm:$0xff] }
  0xe2   : > { %4351 = vperm.xlu0 %9165, %v4337_v58   ;;  %4110 = vperm.xlu1 %9167, %v4076_v59  }
  0xe4   : > { %8338 = vmatmul.mubr.msk.f32.gmra.mrb[82].mxu0 %vm699_vm0, %v2695_v25 }
  0xe5   : > { %8340 = vmatprep.mubr.msk.f32.mxu0 %vm699_vm0, %v2696_v61 }
  0xe6   : > { %4361 = vperm.xlu0 %9165, %v4339_v21  }
  0xe8   : > { %8341 = vmatmul.mubr.msk.f32.gmra.mrb[84].mxu0 %vm699_vm0, %v2697_v0 }
  0xe9   : > { %8343 = vmatprep.mubr.msk.f32.mxu0 %vm699_vm0, %v2698_v41 }
  0xea   : > { %4683 = vperm.xlu0 %9165, %v7404_v31   ;;  %v2732_v31 = vld [vmem:[%s9783_s13 + $0x1e0] sm:$0xff] }
  0xec   : > { %8344 = vmatmul.mubr.msk.f32.gmra.mrb[86].mxu0 %vm699_vm0, %v2699_v17 }
  0xed   : > { %8346 = vmatprep.mubr.msk.f32.mxu0 %vm699_vm0, %v2700_v5 }
  0xf0   : > { %8347 = vmatmul.mubr.msk.f32.gmra.mrb[88].mxu0 %vm699_vm0, %v2701_v8  ;;  %v2723_v8 = vld [vmem:[%s9783_s13 + $0x198] sm:$0xff] }
  0xf1   : > { %8349 = vmatprep.mubr.msk.f32.mxu0 %vm699_vm0, %v2702_v9  ;;  %v2724_v9 = vld [vmem:[%s9783_s13 + $0x1a0] sm:$0xff] }
  0xf4   : > { %8350 = vmatmul.mubr.msk.f32.gmra.mrb[90].mxu0 %vm699_vm0, %v2703_v11  ;;  %v4142_v11 = vld [vmem:[%s12032_s9] sm:$0xff] }
  0xf5   : > { %8352 = vmatprep.mubr.msk.f32.mxu0 %vm699_vm0, %v2704_v12  ;;  %4152 = vperm.xlu1 %9167, %v4142_v11  }
  0xf8   : > { %8353 = vmatmul.mubr.msk.f32.gmra.mrb[92].mxu0 %vm699_vm0, %v2705_v42 }
  0xf9   : > { %8355 = vmatprep.mubr.msk.f32.mxu0 %vm699_vm0, %v2706_v14  ;;  %4162 = vperm.xlu1 %9167, %v4144_v34  }
  0xfc   : > { %8356 = vmatmul.mubr.msk.f32.gmra.mrb[94].mxu0 %vm699_vm0, %v2707_v24 }
  0xfd   : > { %8358 = vmatprep.mubr.msk.f32.mxu0 %vm699_vm0, %v2708_v16 }
 0x100   : > { %8359 = vmatmul.mubr.msk.f32.gmra.mrb[96].mxu0 %vm699_vm0, %v2709_v62 }
 0x101   : > { %8361 = vmatprep.mubr.msk.f32.mxu0 %vm699_vm0, %v2710_v18 }
 0x104   : > { %8362 = vmatmul.mubr.msk.f32.gmra.mrb[98].mxu0 %vm699_vm0, %v2711_v20 }
 0x105   : > { %8364 = vmatprep.mubr.msk.f32.mxu0 %vm699_vm0, %v2712_v22  ;;  %v2726_v22 = vld [vmem:[%s9783_s13 + $0x1b0] sm:$0xff] }
 0x108   : > { %8365 = vmatmul.mubr.msk.f32.gmra.mrb[100].mxu0 %vm699_vm0, %v2713_v30 }
 0x109   : > { %8367 = vmatprep.mubr.msk.f32.mxu0 %vm699_vm0, %v2714_v2 }
 0x10c   : > { %8368 = vmatmul.mubr.msk.f32.gmra.mrb[102].mxu0 %vm699_vm0, %v2715_v35 }
 0x10d   : > { %8370 = vmatprep.mubr.msk.f32.mxu0 %vm699_vm0, %v2716_v36 }
 0x110   : > { %8371 = vmatmul.mubr.msk.f32.gmra.mrb[104].mxu0 %vm699_vm0, %v2717_v39  ;;  %v2727_v39 = vld [vmem:[%s9783_s13 + $0x1b8] sm:$0xff] }
 0x111   : > { %8373 = vmatprep.mubr.msk.f32.mxu0 %vm699_vm0, %v2718_v40 }
 0x113   : > { %v8106_v48 = vpop.f32.mrb[0].mxu0  ;;  %v8196_v49 = vpop.f32.mrb[0].mxu1 }
 0x114   : > { %v1278_v50 = vmul.f32 %v8106_v48, %v9477_v4  ;;  %v958_v51 = vpop.f32.mrb[1].mxu0  ;;  %8374 = vmatmul.mubr.msk.f32.gmra.mrb[106].mxu0 %vm699_vm0, %v2719_v32  ;;  %v1338_v53 = vmul.f32 %v8196_v49, %v9477_v4  ;;  %v1258_v52 = vpop.f32.mrb[1].mxu1 }
 0x115   : > { %v1277_v54 = vmul.f32 %v958_v51, %v9475_v3  ;;  %8376 = vmatprep.mubr.msk.f32.mxu0 %vm699_vm0, %v2720_v47  ;;  %v1337_v55 = vmul.f32 %v1258_v52, %v9475_v3  ;;  %v2728_v47 = vld [vmem:[%s9783_s13 + $0x1c0] sm:$0xff] }
 0x117   : > { %v1341_v60 = vadd.f32 %v1278_v50, %v1277_v54  ;;  %v8109_v25 = vpop.f32.mrb[2].mxu0  ;;  %v1551_v61 = vadd.f32 %v1338_v53, %v1337_v55  ;;  %v8199_v26 = vpop.f32.mrb[2].mxu1 }
 0x118   : > { %v1280_v63 = vmul.f32 %v8109_v25, %v9477_v4  ;;  %v968_v0 = vpop.f32.mrb[3].mxu0  ;;  %8377 = vmatmul.mubr.msk.f32.gmra.mrb[108].mxu0 %vm699_vm0, %v2721_v56  ;;  %v1340_v41 = vmul.f32 %v8199_v26, %v9477_v4  ;;  %v1268_v1 = vpop.f32.mrb[3].mxu1  ;;  %v4341_v25 = vld [vmem:[%s12034_s11 + $0x28] sm:$0xff] }
 0x119   : > { %v1342_v17 = vrot.slane %v1341_v60, 4  ;;  %v1279_v5 = vmul.f32 %v968_v0, %v9475_v3  ;;  %v1552_v6 = vrot.slane %v1551_v61, 4  ;;  %v1339_v7 = vmul.f32 %v1268_v1, %v9475_v3  ;;  %8379 = vmatprep.mubr.msk.f32.mxu0 %vm699_vm0, %v2722_v57  ;;  %4371 = vperm.xlu0 %9165, %v4341_v25  }
 0x11b   : > { %v1343_v12 = vadd.f32 %v1342_v17, %v1341_v60  ;;  %v1348_v13 = vadd.f32 %v1280_v63, %v1279_v5  ;;  %v1553_v42 = vadd.f32 %v1552_v6, %v1551_v61  ;;  %v1558_v14 = vadd.f32 %v1340_v41, %v1339_v7  ;;  %v8112_v24 = vpop.f32.mrb[4].mxu0  ;;  %v2729_v60 = vld [vmem:[%s9783_s13 + $0x1c8] sm:$0xff]  ;;  %v4146_v61 = vld [vmem:[%s12032_s9 + $0x20] sm:$0xff]  ;;  %v2730_v17 = vld [vmem:[%s9783_s13 + $0x1d0] sm:$0xff] }
 0x11c   : > { %v1282_v15 = vmul.f32 %v8112_v24, %v9477_v4  ;;  %v978_v16 = vpop.f32.mrb[5].mxu0  ;;  %8380 = vmatmul.mubr.msk.f32.gmra.mrb[110].mxu0 %vm699_vm0, %v2723_v8  ;;  %4172 = vperm.xlu1 %9167, %v4146_v61  }
 0x11d   : > { %v1344_v62 = vrot.slane %v1343_v12, 2  ;;  %v1349_v18 = vrot.slane %v1348_v13, 4  ;;  %8382 = vmatprep.mubr.msk.f32.mxu0 %vm699_vm0, %v2724_v9  ;;  %v1281_v20 = vmul.f32 %v978_v16, %v9475_v3  ;;  %v1554_v28 = vrot.slane %v1553_v42, 2 }
 0x11e   : > { %v1559_v30 = vrot.slane %v1558_v14, 4 }
 0x11f   : > { %v1350_v27 = vadd.f32 %v1349_v18, %v1348_v13  ;;  %v8115_v2 = vpop.f32.mrb[6].mxu0  ;;  %v1355_v35 = vadd.f32 %v1282_v15, %v1281_v20  ;;  %v1345_v38 = vadd.f32 %v1344_v62, %v1343_v12  ;;  %v1555_v48 = vadd.f32 %v1554_v28, %v1553_v42  ;;  %v2731_v18 = vld [vmem:[%s9783_s13 + $0x1d8] sm:$0xff]  ;;  %v4148_v20 = vld [vmem:[%s12032_s9 + $0x30] sm:$0xff] }
 0x120   : > { %v1284_v36 = vmul.f32 %v8115_v2, %v9477_v4  ;;  %v988_v37 = vpop.f32.mrb[7].mxu0  ;;  %8383 = vmatmul.mubr.msk.f32.gmra.mrb[112].mxu0 %vm699_vm0, %v2725_v19  ;;  %v1560_v49 = vadd.f32 %v1559_v30, %v1558_v14  ;;  %v7406_v19 = vld [vmem:[%s12030_s7 + $0x58] sm:$0xff]  ;;  %4182 = vperm.xlu1 %9167, %v4148_v20  }
 0x121   : > { %8385 = vmatprep.mubr.msk.f32.mxu0 %vm699_vm0, %v2726_v22  ;;  %v1351_v40 = vrot.slane %v1350_v27, 2  ;;  %v1356_v43 = vrot.slane %v1355_v35, 4  ;;  %v1283_v44 = vmul.f32 %v988_v37, %v9475_v3  ;;  %v1346_v57 = vrot.slane %v1345_v38, 1  ;;  %4693 = vperm.xlu0 %9165, %v7406_v19  }
 0x122   : > { %v8206_v32 = vpop.f32.mrb[4].mxu1  ;;  %v1556_v5 = vrot.slane %v1555_v48, 1  ;;  %v1561_v6 = vrot.slane %v1560_v49, 2 }
 0x123   : > { %v1955_v50 = vpop.f32.mrb[5].mxu1  ;;  %v8118_v51 = vpop.f32.mrb[8].mxu0  ;;  %v2275_v53 = vmul.f32 %v8206_v32, %v9509_v33  ;;  %v1357_v52 = vadd.f32 %v1356_v43, %v1355_v35  ;;  %v1362_v55 = vadd.f32 %v1284_v36, %v1283_v44  ;;  %v1352_v26 = vadd.f32 %v1351_v40, %v1350_v27 }
 0x124   : > { %v2274_v54 = vmul.f32 %v1955_v50, %v9507_v29  ;;  %v998_v56 = vpop.f32.mrb[9].mxu0  ;;  %8386 = vmatmul.mubr.msk.f32.gmra.mrb[114].mxu0 %vm699_vm0, %v2727_v39  ;;  %v1286_v58 = vmul.f32 %v8118_v51, %v9477_v4  ;;  %v10075_v24 = vadd.f32 %v1346_v57, %v1345_v38  ;;  %v10088_v34 = vadd.f32 %v1556_v5, %v1555_v48 }
 0x125   : > { %v1285_v59 = vmul.f32 %v998_v56, %v9475_v3  ;;  %8388 = vmatprep.mubr.msk.f32.mxu0 %vm699_vm0, %v2728_v47  ;;  %v1358_v63 = vrot.slane %v1357_v52, 2  ;;  %v1363_v1 = vrot.slane %v1362_v55, 4  ;;  %v1353_v22 = vrot.slane %v1352_v26, 1 }
 0x126   : > { %v2338_v0 = vadd.f32 %v2275_v53, %v2274_v54  ;;  %v8209_v41 = vpop.f32.mrb[6].mxu1  ;;  %v10091_v40 = vadd.f32 %v1561_v6, %v1560_v49 }
 0x127   : > { %v2277_v7 = vmul.f32 %v8209_v41, %v9509_v33  ;;  %v1965_v8 = vpop.f32.mrb[7].mxu1  ;;  %v1369_v9 = vadd.f32 %v1286_v58, %v1285_v59  ;;  %v8121_v21 = vpop.f32.mrb[10].mxu0  ;;  %v1359_v11 = vadd.f32 %v1358_v63, %v1357_v52  ;;  %v1364_v13 = vadd.f32 %v1363_v1, %v1362_v55  ;;  %v2733_v52 = vld [vmem:[%s9783_s13 + $0x1e8] sm:$0xff]  ;;  %v2734_v58 = vld [vmem:[%s9783_s13 + $0x1f0] sm:$0xff]  ;;  %v4343_v59 = vld [vmem:[%s12034_s11 + $0x38] sm:$0xff] }
 0x128   : > { %v2339_v12 = vrot.slane %v2338_v0, 4  ;;  %v2276_v42 = vmul.f32 %v1965_v8, %v9507_v29  ;;  %v1008_v14 = vpop.f32.mrb[11].mxu0  ;;  %8389 = vmatmul.mubr.msk.f32.gmra.mrb[116].mxu0 %vm699_vm0, %v2729_v60  ;;  %v1288_v16 = vmul.f32 %v8121_v21, %v9477_v4  ;;  %v10098_v54 = vadd.f32 %v1353_v22, %v1352_v26  ;;  %v4336_v60 = vld [vmem:[%s12034_s11] sm:$0xff]  ;;  %4381 = vperm.xlu0 %9165, %v4343_v59  }
 0x129   : > { %v1370_v15 = vrot.slane %v1369_v9, 4  ;;  %v1287_v62 = vmul.f32 %v1008_v14, %v9475_v3  ;;  %8391 = vmatprep.mubr.msk.f32.mxu0 %vm699_vm0, %v2730_v17  ;;  %v1365_v28 = vrot.slane %v1364_v13, 2  ;;  %v1360_v32 = vrot.slane %v1359_v11, 1  ;;  %4346 = vperm.xlu1 %9167, %v4336_v60  }
 0x12a   : > { %v2340_v27 = vadd.f32 %v2339_v12, %v2338_v0  ;;  %v2345_v30 = vadd.f32 %v2277_v7, %v2276_v42  ;;  %v8212_v2 = vpop.f32.mrb[8].mxu1 }
 0x12b   : > { %v2279_v35 = vmul.f32 %v8212_v2, %v9509_v33  ;;  %v1371_v36 = vadd.f32 %v1370_v15, %v1369_v9  ;;  %v1975_v37 = vpop.f32.mrb[9].mxu1  ;;  %v1376_v38 = vadd.f32 %v1288_v16, %v1287_v62  ;;  %v8124_v39 = vpop.f32.mrb[12].mxu0  ;;  %v1366_v50 = vadd.f32 %v1365_v28, %v1364_v13  ;;  %v2735_v13 = vld [vmem:[%s9783_s13 + $0x1f8] sm:$0xff]  ;;  %v7408_v28 = vld [vmem:[%s12030_s7 + $0x68] sm:$0xff]  ;;  %s528_s13 = scalar_lea.vmem [#allocation3], %s527_s28 }
 0x12c   : > { %v2341_v43 = vrot.slane %v2340_v27, 2  ;;  %v2346_v44 = vrot.slane %v2345_v30, 4  ;;  %v1018_v47 = vpop.f32.mrb[13].mxu0  ;;  %8392 = vmatmul.mubr.msk.f32.gmra.mrb[118].mxu0 %vm699_vm0, %v2731_v18  ;;  %v2278_v48 = vmul.f32 %v1975_v37, %v9507_v29  ;;  %v1290_v53 = vmul.f32 %v8124_v39, %v9477_v4  ;;  %4703 = vperm.xlu0 %9165, %v7408_v28  }
 0x12d   : > { %v1377_v51 = vrot.slane %v1376_v38, 4  ;;  %8394 = vmatprep.mubr.msk.f32.mxu0 %vm699_vm0, %v2732_v31  ;;  %v1289_v57 = vmul.f32 %v1018_v47, %v9475_v3  ;;  %v1372_v25 = vrot.slane %v1371_v36, 2  ;;  %v10109_v1 = vadd.f32 %v1360_v32, %v1359_v11 }
 0x12e   : > { %v2342_v49 = vadd.f32 %v2341_v43, %v2340_v27  ;;  %v2347_v55 = vadd.f32 %v2346_v44, %v2345_v30  ;;  %v8215_v56 = vpop.f32.mrb[10].mxu1  ;;  %v2352_v61 = vadd.f32 %v2279_v35, %v2278_v48  ;;  %v1367_v8 = vrot.slane %v1366_v50, 1  ;;  %v4338_v30 = vld [vmem:[%s12034_s11 + $0x10] sm:$0xff] }
 0x12f   : > { %v2281_v63 = vmul.f32 %v8215_v56, %v9509_v33  ;;  %v1378_v26 = vadd.f32 %v1377_v51, %v1376_v38  ;;  %v1985_v0 = vpop.f32.mrb[11].mxu1  ;;  %v8127_v41 = vpop.f32.mrb[14].mxu0  ;;  %v1383_v12 = vadd.f32 %v1290_v53, %v1289_v57  ;;  %v1373_v62 = vadd.f32 %v1372_v25, %v1371_v36  ;;  %4356 = vperm.xlu1 %9167, %v4338_v30  }
 0x130   : > { %v2343_v17 = vrot.slane %v2342_v49, 1  ;;  %v2348_v5 = vrot.slane %v2347_v55, 2  ;;  %v2280_v6 = vmul.f32 %v1985_v0, %v9507_v29  ;;  %v1028_v7 = vpop.f32.mrb[15].mxu0  ;;  %8395 = vmatmul.mubr.msk.f32.gmra.mrb[120].mxu0 %vm699_vm0, %v2733_v52  ;;  %v2353_v9 = vrot.slane %v2352_v61, 4 }
 0x131   : > { %v1379_v21 = vrot.slane %v1378_v26, 2  ;;  %8397 = vmatprep.mubr.msk.f32.mxu0 %vm699_vm0, %v2734_v58  ;;  %v1292_v16 = vmul.f32 %v8127_v41, %v9477_v4  ;;  %v1384_v36 = vrot.slane %v1383_v12, 4  ;;  %v10129_v38 = vadd.f32 %v1367_v8, %v1366_v50 }
 0x132   : > { %v2344_v42 = vadd.f32 %v2343_v17, %v2342_v49  ;;  %v2349_v14 = vadd.f32 %v2348_v5, %v2347_v55  ;;  %v2359_v15 = vadd.f32 %v2281_v63, %v2280_v6  ;;  %v8218_v11 = vpop.f32.mrb[12].mxu1  ;;  %v2354_v18 = vadd.f32 %v2353_v9, %v2352_v61  ;;  %v7410_v61 = vld [vmem:[%s12030_s7 + $0x78] sm:$0xff]  ;;  %v7403_v63 = vld [vmem:[%s12030_s7 + $0x40] sm:$0xff] }
 0x133   : > { %v10116_v19 = vadd.f32 %v1379_v21, %v1378_v26  ;;  %v2283_v20 = vmul.f32 %v8218_v11, %v9509_v33  ;;  %v1995_v22 = vpop.f32.mrb[13].mxu1  ;;  %v8130_v27 = vpop.f32.mrb[16].mxu0  ;;  %v1291_v43 = vmul.f32 %v1028_v7, %v9475_v3  ;;  %v1385_v48 = vadd.f32 %v1384_v36, %v1383_v12  ;;  %4713 = vperm.xlu0 %9165, %v7410_v61  }
 0x134   : > { %v10126_v2 = vadd.f32 %v2344_v42, %v10075_v24  ;;  %v2350_v31 = vrot.slane %v2349_v14, 1  ;;  %v2360_v35 = vrot.slane %v2359_v15, 4  ;;  %v1038_v37 = vpop.f32.mrb[17].mxu0  ;;  %8398 = vmatmul.mubr.msk.f32.gmra.mrb[122].mxu0 %vm699_vm0, %v2735_v13  ;;  %v2355_v39 = vrot.slane %v2354_v18, 2  ;;  %4678 = vperm.xlu1 %9167, %v7403_v63  }
 0x135   : > { %v2282_v32 = vmul.f32 %v1995_v22, %v9507_v29  ;;  %v1294_v51 = vmul.f32 %v8130_v27, %v9477_v4  ;;  %v1374_v53 = vrot.slane %v1373_v62, 1  ;;  %v1381_v58 = vrot.slane %v10116_v19, 1  ;;  %v7420_v22 = vld [vmem:[%s12032_s9 + $0x48] sm:$0xff]  ;;  %v4340_v27 = vld [vmem:[%s12034_s11 + $0x20] sm:$0xff] }
 0x136   : > { %v2351_v44 = vadd.f32 %v2350_v31, %v2349_v14  ;;  %v2361_v47 = vadd.f32 %v2360_v35, %v2359_v15  ;;  %v8221_v24 = vpop.f32.mrb[14].mxu1  ;;  %v2356_v52 = vadd.f32 %v2355_v39, %v2354_v18  ;;  %v1390_v60 = vadd.f32 %v1292_v16, %v1291_v43 }
 0x137   : > { %v2366_v49 = vadd.f32 %v2283_v20, %v2282_v32  ;;  %v2285_v55 = vmul.f32 %v8221_v24, %v9509_v33  ;;  %v2005_v56 = vpop.f32.mrb[15].mxu1  ;;  %v8133_v50 = vpop.f32.mrb[18].mxu0  ;;  %v1386_v5 = vrot.slane %v1385_v48, 2  ;;  %v1375_v15 = vadd.f32 %v1374_v53, %v1373_v62  ;;  %4757 = vperm.xlu0 %9165, %v7420_v22  }
 0x138   : > { %v10136_v57 = vadd.f32 %v2351_v44, %v10098_v54  ;;  %v2362_v59 = vrot.slane %v2361_v47, 2  ;;  %v1048_v25 = vpop.f32.mrb[19].mxu0  ;;  %v2357_v26 = vrot.slane %v2356_v52, 1  ;;  %v2284_v41 = vmul.f32 %v2005_v56, %v9507_v29  ;;  %4366 = vperm.xlu1 %9167, %v4340_v27   ;;  %v10167_v56 = vpop.permute.xlu1 %3694 }
 0x139   : > { %v2367_v0 = vrot.slane %v2366_v49, 4  ;;  %v1293_v54 = vmul.f32 %v1038_v37, %v9475_v3  ;;  %v1391_v6 = vrot.slane %v1390_v60, 4  ;;  %v1296_v8 = vmul.f32 %v8133_v50, %v9477_v4  ;;  %12054 = vst [vmem:[#allocation10_spill] sm:$0xff] %v10167_v56  ;;  %v7405_v50 = vld [vmem:[%s12030_s7 + $0x50] sm:$0xff] }
 0x13a   : > { %v2363_v17 = vadd.f32 %v2362_v59, %v2361_v47  ;;  %v8224_v7 = vpop.f32.mrb[16].mxu1  ;;  %v2358_v9 = vadd.f32 %v2357_v26, %v2356_v52  ;;  %v2373_v12 = vadd.f32 %v2285_v55, %v2284_v41  ;;  %v10160_v62 = vadd.f32 %v1381_v58, %v10116_v19 }
 0x13b   : > { %v2368_v21 = vadd.f32 %v2367_v0, %v2366_v49  ;;  %v2287_v13 = vmul.f32 %v8224_v7, %v9509_v33  ;;  %v2015_v42 = vpop.f32.mrb[17].mxu1  ;;  %v8136_v14 = vpop.f32.mrb[20].mxu0  ;;  %v1392_v16 = vadd.f32 %v1391_v6, %v1390_v60  ;;  %v1397_v18 = vadd.f32 %v1294_v51, %v1293_v54 }
 0x13c   : > { %v2364_v11 = vrot.slane %v2363_v17, 1  ;;  %v1058_v20 = vpop.f32.mrb[21].mxu0  ;;  %v10156_v28 = vadd.f32 %v2358_v9, %v10109_v1  ;;  %v2374_v31 = vrot.slane %v2373_v12, 4  ;;  %v2286_v35 = vmul.f32 %v2015_v42, %v9507_v29  ;;  %4688 = vperm.xlu1 %9167, %v7405_v50  }
 0x13d   : > { %v2369_v30 = vrot.slane %v2368_v21, 2  ;;  %v1387_v37 = vadd.f32 %v1386_v5, %v1385_v48  ;;  %v1398_v39 = vrot.slane %v1397_v18, 4  ;;  %v1393_v52 = vrot.slane %v1392_v16, 2  ;;  %v7422_v48 = vld [vmem:[%s12032_s9 + $0x58] sm:$0xff] }
 0x13e   : > { %v2365_v36 = vadd.f32 %v2364_v11, %v2363_v17  ;;  %v8227_v32 = vpop.f32.mrb[18].mxu1  ;;  %v2375_v44 = vadd.f32 %v2374_v31, %v2373_v12  ;;  %v2380_v47 = vadd.f32 %v2287_v13, %v2286_v35  ;;  %v1295_v55 = vmul.f32 %v1048_v25, %v9475_v3  ;;  %4767 = vperm.xlu0 %9165, %v7422_v48   ;;  %v7407_v48 = vld [vmem:[%s12030_s7 + $0x60] sm:$0xff] }
 0x13f   : > { %v2370_v43 = vadd.f32 %v2369_v30, %v2368_v21  ;;  %v2289_v24 = vmul.f32 %v8227_v32, %v9509_v33  ;;  %v2025_v1 = vpop.f32.mrb[19].mxu1  ;;  %v8139_v51 = vpop.f32.mrb[22].mxu0  ;;  %v1399_v49 = vadd.f32 %v1398_v39, %v1397_v18  ;;  %v1388_v61 = vrot.slane %v1387_v37, 1 }
 0x140   : > { %v10164_v53 = vadd.f32 %v2365_v36, %v10129_v38  ;;  %v1068_v19 = vpop.f32.mrb[23].mxu0  ;;  %v2376_v59 = vrot.slane %v2375_v44, 2  ;;  %v2381_v60 = vrot.slane %v2380_v47, 4  ;;  %v2288_v38 = vmul.f32 %v2025_v1, %v9507_v29  ;;  %v10190_v39 = vpop.permute.xlu1 %3698 }
 0x141   : > { %v2371_v58 = vrot.slane %v2370_v43, 1  ;;  %v1400_v25 = vrot.slane %v1399_v49, 2  ;;  %v1404_v63 = vadd.f32 %v1296_v8, %v1295_v55  ;;  %v1298_v26 = vmul.f32 %v8136_v14, %v9477_v4  ;;  %v7424_v8 = vld [vmem:[%s12032_s9 + $0x68] sm:$0xff]  ;;  %v4342_v14 = vld [vmem:[%s12034_s11 + $0x30] sm:$0xff]  ;;  %12056 = vst [vmem:[#allocation12_spill] sm:$0xff] %v10190_v39 }
 0x142   : > { %v8230_v0 = vpop.f32.mrb[20].mxu1  ;;  %v2377_v54 = vadd.f32 %v2376_v59, %v2375_v44  ;;  %v2382_v17 = vadd.f32 %v2381_v60, %v2380_v47  ;;  %v2387_v5 = vadd.f32 %v2289_v24, %v2288_v38  ;;  %v1394_v9 = vadd.f32 %v1393_v52, %v1392_v16  ;;  %4777 = vperm.xlu0 %9165, %v7424_v8  }
 0x143   : > { %v2372_v41 = vadd.f32 %v2371_v58, %v2370_v43  ;;  %v2035_v6 = vpop.f32.mrb[21].mxu1  ;;  %v8142_v7 = vpop.f32.mrb[24].mxu0  ;;  %v1401_v21 = vadd.f32 %v1400_v25, %v1399_v49  ;;  %v1405_v12 = vrot.slane %v1404_v63, 4  ;;  %v2291_v13 = vmul.f32 %v8230_v0, %v9509_v33  ;;  %4376 = vperm.xlu1 %9167, %v4342_v14  }
 0x144   : > { %v10178_v42 = vpop.f32.mrb[25].mxu0  ;;  %v2378_v18 = vrot.slane %v2377_v54, 1  ;;  %v2383_v22 = vrot.slane %v2382_v17, 2  ;;  %v2388_v27 = vrot.slane %v2387_v5, 4  ;;  %v1389_v16 = vadd.f32 %v1388_v61, %v1387_v37  ;;  %v10212_v14 = vpop.permute.xlu1 %3750 }
 0x145   : > { %v10186_v11 = vadd.f32 %v2372_v41, %v1375_v15  ;;  %v1406_v30 = vadd.f32 %v1405_v12, %v1404_v63  ;;  %v1297_v31 = vmul.f32 %v1058_v20, %v9475_v3  ;;  %v2290_v35 = vmul.f32 %v2035_v6, %v9507_v29  ;;  %v7426_v20 = vld [vmem:[%s12032_s9 + $0x78] sm:$0xff]  ;;  %12058 = vst [vmem:[#allocation14_spill] sm:$0xff] %v10212_v14 }
 0x146   : > { %v8233_v36 = vpop.f32.mrb[22].mxu1  ;;  %v2379_v32 = vadd.f32 %v2378_v18, %v2377_v54  ;;  %v2384_v43 = vadd.f32 %v2383_v22, %v2382_v17  ;;  %v2389_v44 = vadd.f32 %v2388_v27, %v2387_v5  ;;  %v1300_v15 = vmul.f32 %v8139_v51, %v9477_v4  ;;  %4787 = vperm.xlu0 %9165, %v7426_v20   ;;  %v7409_v18 = vld [vmem:[%s12030_s7 + $0x70] sm:$0xff] }
 0x147   : > { %12055 = vst [vmem:[#allocation11_spill] sm:$0xff] %v10186_v11  ;;  %v2045_v47 = vpop.f32.mrb[23].mxu1  ;;  %v8145_v24 = vpop.f32.mrb[26].mxu0  ;;  %v1395_v1 = vrot.slane %v1394_v9, 1  ;;  %v1402_v52 = vrot.slane %v1401_v21, 1  ;;  %v1411_v49 = vadd.f32 %v1298_v26, %v1297_v31  ;;  %v2394_v55 = vadd.f32 %v2291_v13, %v2290_v35  ;;  %4698 = vperm.xlu1 %9167, %v7407_v48  }
 0x148   : > { %v10193_v37 = vpop.f32.mrb[27].mxu0  ;;  %v10202_v50 = vadd.f32 %v2379_v32, %v10160_v62  ;;  %v2385_v51 = vrot.slane %v2384_v43, 1  ;;  %v2390_v58 = vrot.slane %v2389_v44, 2  ;;  %v2293_v59 = vmul.f32 %v8233_v36, %v9509_v33 }
 0x149   : > { %v1407_v60 = vrot.slane %v1406_v30, 2  ;;  %v1412_v38 = vrot.slane %v1411_v49, 4  ;;  %v2395_v61 = vrot.slane %v2394_v55, 4  ;;  %v1299_v25 = vmul.f32 %v1068_v19, %v9475_v3  ;;  %v7444_v19 = vld [vmem:[%s12034_s11 + $0x48] sm:$0xff] }
 0x14a   : > { %12057 = vst [vmem:[#allocation13_spill] sm:$0xff] %v10202_v50  ;;  %v8236_v63 = vpop.f32.mrb[24].mxu1  ;;  %v2386_v26 = vadd.f32 %v2385_v51, %v2384_v43  ;;  %v2391_v0 = vadd.f32 %v2390_v58, %v2389_v44  ;;  %v2292_v41 = vmul.f32 %v2045_v47, %v9507_v29  ;;  %v1302_v54 = vmul.f32 %v8142_v7, %v9477_v4 }
 0x14b   : > { %v2055_v62 = vpop.f32.mrb[25].mxu1  ;;  %v10208_v17 = vpop.f32.mrb[28].mxu0  ;;  %v1396_v5 = vadd.f32 %v1395_v1, %v1394_v9  ;;  %v1413_v6 = vadd.f32 %v1412_v38, %v1411_v49  ;;  %v2396_v12 = vadd.f32 %v2395_v61, %v2394_v55  ;;  %v1418_v13 = vadd.f32 %v1300_v15, %v1299_v25  ;;  %4952 = vperm.xlu0 %9165, %v7444_v19  }
 0x14c   : > { %v10210_v8 = vpop.f32.mrb[29].mxu0  ;;  %v10220_v7 = vadd.f32 %v2386_v26, %v1389_v16  ;;  %v2392_v22 = vrot.slane %v2391_v0, 1  ;;  %v2401_v27 = vadd.f32 %v2293_v59, %v2292_v41  ;;  %v2295_v9 = vmul.f32 %v8236_v63, %v9509_v33  ;;  %4708 = vperm.xlu1 %9167, %v7409_v18   ;;  %v10240_v26 = vpop.permute.xlu1 %3653 }
 0x14d   : > { %v1403_v31 = vadd.f32 %v1402_v52, %v1401_v21  ;;  %v1408_v35 = vadd.f32 %v1407_v60, %v1406_v30  ;;  %v2397_v36 = vrot.slane %v2396_v12, 2  ;;  %v1419_v32 = vrot.slane %v1418_v13, 4  ;;  %v7446_v30 = vld [vmem:[%s12034_s11 + $0x58] sm:$0xff]  ;;  %12061 = vst [vmem:[#allocation17_spill] sm:$0xff] %v10240_v26 }
 0x14e   : > { %12059 = vst [vmem:[#allocation15_spill] sm:$0xff] %v10220_v7  ;;  %v8239_v43 = vpop.f32.mrb[26].mxu1  ;;  %v2393_v44 = vadd.f32 %v2392_v22, %v2391_v0  ;;  %v2402_v15 = vrot.slane %v2401_v27, 4  ;;  %v1301_v47 = vmul.f32 %v10178_v42, %v9475_v3  ;;  %v2294_v1 = vmul.f32 %v2055_v62, %v9507_v29  ;;  %v7419_v42 = vld [vmem:[%s12032_s9 + $0x40] sm:$0xff] }
 0x14f   : > { %v2065_v16 = vpop.f32.mrb[27].mxu1  ;;  %v10226_v49 = vpop.f32.mrb[30].mxu0  ;;  %v1414_v55 = vrot.slane %v1413_v6, 2  ;;  %v2398_v20 = vadd.f32 %v2397_v36, %v2396_v12  ;;  %v1420_v48 = vadd.f32 %v1419_v32, %v1418_v13  ;;  %v1304_v51 = vmul.f32 %v8145_v24, %v9477_v4  ;;  %4962 = vperm.xlu0 %9165, %v7446_v30   ;;  %v7421_v36 = vld [vmem:[%s12032_s9 + $0x50] sm:$0xff] }
 0x150   : > { %v10229_v21 = vpop.f32.mrb[31].mxu0  ;;  %v10237_v52 = vadd.f32 %v2393_v44, %v1396_v5  ;;  %v2403_v58 = vadd.f32 %v2402_v15, %v2401_v27  ;;  %v1425_v59 = vadd.f32 %v1302_v54, %v1301_v47  ;;  %v2408_v60 = vadd.f32 %v2295_v9, %v2294_v1  ;;  %4752 = vperm.xlu1 %9167, %v7419_v42   ;;  %v7476_v9 = vld [vmem:[%s12030_s7 + $0x88] sm:$0xff] }
 0x151   : > { %v1409_v38 = vrot.slane %v1408_v35, 1  ;;  %v2399_v61 = vrot.slane %v2398_v20, 1  ;;  %v1421_v25 = vrot.slane %v1420_v48, 2  ;;  %v2297_v24 = vmul.f32 %v8239_v43, %v9509_v33 }
 0x152   : > { %12060 = vst [vmem:[#allocation16_spill] sm:$0xff] %v10237_v52  ;;  %v8242_v63 = vpop.f32.mrb[28].mxu1  ;;  %v2404_v0 = vrot.slane %v2403_v58, 2  ;;  %v1426_v41 = vrot.slane %v1425_v59, 4  ;;  %v2409_v62 = vrot.slane %v2408_v60, 4  ;;  %v1303_v5 = vmul.f32 %v10193_v37, %v9475_v3 }
 0x153   : > { %v2075_v12 = vpop.f32.mrb[29].mxu1  ;;  %v10244_v13 = vpop.f32.mrb[32].mxu0  ;;  %v1415_v54 = vadd.f32 %v1414_v55, %v1413_v6  ;;  %v2400_v19 = vadd.f32 %v2399_v61, %v2398_v20  ;;  %v10246_v18 = vadd.f32 %v1421_v25, %v1420_v48  ;;  %v2296_v22 = vmul.f32 %v2065_v16, %v9507_v29  ;;  %5284 = vperm.xlu0 %9165, %v7476_v9  }
 0x154   : > { %v10249_v27 = vpop.f32.mrb[33].mxu0  ;;  %v2405_v37 = vadd.f32 %v2404_v0, %v2403_v58  ;;  %v1427_v32 = vadd.f32 %v1426_v41, %v1425_v59  ;;  %v2410_v43 = vadd.f32 %v2409_v62, %v2408_v60  ;;  %v1432_v44 = vadd.f32 %v1304_v51, %v1303_v5  ;;  %4762 = vperm.xlu1 %9167, %v7421_v36   ;;  %v10268_v60 = vpop.permute.xlu1 %3702 }
 0x155   : > { %v1410_v6 = vadd.f32 %v1409_v38, %v1408_v35  ;;  %v10257_v15 = vadd.f32 %v2400_v19, %v1403_v31  ;;  %v2415_v47 = vadd.f32 %v2297_v24, %v2296_v22  ;;  %v1306_v1 = vmul.f32 %v10208_v17, %v9477_v4  ;;  %12063 = vst [vmem:[#allocation19_spill] sm:$0xff] %v10268_v60  ;;  %v7448_v17 = vld [vmem:[%s12034_s11 + $0x68] sm:$0xff]  ;;  %v7423_v38 = vld [vmem:[%s12032_s9 + $0x60] sm:$0xff] }
 0x156   : > { %v8245_v16 = vpop.f32.mrb[30].mxu1  ;;  %v2406_v55 = vrot.slane %v2405_v37, 1  ;;  %v1428_v20 = vrot.slane %v1427_v32, 2  ;;  %v2411_v48 = vrot.slane %v2410_v43, 2  ;;  %v1433_v30 = vrot.slane %v1432_v44, 4 }
 0x157   : > { %12062 = vst [vmem:[#allocation18_spill] sm:$0xff] %v10257_v15  ;;  %v2085_v42 = vpop.f32.mrb[31].mxu1  ;;  %v10261_v61 = vpop.f32.mrb[34].mxu0  ;;  %v1416_v58 = vrot.slane %v1415_v54, 1  ;;  %v2416_v59 = vrot.slane %v2415_v47, 4  ;;  %v2299_v51 = vmul.f32 %v8242_v63, %v9509_v33  ;;  %v1305_v31 = vmul.f32 %v10210_v8, %v9475_v3  ;;  %4972 = vperm.xlu0 %9165, %v7448_v17  }
 0x158   : > { %v10266_v35 = vpop.f32.mrb[35].mxu0  ;;  %v1423_v25 = vrot.slane %v10246_v18, 1  ;;  %v2407_v24 = vadd.f32 %v2406_v55, %v2405_v37  ;;  %v2412_v0 = vadd.f32 %v2411_v48, %v2410_v43  ;;  %v1434_v63 = vadd.f32 %v1433_v30, %v1432_v44  ;;  %4772 = vperm.xlu1 %9167, %v7423_v38   ;;  %v10298_v17 = vpop.permute.xlu1 %3706 }
 0x159   : > { %v2417_v41 = vadd.f32 %v2416_v59, %v2415_v47  ;;  %v1439_v8 = vadd.f32 %v1306_v1, %v1305_v31  ;;  %v2298_v62 = vmul.f32 %v2075_v12, %v9507_v29  ;;  %v1308_v5 = vmul.f32 %v10226_v49, %v9477_v4  ;;  %v10287_v12 = vpop.permute.xlu0 %3746  ;;  %v7478_v49 = vld [vmem:[%s12030_s7 + $0x98] sm:$0xff]  ;;  %12066 = vst [vmem:[#allocation22_spill] sm:$0xff] %v10298_v17 }
 0x15a   : > { %v8248_v19 = vpop.f32.mrb[32].mxu1  ;;  %v10280_v22 = vadd.f32 %v2407_v24, %v1410_v6  ;;  %v1429_v9 = vadd.f32 %v1428_v20, %v1427_v32  ;;  %v2413_v36 = vrot.slane %v2412_v0, 1  ;;  %v1435_v14 = vrot.slane %v1434_v63, 2  ;;  %12065 = vst [vmem:[#allocation21_spill] sm:$0xff] %v10287_v12  ;;  %v7425_v32 = vld [vmem:[%s12032_s9 + $0x70] sm:$0xff] }
 0x15b   : > { %v2095_v60 = vpop.f32.mrb[33].mxu1  ;;  %v10282_v26 = vpop.f32.mrb[36].mxu0  ;;  %v2418_v37 = vrot.slane %v2417_v41, 2  ;;  %v1440_v43 = vrot.slane %v1439_v8, 4  ;;  %v2422_v44 = vadd.f32 %v2299_v51, %v2298_v62  ;;  %v2301_v47 = vmul.f32 %v8245_v16, %v9509_v33  ;;  %5294 = vperm.xlu0 %9165, %v7478_v49   ;;  %v7450_v62 = vld [vmem:[%s12034_s11 + $0x78] sm:$0xff] }
 0x15c   : > { %12064 = vst [vmem:[#allocation20_spill] sm:$0xff] %v10280_v22  ;;  %v10285_v1 = vpop.f32.mrb[37].mxu0  ;;  %v1417_v6 = vadd.f32 %v1416_v58, %v1415_v54  ;;  %v2414_v55 = vadd.f32 %v2413_v36, %v2412_v0  ;;  %v1436_v20 = vadd.f32 %v1435_v14, %v1434_v63  ;;  %v1307_v48 = vmul.f32 %v10229_v21, %v9475_v3  ;;  %v10329_v17 = vpop.permute.xlu1 %3758 }
 0x15d   : > { %v2419_v16 = vadd.f32 %v2418_v37, %v2417_v41  ;;  %v1441_v30 = vadd.f32 %v1440_v43, %v1439_v8  ;;  %v2423_v59 = vrot.slane %v2422_v44, 4  ;;  %v2300_v51 = vmul.f32 %v2085_v42, %v9507_v29  ;;  %4782 = vperm.xlu1 %9167, %v7425_v32   ;;  %v10318_v32 = vpop.permute.xlu0 %3754  ;;  %12070 = vst [vmem:[#allocation26_spill] sm:$0xff] %v10329_v17 }
 0x15e   : > { %v8251_v31 = vpop.f32.mrb[34].mxu1  ;;  %v1424_v38 = vadd.f32 %v1423_v25, %v10246_v18  ;;  %v10301_v24 = vadd.f32 %v2414_v55, %v1417_v6  ;;  %v1446_v54 = vadd.f32 %v1308_v5, %v1307_v48  ;;  %v1310_v14 = vmul.f32 %v10244_v13, %v9477_v4  ;;  %v7443_v18 = vld [vmem:[%s12034_s11 + $0x40] sm:$0xff]  ;;  %12068 = vst [vmem:[#allocation24_spill] sm:$0xff] %v10318_v32 }
 0x15f   : > { %v2105_v58 = vpop.f32.mrb[35].mxu1  ;;  %v10305_v21 = vpop.f32.mrb[38].mxu0  ;;  %v1430_v0 = vrot.slane %v1429_v9, 1  ;;  %v2420_v63 = vrot.slane %v2419_v16, 1  ;;  %v2424_v41 = vadd.f32 %v2423_v59, %v2422_v44  ;;  %v2429_v8 = vadd.f32 %v2301_v47, %v2300_v51  ;;  %4982 = vperm.xlu0 %9165, %v7450_v62  }
 0x160   : > { %12067 = vst [vmem:[#allocation23_spill] sm:$0xff] %v10301_v24  ;;  %v10307_v42 = vpop.f32.mrb[39].mxu0  ;;  %v1442_v25 = vrot.slane %v1441_v30, 2  ;;  %v1447_v5 = vrot.slane %v1446_v54, 4  ;;  %v2303_v13 = vmul.f32 %v8248_v19, %v9509_v33  ;;  %v1309_v36 = vmul.f32 %v10249_v27, %v9475_v3 }
 0x161   : > { %v1437_v37 = vrot.slane %v1436_v20, 1  ;;  %v2421_v43 = vadd.f32 %v2420_v63, %v2419_v16  ;;  %v2425_v44 = vrot.slane %v2424_v41, 2  ;;  %v2430_v47 = vrot.slane %v2429_v8, 4  ;;  %4947 = vperm.xlu1 %9167, %v7443_v18  }
 0x162   : > { %v8254_v49 = vpop.f32.mrb[36].mxu1  ;;  %v1448_v6 = vadd.f32 %v1447_v5, %v1446_v54  ;;  %v1453_v55 = vadd.f32 %v1310_v14, %v1309_v36  ;;  %v2302_v48 = vmul.f32 %v2095_v60, %v9507_v29  ;;  %v1312_v59 = vmul.f32 %v10261_v61, %v9477_v4  ;;  %v7480_v54 = vld [vmem:[%s12030_s7 + $0xa8] sm:$0xff]  ;;  %v7445_v61 = vld [vmem:[%s12034_s11 + $0x50] sm:$0xff] }
 0x163   : > { %v2115_v19 = vpop.f32.mrb[37].mxu1  ;;  %v10323_v51 = vpop.f32.mrb[40].mxu0  ;;  %v1431_v27 = vadd.f32 %v1430_v0, %v1429_v9  ;;  %v10325_v62 = vadd.f32 %v2421_v43, %v1424_v38  ;;  %v2426_v16 = vadd.f32 %v2425_v44, %v2424_v41  ;;  %v2431_v63 = vadd.f32 %v2430_v47, %v2429_v8  ;;  %5304 = vperm.xlu0 %9165, %v7480_v54  }
 0x164   : > { %v10327_v12 = vpop.f32.mrb[41].mxu0  ;;  %v1443_v60 = vadd.f32 %v1442_v25, %v1441_v30  ;;  %v1454_v14 = vrot.slane %v1453_v55, 4  ;;  %v2436_v18 = vadd.f32 %v2303_v13, %v2302_v48  ;;  %v2305_v9 = vmul.f32 %v8251_v31, %v9509_v33 }
 0x165   : > { %12069 = vst [vmem:[#allocation25_spill] sm:$0xff] %v10325_v62  ;;  %v1438_v38 = vadd.f32 %v1437_v37, %v1436_v20  ;;  %v2427_v0 = vrot.slane %v2426_v16, 1  ;;  %v2432_v41 = vrot.slane %v2431_v63, 2  ;;  %v1311_v8 = vmul.f32 %v10266_v35, %v9475_v3  ;;  %4957 = vperm.xlu1 %9167, %v7445_v61   ;;  %v10349_v35 = vpop.permute.xlu0 %3766 }
 0x166   : > { %v8257_v5 = vpop.f32.mrb[38].mxu1  ;;  %v1449_v36 = vrot.slane %v1448_v6, 2  ;;  %v1455_v43 = vadd.f32 %v1454_v14, %v1453_v55  ;;  %v2437_v44 = vrot.slane %v2436_v18, 4  ;;  %v2304_v47 = vmul.f32 %v2105_v58, %v9507_v29  ;;  %12071 = vst [vmem:[#allocation27_spill] sm:$0xff] %v10349_v35  ;;  %v7482_v55 = vld [vmem:[%s12030_s7 + $0xb8] sm:$0xff]  ;;  %v7475_v58 = vld [vmem:[%s12030_s7 + $0x80] sm:$0xff] }
 0x167   : > { %v10341_v17 = vpop.f32.mrb[39].mxu1  ;;  %v10343_v30 = vpop.f32.mrb[42].mxu0  ;;  %v2428_v25 = vadd.f32 %v2427_v0, %v2426_v16  ;;  %v2433_v31 = vadd.f32 %v2432_v41, %v2431_v63  ;;  %v1460_v13 = vadd.f32 %v1312_v59, %v1311_v8  ;;  %v1314_v20 = vmul.f32 %v10282_v26, %v9477_v4  ;;  %5314 = vperm.xlu0 %9165, %v7482_v55  }
 0x168   : > { %v10347_v37 = vpop.f32.mrb[43].mxu0  ;;  %v1444_v48 = vrot.slane %v1443_v60, 1  ;;  %v1456_v54 = vrot.slane %v1455_v43, 2  ;;  %v2438_v16 = vadd.f32 %v2437_v44, %v2436_v18  ;;  %v2443_v63 = vadd.f32 %v2305_v9, %v2304_v47  ;;  %v10360_v41 = vpop.permute.xlu1 %3807 }
 0x169   : > { %v10357_v59 = vadd.f32 %v2428_v25, %v1431_v27  ;;  %v2434_v26 = vrot.slane %v2433_v31, 1  ;;  %v1461_v61 = vrot.slane %v1460_v13, 4  ;;  %v2307_v14 = vmul.f32 %v8254_v49, %v9509_v33  ;;  %12073 = vst [vmem:[#allocation29_spill] sm:$0xff] %v10360_v41  ;;  %5279 = vperm.xlu1 %9167, %v7475_v58  }
 0x16a   : > { %v8260_v0 = vpop.f32.mrb[40].mxu1  ;;  %v1450_v8 = vadd.f32 %v1449_v36, %v1448_v6  ;;  %v10362_v35 = vadd.f32 %v1456_v54, %v1455_v43  ;;  %v2439_v32 = vrot.slane %v2438_v16, 2  ;;  %v2444_v56 = vrot.slane %v2443_v63, 4  ;;  %v7492_v6 = vld [vmem:[%s12032_s9 + $0x88] sm:$0xff]  ;;  %v7447_v36 = vld [vmem:[%s12034_s11 + $0x60] sm:$0xff] }
 0x16b   : > { %12072 = vst [vmem:[#allocation28_spill] sm:$0xff] %v10357_v59  ;;  %v10364_v39 = vpop.f32.mrb[41].mxu1  ;;  %v10366_v18 = vpop.f32.mrb[44].mxu0  ;;  %v2435_v9 = vadd.f32 %v2434_v26, %v2433_v31  ;;  %v1462_v27 = vadd.f32 %v1461_v61, %v1460_v13  ;;  %v1313_v44 = vmul.f32 %v10285_v1, %v9475_v3  ;;  %v2306_v49 = vmul.f32 %v2115_v19, %v9507_v29 }
 0x16c   : > { %v10371_v47 = vpop.f32.mrb[45].mxu0  ;;  %v1445_v43 = vadd.f32 %v1444_v48, %v1443_v60  ;;  %v2440_v25 = vadd.f32 %v2439_v32, %v2438_v16  ;;  %v2445_v55 = vadd.f32 %v2444_v56, %v2443_v63  ;;  %v1316_v31 = vmul.f32 %v10305_v21, %v9477_v4  ;;  %5358 = vperm.xlu0 %9165, %v7492_v6   ;;  %v10385_v26 = vpop.permute.xlu0 %3710 }
 0x16d   : > { %v10381_v1 = vadd.f32 %v2435_v9, %v1438_v38  ;;  %v1463_v19 = vrot.slane %v1462_v27, 2  ;;  %v1467_v13 = vadd.f32 %v1314_v20, %v1313_v44  ;;  %v2450_v58 = vadd.f32 %v2307_v14, %v2306_v49  ;;  %12075 = vst [vmem:[#allocation31_spill] sm:$0xff] %v10385_v26  ;;  %4967 = vperm.xlu1 %9167, %v7447_v36   ;;  %v10397_v63 = vpop.permute.xlu1 %3663  ;;  %v7494_v14 = vld [vmem:[%s12032_s9 + $0x98] sm:$0xff] }
 0x16e   : > { %v10383_v54 = vpop.f32.mrb[42].mxu1  ;;  %v1451_v61 = vrot.slane %v1450_v8, 1  ;;  %v2441_v41 = vrot.slane %v2440_v25, 1  ;;  %v2446_v23 = vrot.slane %v2445_v55, 2  ;;  %v2309_v32 = vmul.f32 %v8257_v5, %v9509_v33  ;;  %12076 = vst [vmem:[#allocation32_spill] sm:$0xff] %v10397_v63  ;;  %v7477_v5 = vld [vmem:[%s12030_s7 + $0x90] sm:$0xff] }
 0x16f   : > { %12074 = vst [vmem:[#allocation30_spill] sm:$0xff] %v10381_v1  ;;  %v10388_v56 = vpop.f32.mrb[43].mxu1  ;;  %v10390_v60 = vpop.f32.mrb[46].mxu0  ;;  %v1468_v38 = vrot.slane %v1467_v13, 4  ;;  %v2451_v48 = vrot.slane %v2450_v58, 4  ;;  %v1315_v20 = vmul.f32 %v10307_v42, %v9475_v3  ;;  %v2308_v49 = vmul.f32 %v10341_v17, %v9507_v29 }
 0x170   : > { %v10395_v16 = vpop.f32.mrb[47].mxu0  ;;  %v2442_v9 = vadd.f32 %v2441_v41, %v2440_v25  ;;  %v2447_v44 = vadd.f32 %v2446_v23, %v2445_v55  ;;  %v1318_v42 = vmul.f32 %v10323_v51, %v9477_v4  ;;  %5368 = vperm.xlu0 %9165, %v7494_v14   ;;  %v10409_v6 = vadd.f32 %v1463_v19, %v1462_v27 }
 0x171   : > { %v1469_v36 = vadd.f32 %v1468_v38, %v1467_v13  ;;  %v2452_v21 = vadd.f32 %v2451_v48, %v2450_v58  ;;  %v1474_v63 = vadd.f32 %v1316_v31, %v1315_v20  ;;  %5289 = vperm.xlu1 %9167, %v7477_v5   ;;  %v2457_v41 = vadd.f32 %v2309_v32, %v2308_v49  ;;  %v10422_v31 = vpop.permute.xlu0 %3722 }
 0x172   : > { %v10411_v26 = vpop.f32.mrb[44].mxu1  ;;  %v10413_v10 = vadd.f32 %v2442_v9, %v1445_v43  ;;  %v2448_v1 = vrot.slane %v2447_v44, 1  ;;  %v2311_v23 = vmul.f32 %v8260_v0, %v9509_v33  ;;  %v1452_v51 = vadd.f32 %v1451_v61, %v1450_v8  ;;  %12078 = vst [vmem:[#allocation34_spill] sm:$0xff] %v10422_v31  ;;  %v7496_v43 = vld [vmem:[%s12032_s9 + $0xa8] sm:$0xff]  ;;  %v7449_v0 = vld [vmem:[%s12034_s11 + $0x70] sm:$0xff]  ;;  %v10439_v9 = vpop.permute.xlu1 %3668 }
 0x173   : > { %v10416_v25 = vpop.f32.mrb[45].mxu1  ;;  %v10418_v17 = vpop.f32.mrb[48].mxu0  ;;  %v1470_v55 = vrot.slane %v1469_v36, 2  ;;  %v2453_v27 = vrot.slane %v2452_v21, 2  ;;  %v1475_v19 = vrot.slane %v1474_v63, 4  ;;  %v2458_v32 = vrot.slane %v2457_v41, 4 }
 0x174   : > { %12077 = vst [vmem:[#allocation33_spill] sm:$0xff] %v10413_v10  ;;  %v10420_v13 = vpop.f32.mrb[49].mxu0  ;;  %v2449_v58 = vadd.f32 %v2448_v1, %v2447_v44  ;;  %v1317_v8 = vmul.f32 %v10327_v12, %v9475_v3  ;;  %v2310_v61 = vmul.f32 %v10364_v39, %v9507_v29  ;;  %5378 = vperm.xlu0 %9165, %v7496_v43   ;;  %v1465_v38 = vrot.slane %v10409_v6, 1 }
 0x175   : > { %v2454_v48 = vadd.f32 %v2453_v27, %v2452_v21  ;;  %v1476_v20 = vadd.f32 %v1475_v19, %v1474_v63  ;;  %v1320_v14 = vmul.f32 %v10343_v30, %v9477_v4  ;;  %12079 = vst [vmem:[#allocation35_spill] sm:$0xff] %v10439_v9  ;;  %4977 = vperm.xlu1 %9167, %v7449_v0   ;;  %vm3893_vm0 = vcmask 1041409  }
 0x176   : > { %v10437_v5 = vpop.f32.mrb[46].mxu1  ;;  %v10441_v1 = vadd.f32 %v2449_v58, %v1452_v51  ;;  %v2459_v44 = vadd.f32 %v2458_v32, %v2457_v41  ;;  %v1481_v12 = vadd.f32 %v1318_v42, %v1317_v8  ;;  %v2464_v49 = vadd.f32 %v2311_v23, %v2310_v61  ;;  %v7498_v51 = vld [vmem:[%s12032_s9 + $0xb8] sm:$0xff]  ;;  %v7479_v42 = vld [vmem:[%s12030_s7 + $0xa0] sm:$0xff]  ;;  %v10466_v61 = vpop.permute.xlu0 %3643 }
 0x177   : > { %v10443_v31 = vpop.f32.mrb[47].mxu1  ;;  %v10445_v39 = vpop.f32.mrb[50].mxu0  ;;  %v1471_v43 = vadd.f32 %v1470_v55, %v1469_v36  ;;  %v2455_v21 = vrot.slane %v2454_v48, 1  ;;  %v1477_v63 = vrot.slane %v1476_v20, 2  ;;  %v2313_v30 = vmul.f32 %v10383_v54, %v9509_v33  ;;  %12082 = vst [vmem:[#allocation37_spill] sm:$0xff] %v10466_v61 }
 0x178   : > { %12080 = vst [vmem:[#allocation36_spill] sm:$0xff] %v10441_v1  ;;  %v10449_v27 = vpop.f32.mrb[51].mxu0  ;;  %v2460_v41 = vrot.slane %v2459_v44, 2  ;;  %v1482_v23 = vrot.slane %v1481_v12, 4  ;;  %v2465_v19 = vrot.slane %v2464_v49, 4  ;;  %v1319_v36 = vmul.f32 %v10347_v37, %v9475_v3  ;;  %5388 = vperm.xlu0 %9165, %v7498_v51  }
 0x179   : > { %v12081_v54 = vrot.slane %v10362_v35, 1  ;;  %v2456_v0 = vadd.f32 %v2455_v21, %v2454_v48  ;;  %v1478_v58 = vadd.f32 %v1477_v63, %v1476_v20  ;;  %v2312_v32 = vmul.f32 %v10388_v56, %v9507_v29  ;;  %5299 = vperm.xlu1 %9167, %v7479_v42   ;;  %v10479_v63 = vpop.permute.xlu1 %3714 }
 0x17a   : > { %v10464_v8 = vpop.f32.mrb[48].mxu1  ;;  %v2461_v9 = vadd.f32 %v2460_v41, %v2459_v44  ;;  %v1483_v1 = vadd.f32 %v1482_v23, %v1481_v12  ;;  %v2466_v10 = vadd.f32 %v2465_v19, %v2464_v49  ;;  %v1488_v59 = vadd.f32 %v1320_v14, %v1319_v36  ;;  %12084 = vst [vmem:[#allocation39_spill] sm:$0xff] %v10479_v63  ;;  %v7516_v14 = vld [vmem:[%s12034_s11 + $0x88] sm:$0xff]  ;;  %v7481_v44 = vld [vmem:[%s12030_s7 + $0xb0] sm:$0xff] }
 0x17b   : > { %v1459_v55 = vadd.f32 %v12081_v54, %v10362_v35  ;;  %v10468_v37 = vpop.f32.mrb[49].mxu1  ;;  %v10470_v51 = vpop.f32.mrb[52].mxu0  ;;  %v1466_v35 = vadd.f32 %v1465_v38, %v10409_v6  ;;  %v2471_v20 = vadd.f32 %v2313_v30, %v2312_v32  ;;  %v1322_v56 = vmul.f32 %v10366_v18, %v9477_v4 }
 0x17c   : > { %v10477_v21 = vpop.f32.mrb[53].mxu0  ;;  %v1472_v12 = vrot.slane %v1471_v43, 1  ;;  %v2462_v6 = vrot.slane %v2461_v9, 1  ;;  %v2467_v38 = vrot.slane %v2466_v10, 2  ;;  %v1489_v49 = vrot.slane %v1488_v59, 4  ;;  %5553 = vperm.xlu0 %9165, %v7516_v14  }
 0x17d   : > { %v10473_v48 = vadd.f32 %v2456_v0, %v1459_v55  ;;  %v1479_v30 = vrot.slane %v1478_v58, 1  ;;  %v2472_v42 = vrot.slane %v2471_v20, 4  ;;  %v2315_v18 = vmul.f32 %v10411_v26, %v9509_v33  ;;  %5309 = vperm.xlu1 %9167, %v7481_v44  }
 0x17e   : > { %v1321_v41 = vmul.f32 %v10371_v47, %v9475_v3  ;;  %v10491_v23 = vpop.f32.mrb[50].mxu1  ;;  %v2463_v19 = vadd.f32 %v2462_v6, %v2461_v9  ;;  %v1484_v36 = vrot.slane %v1483_v1, 2  ;;  %v2468_v54 = vadd.f32 %v2467_v38, %v2466_v10  ;;  %v7518_v10 = vld [vmem:[%s12034_s11 + $0x98] sm:$0xff] }
 0x17f   : > { %12083 = vst [vmem:[#allocation38_spill] sm:$0xff] %v10473_v48  ;;  %v1490_v55 = vadd.f32 %v1489_v49, %v1488_v59  ;;  %v10493_v0 = vpop.f32.mrb[51].mxu1  ;;  %v10495_v32 = vpop.f32.mrb[54].mxu0  ;;  %v2473_v14 = vadd.f32 %v2472_v42, %v2471_v20  ;;  %v2314_v61 = vmul.f32 %v10416_v25, %v9507_v29  ;;  %v1324_v26 = vmul.f32 %v10390_v60, %v9477_v4  ;;  %v7491_v59 = vld [vmem:[%s12032_s9 + $0x80] sm:$0xff] }
 0x180   : > { %v1495_v63 = vadd.f32 %v1322_v56, %v1321_v41  ;;  %v10501_v47 = vpop.f32.mrb[55].mxu0  ;;  %v10503_v48 = vpop.permute.xlu0 %3648  ;;  %v1473_v9 = vadd.f32 %v1472_v12, %v1471_v43  ;;  %v10511_v20 = vadd.f32 %v2463_v19, %v1466_v35  ;;  %v2469_v56 = vrot.slane %v2468_v54, 1  ;;  %5563 = vperm.xlu0 %9165, %v7518_v10  }
 0x181   : > { %12085 = vst [vmem:[#allocation40_spill] sm:$0xff] %v10503_v48  ;;  %v1491_v25 = vrot.slane %v1490_v55, 2  ;;  %v2474_v44 = vrot.slane %v2473_v14, 2  ;;  %v2478_v6 = vadd.f32 %v2315_v18, %v2314_v61  ;;  %v2317_v38 = vmul.f32 %v10437_v5, %v9509_v33  ;;  %v10517_v42 = vpop.permute.xlu1 %3762  ;;  %5353 = vperm.xlu1 %9167, %v7491_v59  }
 0x182   : > { %12086 = vst [vmem:[#allocation41_spill] sm:$0xff] %v10511_v20  ;;  %v1496_v60 = vrot.slane %v1495_v63, 4  ;;  %v10515_v49 = vpop.f32.mrb[52].mxu1  ;;  %12087 = vst [vmem:[#allocation42_spill] sm:$0xff] %v10517_v42  ;;  %v1480_v41 = vadd.f32 %v1479_v30, %v1478_v58  ;;  %v1485_v48 = vadd.f32 %v1484_v36, %v1483_v1  ;;  %v2470_v62 = vadd.f32 %v2469_v56, %v2468_v54  ;;  %v7548_v1 = vld [vmem:[%s12030_s7 + $0xc8] sm:$0xff] }
 0x183   : > { %v1323_v43 = vmul.f32 %v10395_v16, %v9475_v3  ;;  %v10521_v35 = vpop.f32.mrb[53].mxu1  ;;  %v10523_v12 = vpop.f32.mrb[56].mxu0  ;;  %v2475_v19 = vadd.f32 %v2474_v44, %v2473_v14  ;;  %v2479_v18 = vrot.slane %v2478_v6, 4  ;;  %v2316_v5 = vmul.f32 %v10443_v31, %v9507_v29  ;;  %v7493_v16 = vld [vmem:[%s12032_s9 + $0x90] sm:$0xff] }
 0x184   : > { %v1497_v61 = vadd.f32 %v1496_v60, %v1495_v63  ;;  %v10527_v10 = vpop.f32.mrb[57].mxu0  ;;  %v10535_v58 = vadd.f32 %v2470_v62, %v1473_v9  ;;  %v1492_v30 = vadd.f32 %v1491_v25, %v1490_v55  ;;  %v1326_v63 = vmul.f32 %v10418_v17, %v9477_v4  ;;  %5885 = vperm.xlu0 %9165, %v7548_v1   ;;  %v10541_v44 = vpop.permute.xlu0 %3658 }
 0x185   : > { %v1502_v36 = vadd.f32 %v1324_v26, %v1323_v43  ;;  %v2476_v54 = vrot.slane %v2475_v19, 1  ;;  %v2480_v14 = vadd.f32 %v2479_v18, %v2478_v6  ;;  %v2485_v59 = vadd.f32 %v2317_v38, %v2316_v5  ;;  %12089 = vst [vmem:[#allocation44_spill] sm:$0xff] %v10541_v44  ;;  %5363 = vperm.xlu1 %9167, %v7493_v16   ;;  %v10553_v18 = vpop.permute.xlu1 %3817  ;;  %v7520_v5 = vld [vmem:[%s12034_s11 + $0xa8] sm:$0xff] }
 0x186   : > { %12088 = vst [vmem:[#allocation43_spill] sm:$0xff] %v10535_v58  ;;  %v1498_v31 = vrot.slane %v1497_v61, 2  ;;  %v10539_v56 = vpop.f32.mrb[54].mxu1  ;;  %v1486_v60 = vrot.slane %v1485_v48, 1  ;;  %v2319_v62 = vmul.f32 %v10464_v8, %v9509_v33  ;;  %v1325_v55 = vmul.f32 %v10420_v13, %v9475_v3  ;;  %12090 = vst [vmem:[#allocation45_spill] sm:$0xff] %v10553_v18  ;;  %v7495_v13 = vld [vmem:[%s12032_s9 + $0xa0] sm:$0xff] }
 0x187   : > { %v1503_v42 = vrot.slane %v1502_v36, 4  ;;  %v10547_v26 = vpop.f32.mrb[55].mxu1  ;;  %v10549_v17 = vpop.f32.mrb[58].mxu0  ;;  %v2477_v9 = vadd.f32 %v2476_v54, %v2475_v19  ;;  %v2481_v6 = vrot.slane %v2480_v14, 2  ;;  %v2486_v38 = vrot.slane %v2485_v59, 4 }
 0x188   : > { %v1499_v25 = vadd.f32 %v1498_v31, %v1497_v61  ;;  %v10551_v43 = vpop.f32.mrb[59].mxu0  ;;  %v1509_v1 = vadd.f32 %v1326_v63, %v1325_v55  ;;  %v2318_v19 = vmul.f32 %v10468_v37, %v9507_v29  ;;  %v1328_v61 = vmul.f32 %v10445_v39, %v9477_v4  ;;  %5573 = vperm.xlu0 %9165, %v7520_v5  }
 0x189   : > { %v1504_v8 = vadd.f32 %v1503_v42, %v1502_v36  ;;  %v1493_v16 = vrot.slane %v1492_v30, 1  ;;  %v10565_v54 = vadd.f32 %v2477_v9, %v1480_v41  ;;  %v2482_v31 = vadd.f32 %v2481_v6, %v2480_v14  ;;  %5373 = vperm.xlu1 %9167, %v7495_v13  }
 0x18a   : > { %v2487_v18 = vadd.f32 %v2486_v38, %v2485_v59  ;;  %v10567_v44 = vpop.f32.mrb[56].mxu1  ;;  %v1510_v20 = vrot.slane %v1509_v1, 4  ;;  %v2492_v24 = vadd.f32 %v2319_v62, %v2318_v19  ;;  %v2321_v42 = vmul.f32 %v10491_v23, %v9509_v33  ;;  %v10579_v59 = vpop.permute.xlu0 %3812  ;;  %v7550_v62 = vld [vmem:[%s12030_s7 + $0xd8] sm:$0xff]  ;;  %v7497_v23 = vld [vmem:[%s12032_s9 + $0xb0] sm:$0xff] }
 0x18b   : > { %12091 = vst [vmem:[#allocation46_spill] sm:$0xff] %v10565_v54  ;;  %v1505_v58 = vrot.slane %v1504_v8, 2  ;;  %v10571_v36 = vpop.f32.mrb[57].mxu1  ;;  %v10573_v37 = vpop.f32.mrb[60].mxu0  ;;  %v1487_v39 = vadd.f32 %v1486_v60, %v1485_v48  ;;  %v2483_v63 = vrot.slane %v2482_v31, 1  ;;  %v1327_v41 = vmul.f32 %v10449_v27, %v9475_v3  ;;  %12092 = vst [vmem:[#allocation47_spill] sm:$0xff] %v10579_v59 }
 0x18c   : > { %v2488_v55 = vrot.slane %v2487_v18, 2  ;;  %v10577_v14 = vpop.f32.mrb[61].mxu0  ;;  %v1500_v9 = vrot.slane %v1499_v25, 1  ;;  %v1511_v6 = vadd.f32 %v1510_v20, %v1509_v1  ;;  %v2493_v48 = vrot.slane %v2492_v24, 4  ;;  %5895 = vperm.xlu0 %9165, %v7550_v62   ;;  %v10593_v59 = vpop.permute.xlu1 %3822 }
 0x18d   : > { %v2320_v60 = vmul.f32 %v10493_v0, %v9507_v29  ;;  %v2484_v27 = vadd.f32 %v2483_v63, %v2482_v31  ;;  %v1516_v5 = vadd.f32 %v1328_v61, %v1327_v41  ;;  %v1330_v13 = vmul.f32 %v10470_v51, %v9477_v4  ;;  %12093 = vst [vmem:[#allocation48_spill] sm:$0xff] %v10593_v59 }
 0x18e   : > { %v2489_v38 = vadd.f32 %v2488_v55, %v2487_v18  ;;  %v10591_v19 = vpop.f32.mrb[58].mxu1  ;;  %5383 = vperm.xlu1 %9167, %v7497_v23   ;;  %v1494_v54 = vadd.f32 %v1493_v16, %v1492_v30  ;;  %v1506_v22 = vadd.f32 %v1505_v58, %v1504_v8  ;;  %v2494_v15 = vadd.f32 %v2493_v48, %v2492_v24  ;;  %v7522_v30 = vld [vmem:[%s12034_s11 + $0xb8] sm:$0xff]  ;;  %v7515_v24 = vld [vmem:[%s12034_s11 + $0x80] sm:$0xff]  ;;  %v10617_v62 = vpop.permute.xlu0 %4080 }
 0x18f   : > { %v2499_v20 = vadd.f32 %v2321_v42, %v2320_v60  ;;  %v10595_v1 = vpop.f32.mrb[59].mxu1  ;;  %v10597_v52 = vpop.f32.mrb[62].mxu0  ;;  %v10599_v0 = vadd.f32 %v2484_v27, %v1487_v39  ;;  %v1517_v61 = vrot.slane %v1516_v5, 4  ;;  %v2323_v51 = vmul.f32 %v10515_v49, %v9509_v33  ;;  %12095 = vst [vmem:[#allocation50_spill] sm:$0xff] %v10617_v62 }
 0x190   : > { %v2490_v18 = vrot.slane %v2489_v38, 1  ;;  %v10603_v31 = vpop.f32.mrb[63].mxu0  ;;  %v1501_v58 = vadd.f32 %v1500_v9, %v1499_v25  ;;  %v1512_v8 = vrot.slane %v1511_v6, 2  ;;  %v2495_v16 = vrot.slane %v2494_v15, 2  ;;  %5583 = vperm.xlu0 %9165, %v7522_v30  }
 0x191   : > { %12094 = vst [vmem:[#allocation49_spill] sm:$0xff] %v10599_v0  ;;  %v2500_v42 = vrot.slane %v2499_v20, 4  ;;  %v1518_v63 = vadd.f32 %v1517_v61, %v1516_v5  ;;  %v1329_v49 = vmul.f32 %v10477_v21, %v9475_v3  ;;  %v2322_v55 = vmul.f32 %v10521_v35, %v9507_v29  ;;  %v10629_v61 = vpop.permute.xlu1 %4085 }
 0x192   : > { %v2491_v39 = vadd.f32 %v2490_v18, %v2489_v38  ;;  %v10615_v41 = vpop.f32.mrb[60].mxu1  ;;  %5548 = vperm.xlu1 %9167, %v7515_v24   ;;  %v1507_v23 = vrot.slane %v1506_v22, 1  ;;  %v2496_v48 = vadd.f32 %v2495_v16, %v2494_v15  ;;  %v1332_v9 = vmul.f32 %v10495_v32, %v9477_v4  ;;  %12097 = vst [vmem:[#allocation52_spill] sm:$0xff] %v10629_v61  ;;  %v7552_v15 = vld [vmem:[%s12030_s7 + $0xe8] sm:$0xff]  ;;  %v7517_v32 = vld [vmem:[%s12034_s11 + $0x90] sm:$0xff]  ;;  %v10655_v59 = vpop.permute.xlu0 %3678 }
 0x193   : > { %v2501_v25 = vadd.f32 %v2500_v42, %v2499_v20  ;;  %v10621_v60 = vpop.f32.mrb[61].mxu1  ;;  %v10623_v27 = vpop.f32.mrb[64].mxu0  ;;  %v1519_v21 = vrot.slane %v1518_v63, 2  ;;  %v1523_v5 = vadd.f32 %v1330_v13, %v1329_v49  ;;  %v2506_v35 = vadd.f32 %v2323_v51, %v2322_v55  ;;  %12098 = vst [vmem:[#allocation53_spill] sm:$0xff] %v10655_v59 }
 0x194   : > { %v10625_v38 = vadd.f32 %v2491_v39, %v1494_v54  ;;  %v10627_v18 = vpop.f32.mrb[65].mxu0  ;;  %v1513_v20 = vadd.f32 %v1512_v8, %v1511_v6  ;;  %v2497_v30 = vrot.slane %v2496_v48, 1  ;;  %v2325_v54 = vmul.f32 %v10539_v56, %v9509_v33  ;;  %5905 = vperm.xlu0 %9165, %v7552_v15  }
 0x195   : > { %v2502_v24 = vrot.slane %v2501_v25, 2  ;;  %v10639_v13 = vadd.f32 %v1519_v21, %v1518_v63  ;;  %v1524_v51 = vrot.slane %v1523_v5, 4  ;;  %v2507_v16 = vrot.slane %v2506_v35, 4 }
 0x196   : > { %12096 = vst [vmem:[#allocation51_spill] sm:$0xff] %v10625_v38  ;;  %v1331_v42 = vmul.f32 %v10501_v47, %v9475_v3  ;;  %v10643_v39 = vpop.f32.mrb[62].mxu1  ;;  %5558 = vperm.xlu1 %9167, %v7517_v32   ;;  %v2498_v49 = vadd.f32 %v2497_v30, %v2496_v48  ;;  %v2324_v6 = vmul.f32 %v10547_v26, %v9507_v29  ;;  %v7554_v48 = vld [vmem:[%s12030_s7 + $0xf8] sm:$0xff] }
 0x197   : > { %v2503_v55 = vadd.f32 %v2502_v24, %v2501_v25  ;;  %v1334_v8 = vmul.f32 %v10523_v12, %v9477_v4  ;;  %v10649_v56 = vpop.f32.mrb[63].mxu1  ;;  %v10651_v63 = vpop.f32.mrb[66].mxu0  ;;  %v1508_v21 = vadd.f32 %v1507_v23, %v1506_v22  ;;  %v1525_v15 = vadd.f32 %v1524_v51, %v1523_v5  ;;  %v7547_v12 = vld [vmem:[%s12030_s7 + $0xc0] sm:$0xff] }
 0x198   : > { %v2508_v62 = vadd.f32 %v2507_v16, %v2506_v35  ;;  %v1530_v61 = vadd.f32 %v1332_v9, %v1331_v42  ;;  %v10653_v47 = vpop.f32.mrb[67].mxu0  ;;  %v10663_v26 = vadd.f32 %v2498_v49, %v1501_v58  ;;  %v2513_v32 = vadd.f32 %v2325_v54, %v2324_v6  ;;  %5915 = vperm.xlu0 %9165, %v7554_v48   ;;  %v10670_v24 = vpop.permute.xlu1 %3673  ;;  %v7564_v49 = vld [vmem:[%s12032_s9 + $0xc8] sm:$0xff]  ;;  %v7519_v6 = vld [vmem:[%s12034_s11 + $0xa0] sm:$0xff] }
 0x199   : > { %v2504_v25 = vrot.slane %v2503_v55, 1  ;;  %v2327_v22 = vmul.f32 %v10567_v44, %v9509_v33  ;;  %v1514_v23 = vrot.slane %v1513_v20, 1  ;;  %v1521_v9 = vrot.slane %v10639_v13, 1  ;;  %12100 = vst [vmem:[#allocation55_spill] sm:$0xff] %v10670_v24 }
 0x19a   : > { %12099 = vst [vmem:[#allocation54_spill] sm:$0xff] %v10663_v26  ;;  %v2509_v5 = vrot.slane %v2508_v62, 2  ;;  %v1531_v35 = vrot.slane %v1530_v61, 4  ;;  %v10668_v30 = vpop.f32.mrb[64].mxu1  ;;  %5880 = vperm.xlu1 %9167, %v7547_v12   ;;  %v2514_v16 = vrot.slane %v2513_v32, 4  ;;  %v1333_v58 = vmul.f32 %v10527_v10, %v9475_v3 }
 0x19b   : > { %v2505_v51 = vadd.f32 %v2504_v25, %v2503_v55  ;;  %v2326_v54 = vmul.f32 %v10571_v36, %v9507_v29  ;;  %v10676_v44 = vpop.f32.mrb[65].mxu1  ;;  %v10678_v42 = vpop.f32.mrb[68].mxu0  ;;  %v1526_v55 = vrot.slane %v1525_v15, 2  ;;  %v1336_v10 = vmul.f32 %v10549_v17, %v9477_v4  ;;  %v7566_v4 = vld [vmem:[%s12032_s9 + $0xd8] sm:$0xff] }
 0x19c   : > { %v2510_v48 = vadd.f32 %v2509_v5, %v2508_v62  ;;  %v1532_v12 = vadd.f32 %v1531_v35, %v1530_v61  ;;  %v10688_v25 = vpop.f32.mrb[69].mxu0  ;;  %v2515_v24 = vadd.f32 %v2514_v16, %v2513_v32  ;;  %v1537_v59 = vadd.f32 %v1334_v8, %v1333_v58  ;;  %5959 = vperm.xlu0 %9165, %v7564_v49   ;;  %v10696_v62 = vpop.permute.xlu0 %3827 }
 0x19d   : > { %v10690_v36 = vadd.f32 %v2505_v51, %v1508_v21  ;;  %v2520_v26 = vadd.f32 %v2327_v22, %v2326_v54  ;;  %v1515_v38 = vadd.f32 %v1514_v23, %v1513_v20  ;;  %v2329_v50 = vmul.f32 %v10591_v19, %v9509_v33  ;;  %12101 = vst [vmem:[#allocation56_spill] sm:$0xff] %v10696_v62  ;;  %v7549_v19 = vld [vmem:[%s12030_s7 + $0xd0] sm:$0xff]  ;;  %v10715_v16 = vpop.permute.xlu1 %3718 }
 0x19e   : > { %v2511_v0 = vrot.slane %v2510_v48, 1  ;;  %v1533_v7 = vrot.slane %v1532_v12, 2  ;;  %v10694_v11 = vpop.f32.mrb[66].mxu1  ;;  %5568 = vperm.xlu1 %9167, %v7519_v6   ;;  %v2516_v17 = vrot.slane %v2515_v24, 2  ;;  %v1538_v61 = vrot.slane %v1537_v59, 4 }
 0x19f   : > { %v2521_v8 = vrot.slane %v2520_v26, 4  ;;  %v1335_v20 = vmul.f32 %v10551_v43, %v9475_v3  ;;  %v10703_v21 = vpop.f32.mrb[67].mxu1  ;;  %v10705_v32 = vpop.f32.mrb[70].mxu0  ;;  %v1522_v22 = vadd.f32 %v1521_v9, %v10639_v13  ;;  %v1527_v23 = vadd.f32 %v1526_v55, %v1525_v15 }
 0x1a0   : > { %v2512_v5 = vadd.f32 %v2511_v0, %v2510_v48  ;;  %v2328_v35 = vmul.f32 %v10595_v1, %v9507_v29  ;;  %v10713_v51 = vpop.f32.mrb[71].mxu0  ;;  %v2517_v3 = vadd.f32 %v2516_v17, %v2515_v24  ;;  %v1539_v43 = vadd.f32 %v1538_v61, %v1537_v59  ;;  %5969 = vperm.xlu0 %9165, %v7566_v4   ;;  %v7568_v1 = vld [vmem:[%s12032_s9 + $0xe8] sm:$0xff]  ;;  %v10735_v17 = vpop.permute.xlu0 %4095 }
 0x1a1   : > { %v2522_v58 = vadd.f32 %v2521_v8, %v2520_v26  ;;  %v1544_v54 = vadd.f32 %v1336_v10, %v1335_v20  ;;  %v1534_v6 = vadd.f32 %v1533_v7, %v1532_v12  ;;  %v2331_v13 = vmul.f32 %v10615_v41, %v9509_v33 }
 0x1a2   : > { %v10717_v49 = vadd.f32 %v2512_v5, %v1515_v38  ;;  %v2527_v62 = vadd.f32 %v2329_v50, %v2328_v35  ;;  %5890 = vperm.xlu1 %9167, %v7549_v19   ;;  %v2518_v0 = vrot.slane %v2517_v3, 1  ;;  %v1540_v15 = vrot.slane %v1539_v43, 2  ;;  %v7521_v38 = vld [vmem:[%s12034_s11 + $0xb0] sm:$0xff]  ;;  %v10741_v19 = vpop.permute.xlu1 %3770 }
 0x1a3   : > { %v2523_v9 = vrot.slane %v2522_v58, 2  ;;  %v1545_v24 = vrot.slane %v1544_v54, 4  ;;  %v10724_v59 = vpop.f32.mrb[72].mxu0  ;;  %v1528_v7 = vrot.slane %v1527_v23, 1  ;;  %v3314_v41 = vmul.f32 %v10573_v37, %v9531_v46 }
 0x1a4   : > { %v2528_v50 = vrot.slane %v2527_v62, 4  ;;  %v2330_v26 = vmul.f32 %v10621_v60, %v9507_v29  ;;  %v10733_v55 = vpop.f32.mrb[73].mxu0  ;;  %v2519_v48 = vadd.f32 %v2518_v0, %v2517_v3  ;;  %v1541_v12 = vadd.f32 %v1540_v15, %v1539_v43  ;;  %5979 = vperm.xlu0 %9165, %v7568_v1   ;;  %v7570_v60 = vld [vmem:[%s12032_s9 + $0xf8] sm:$0xff] }
 0x1a5   : > { %v2524_v10 = vadd.f32 %v2523_v9, %v2522_v58  ;;  %v1546_v4 = vadd.f32 %v1545_v24, %v1544_v54  ;;  %v3313_v20 = vmul.f32 %v10577_v14, %v9529_v45  ;;  %v2333_v37 = vmul.f32 %v10643_v39, %v9509_v33  ;;  %v7551_v14 = vld [vmem:[%s12030_s7 + $0xe0] sm:$0xff] }
 0x1a6   : > { %v2529_v61 = vadd.f32 %v2528_v50, %v2527_v62  ;;  %v2534_v8 = vadd.f32 %v2331_v13, %v2330_v26  ;;  %5578 = vperm.xlu1 %9167, %v7521_v38   ;;  %v1535_v5 = vrot.slane %v1534_v6, 1  ;;  %v10746_v35 = vadd.f32 %v2519_v48, %v1522_v22 }
 0x1a7   : > { %v2525_v3 = vrot.slane %v2524_v10, 1  ;;  %v1547_v43 = vrot.slane %v1546_v4, 2  ;;  %v10748_v62 = vpop.f32.mrb[74].mxu0  ;;  %v3377_v54 = vadd.f32 %v3314_v41, %v3313_v20  ;;  %v3316_v13 = vmul.f32 %v10597_v52, %v9531_v46  ;;  %v7588_v52 = vld [vmem:[%s12034_s11 + $0xc8] sm:$0xff] }
 0x1a8   : > { %v2530_v58 = vrot.slane %v2529_v61, 2  ;;  %v2535_v39 = vrot.slane %v2534_v8, 4  ;;  %v10755_v1 = vpop.f32.mrb[75].mxu0  ;;  %v1529_v0 = vadd.f32 %v1528_v7, %v1527_v23  ;;  %v1542_v15 = vrot.slane %v1541_v12, 1  ;;  %5989 = vperm.xlu0 %9165, %v7570_v60  }
 0x1a9   : > { %v2526_v22 = vadd.f32 %v2525_v3, %v2524_v10  ;;  %v2332_v9 = vmul.f32 %v10649_v56, %v9507_v29  ;;  %v3378_v50 = vrot.slane %v3377_v54, 4  ;;  %v3315_v26 = vmul.f32 %v10603_v31, %v9529_v45  ;;  %v10770_v56 = vpop.permute.xlu0 %3842 }
 0x1aa   : > { %v2531_v24 = vadd.f32 %v2530_v58, %v2529_v61  ;;  %v2536_v38 = vadd.f32 %v2535_v39, %v2534_v8  ;;  %5900 = vperm.xlu1 %9167, %v7551_v14   ;;  %v1536_v41 = vadd.f32 %v1535_v5, %v1534_v6  ;;  %v10766_v23 = vadd.f32 %v1547_v43, %v1546_v4  ;;  %v7553_v61 = vld [vmem:[%s12030_s7 + $0xf0] sm:$0xff]  ;;  %v10777_v6 = vpop.permute.xlu1 %3774 }
 0x1ab   : > { %v10764_v48 = vadd.f32 %v2526_v22, %v1529_v0  ;;  %v2541_v7 = vadd.f32 %v2333_v37, %v2332_v9  ;;  %v10768_v10 = vpop.f32.mrb[76].mxu0  ;;  %12102 = vst [vmem:[#allocation57_spill] sm:$0xff] %v10770_v56  ;;  %v3379_v20 = vadd.f32 %v3378_v50, %v3377_v54  ;;  %v3384_v60 = vadd.f32 %v3316_v13, %v3315_v26  ;;  %v7590_v54 = vld [vmem:[%s12034_s11 + $0xd8] sm:$0xff]  ;;  %v7563_v22 = vld [vmem:[%s12032_s9 + $0xc0] sm:$0xff] }
 0x1ac   : > { %v2532_v31 = vrot.slane %v2531_v24, 1  ;;  %v2537_v8 = vrot.slane %v2536_v38, 2  ;;  %v10775_v3 = vpop.f32.mrb[77].mxu0  ;;  %v1543_v5 = vadd.f32 %v1542_v15, %v1541_v12  ;;  %v2335_v37 = vmul.f32 %v10668_v30, %v9509_v33  ;;  %6154 = vperm.xlu0 %9165, %v7588_v52  }
 0x1ad   : > { %v2542_v4 = vrot.slane %v2541_v7, 4  ;;  %v3318_v43 = vmul.f32 %v10623_v27, %v9531_v46  ;;  %v3380_v39 = vrot.slane %v3379_v20, 2  ;;  %v3385_v0 = vrot.slane %v3384_v60, 4 }
 0x1ae   : > { %v2533_v14 = vadd.f32 %v2532_v31, %v2531_v24  ;;  %v2538_v58 = vadd.f32 %v2537_v8, %v2536_v38  ;;  %5910 = vperm.xlu1 %9167, %v7553_v61   ;;  %v1549_v13 = vrot.slane %v10766_v23, 1  ;;  %v2334_v15 = vmul.f32 %v10676_v44, %v9507_v29  ;;  %v10802_v61 = vpop.permute.xlu0 %4105 }
 0x1af   : > { %v2543_v12 = vadd.f32 %v2542_v4, %v2541_v7  ;;  %v3317_v30 = vmul.f32 %v10627_v18, %v9529_v45  ;;  %v10791_v27 = vpop.f32.mrb[78].mxu0  ;;  %v3381_v38 = vadd.f32 %v3380_v39, %v3379_v20  ;;  %v3386_v50 = vadd.f32 %v3385_v0, %v3384_v60  ;;  %v10806_v20 = vpop.permute.xlu1 %3832  ;;  %v7620_v60 = vld [vmem:[%s12030_s7 + $0x108] sm:$0xff] }
 0x1b0   : > { %v10796_v9 = vadd.f32 %v2533_v14, %v1536_v41  ;;  %v2539_v24 = vrot.slane %v2538_v58, 1  ;;  %v10798_v26 = vpop.f32.mrb[79].mxu0  ;;  %v2548_v7 = vadd.f32 %v2335_v37, %v2334_v15  ;;  %v2337_v18 = vmul.f32 %v10694_v11, %v9509_v33  ;;  %6164 = vperm.xlu0 %9165, %v7590_v54  }
 0x1b1   : > { %v2544_v52 = vrot.slane %v2543_v12, 2  ;;  %v3391_v44 = vadd.f32 %v3318_v43, %v3317_v30  ;;  %v3382_v8 = vrot.slane %v3381_v38, 1  ;;  %v3387_v4 = vrot.slane %v3386_v50, 2 }
 0x1b2   : > { %v2540_v31 = vadd.f32 %v2539_v24, %v2538_v58  ;;  %v3320_v41 = vmul.f32 %v10651_v63, %v9531_v46  ;;  %5954 = vperm.xlu1 %9167, %v7563_v22   ;;  %v2549_v43 = vrot.slane %v2548_v7, 4  ;;  %v2336_v33 = vmul.f32 %v10703_v21, %v9507_v29  ;;  %v7565_v58 = vld [vmem:[%s12032_s9 + $0xd0] sm:$0xff] }
 0x1b3   : > { %v2545_v37 = vadd.f32 %v2544_v52, %v2543_v12  ;;  %v3392_v14 = vrot.slane %v3391_v44, 4  ;;  %v10813_v11 = vpop.f32.mrb[80].mxu0  ;;  %v3383_v39 = vadd.f32 %v3382_v8, %v3381_v38  ;;  %v3388_v0 = vadd.f32 %v3387_v4, %v3386_v50 }
 0x1b4   : > { %v10818_v63 = vadd.f32 %v2540_v31, %v1543_v5  ;;  %v3319_v54 = vmul.f32 %v10653_v47, %v9529_v45  ;;  %v10822_v15 = vpop.f32.mrb[81].mxu0  ;;  %v2550_v30 = vadd.f32 %v2549_v43, %v2548_v7  ;;  %v2555_v24 = vadd.f32 %v2337_v18, %v2336_v33  ;;  %6486 = vperm.xlu0 %9165, %v7620_v60   ;;  %v7592_v5 = vld [vmem:[%s12034_s11 + $0xe8] sm:$0xff]  ;;  %v10831_v7 = vpop.permute.xlu0 %4115 }
 0x1b5   : > { %v2546_v12 = vrot.slane %v2545_v37, 1  ;;  %v3393_v22 = vadd.f32 %v3392_v14, %v3391_v44  ;;  %v1550_v29 = vadd.f32 %v1549_v13, %v10766_v23  ;;  %v3601_v21 = vadd.f32 %v3383_v39, %v10126_v2  ;;  %v7567_v23 = vld [vmem:[%s12032_s9 + $0xe0] sm:$0xff] }
 0x1b6   : > { %v3389_v52 = vrot.slane %v3388_v0, 1  ;;  %v3398_v56 = vadd.f32 %v3320_v41, %v3319_v54  ;;  %5964 = vperm.xlu1 %9167, %v7565_v58   ;;  %v2551_v47 = vrot.slane %v2550_v30, 2  ;;  %v2556_v31 = vrot.slane %v2555_v24, 4  ;;  %v10842_v41 = vpop.permute.xlu1 %4090 }
 0x1b7   : > { %v2547_v38 = vadd.f32 %v2546_v12, %v2545_v37  ;;  %v3394_v50 = vrot.slane %v3393_v22, 2  ;;  %v10829_v8 = vpop.f32.mrb[82].mxu0  ;;  %v3322_v44 = vmul.f32 %v10678_v42, %v9531_v46  ;;  %v3321_v18 = vmul.f32 %v10688_v25, %v9529_v45  ;;  %v7622_v42 = vld [vmem:[%s12030_s7 + $0x118] sm:$0xff] }
 0x1b8   : > { %v3390_v2 = vadd.f32 %v3389_v52, %v3388_v0  ;;  %v3399_v13 = vrot.slane %v3398_v56, 4  ;;  %v10840_v4 = vpop.f32.mrb[83].mxu0  ;;  %v2552_v37 = vadd.f32 %v2551_v47, %v2550_v30  ;;  %v2557_v14 = vadd.f32 %v2556_v31, %v2555_v24  ;;  %6174 = vperm.xlu0 %9165, %v7592_v5   ;;  %v7569_v24 = vld [vmem:[%s12032_s9 + $0xf0] sm:$0xff] }
 0x1b9   : > { %v10844_v60 = vadd.f32 %v2547_v38, %v1550_v29  ;;  %v3395_v43 = vadd.f32 %v3394_v50, %v3393_v22  ;;  %v1563_v33 = vrot.slane %v10091_v40, 1  ;;  %v3405_v0 = vadd.f32 %v3322_v44, %v3321_v18 }
 0x1ba   : > { %v3602_v58 = vadd.f32 %v3390_v2, %v10136_v57  ;;  %v3400_v39 = vadd.f32 %v3399_v13, %v3398_v56  ;;  %5974 = vperm.xlu1 %9167, %v7567_v23   ;;  %v2553_v25 = vrot.slane %v2552_v37, 1  ;;  %v2558_v12 = vrot.slane %v2557_v14, 2  ;;  %v10867_v13 = vpop.permute.xlu1 %3837 }
 0x1bb   : > { %v3396_v54 = vrot.slane %v3395_v43, 1  ;;  %v3324_v30 = vmul.f32 %v10705_v32, %v9531_v46  ;;  %v10853_v22 = vpop.f32.mrb[84].mxu0  ;;  %v3406_v29 = vrot.slane %v3405_v0, 4  ;;  %v3323_v52 = vmul.f32 %v10713_v51, %v9529_v45  ;;  %v10863_v32 = vpop.permute.xlu0 %4157  ;;  %v7594_v51 = vld [vmem:[%s12034_s11 + $0xf8] sm:$0xff] }
 0x1bc   : > { %v3894_v57 = vsel %vm3893_vm0, %v3602_v58, %v3601_v21  ;;  %v3401_v56 = vrot.slane %v3400_v39, 2  ;;  %v10861_v5 = vpop.f32.mrb[85].mxu0  ;;  %v2554_v38 = vadd.f32 %v2553_v25, %v2552_v37  ;;  %v2559_v50 = vadd.f32 %v2558_v12, %v2557_v14  ;;  %6496 = vperm.xlu0 %9165, %v7622_v42   ;;  %v7587_v14 = vld [vmem:[%s12034_s11 + $0xc0] sm:$0xff] }
 0x1bd   : > { %v3397_v47 = vadd.f32 %v3396_v54, %v3395_v43  ;;  %v3407_v23 = vadd.f32 %v3406_v29, %v3405_v0  ;;  %v3412_v2 = vadd.f32 %v3324_v30, %v3323_v52  ;;  %v3326_v21 = vmul.f32 %v10724_v59, %v9531_v46 }
 0x1be   : > { %v3402_v31 = vadd.f32 %v3401_v56, %v3400_v39  ;;  %5984 = vperm.xlu1 %9167, %v7569_v24   ;;  %v10873_v44 = vadd.f32 %v2554_v38, %v10088_v34  ;;  %v2560_v37 = vrot.slane %v2559_v50, 1  ;;  %v3325_v0 = vmul.f32 %v10733_v55, %v9529_v45  ;;  %v7624_v56 = vld [vmem:[%s12030_s7 + $0x128] sm:$0xff] }
 0x1bf   : > { %v3603_v18 = vadd.f32 %v3397_v47, %v10156_v28  ;;  %v10876_v43 = vpop.f32.mrb[86].mxu0  ;;  %v3408_v58 = vrot.slane %v3407_v23, 2  ;;  %v3413_v39 = vrot.slane %v3412_v2, 4  ;;  %v1564_v34 = vadd.f32 %v1563_v33, %v10091_v40  ;;  %v10896_v33 = vpop.permute.xlu0 %4167 }
 0x1c0   : > { %v3403_v59 = vrot.slane %v3402_v31, 1  ;;  %v10883_v42 = vpop.f32.mrb[87].mxu0  ;;  %v2561_v28 = vadd.f32 %v2560_v37, %v2559_v50  ;;  %6184 = vperm.xlu0 %9165, %v7594_v51   ;;  %v3419_v24 = vadd.f32 %v3326_v21, %v3325_v0  ;;  %v3328_v55 = vmul.f32 %v10748_v62, %v9531_v46 }
 0x1c1   : > { %v3896_v25 = vsel %vm3895_vm12, %v3603_v18, %v3894_v57  ;;  %v3409_v12 = vadd.f32 %v3408_v58, %v3407_v23  ;;  %v3414_v30 = vadd.f32 %v3413_v39, %v3412_v2  ;;  %v7589_v57 = vld [vmem:[%s12034_s11 + $0xd0] sm:$0xff]  ;;  %v10904_v23 = vpop.permute.xlu1 %4100  ;;  %v3327_v62 = vmul.f32 %v10755_v1, %v9529_v45  ;;  %v7619_v58 = vld [vmem:[%s12030_s7 + $0x100] sm:$0xff] }
 0x1c2   : > { %v3404_v54 = vadd.f32 %v3403_v59, %v3402_v31  ;;  %6149 = vperm.xlu1 %9167, %v7587_v14   ;;  %v10890_v29 = vadd.f32 %v2561_v28, %v1564_v34  ;;  %v3420_v50 = vrot.slane %v3419_v24, 4  ;;  %v3330_v2 = vmul.f32 %v10768_v10, %v9531_v46  ;;  %v12103_v39 = vld [vmem:[#allocation11_spill] sm:$0xff] }
 0x1c3   : > { %v10894_v40 = vpop.f32.mrb[88].mxu0  ;;  %v3410_v38 = vrot.slane %v3409_v12, 1  ;;  %v3415_v47 = vrot.slane %v3414_v30, 2  ;;  %v3426_v14 = vadd.f32 %v3328_v55, %v3327_v62  ;;  %v3329_v59 = vmul.f32 %v10775_v3, %v9529_v45  ;;  %v7636_v55 = vld [vmem:[%s12032_s9 + $0x108] sm:$0xff]  ;;  %v7591_v62 = vld [vmem:[%s12034_s11 + $0xe0] sm:$0xff] }
 0x1c4   : > { %v3604_v52 = vadd.f32 %v3404_v54, %v10164_v53  ;;  %v10902_v31 = vpop.f32.mrb[89].mxu0  ;;  %6506 = vperm.xlu0 %9165, %v7624_v56   ;;  %v3421_v37 = vadd.f32 %v3420_v50, %v3419_v24  ;;  %v7626_v53 = vld [vmem:[%s12030_s7 + $0x138] sm:$0xff]  ;;  %v3332_v1 = vmul.f32 %v10791_v27, %v9531_v46 }
 0x1c5   : > { %v3411_v51 = vadd.f32 %v3410_v38, %v3409_v12  ;;  %v3416_v18 = vadd.f32 %v3415_v47, %v3414_v30  ;;  %v3427_v54 = vrot.slane %v3426_v14, 4  ;;  %v3433_v12 = vadd.f32 %v3330_v2, %v3329_v59  ;;  %v10926_v30 = vpop.permute.xlu0 %4177  ;;  %v10929_v56 = vpop.permute.xlu1 %4110  ;;  %v12104_v2 = vld [vmem:[#allocation13_spill] sm:$0xff] }
 0x1c6   : > { %v3898_v21 = vsel %vm3897_vm13, %v3604_v52, %v3896_v25  ;;  %6159 = vperm.xlu1 %9167, %v7589_v57   ;;  %v3422_v25 = vrot.slane %v3421_v37, 2  ;;  %v3331_v38 = vmul.f32 %v10798_v26, %v9529_v45  ;;  %v3334_v47 = vmul.f32 %v10813_v11, %v9531_v46 }
 0x1c7   : > { %v10918_v10 = vpop.f32.mrb[90].mxu0  ;;  %v3605_v0 = vadd.f32 %v3411_v51, %v12103_v39  ;;  %v3417_v34 = vrot.slane %v3416_v18, 1  ;;  %v3428_v57 = vadd.f32 %v3427_v54, %v3426_v14  ;;  %v3434_v52 = vrot.slane %v3433_v12, 4  ;;  %v7638_v39 = vld [vmem:[%s12032_s9 + $0x118] sm:$0xff] }
 0x1c8   : > { %v10924_v28 = vpop.f32.mrb[91].mxu0  ;;  %6516 = vperm.xlu0 %9165, %v7626_v53   ;;  %v3423_v24 = vadd.f32 %v3422_v25, %v3421_v37  ;;  %v3440_v14 = vadd.f32 %v3332_v1, %v3331_v38  ;;  %v3333_v26 = vmul.f32 %v10822_v15, %v9529_v45 }
 0x1c9   : > { %v3900_v3 = vsel %vm3899_vm14, %v3605_v0, %v3898_v21  ;;  %v3418_v27 = vadd.f32 %v3417_v34, %v3416_v18  ;;  %v3429_v37 = vrot.slane %v3428_v57, 2  ;;  %v3435_v53 = vadd.f32 %v3434_v52, %v3433_v12  ;;  %v10956_v15 = vpop.permute.xlu0 %4187  ;;  %v7621_v12 = vld [vmem:[%s12030_s7 + $0x110] sm:$0xff] }
 0x1ca   : > { %6481 = vperm.xlu1 %9167, %v7619_v58   ;;  %v3424_v51 = vrot.slane %v3423_v24, 1  ;;  %v3336_v58 = vmul.f32 %v10829_v8, %v9531_v46  ;;  %v3441_v25 = vrot.slane %v3440_v14, 4  ;;  %v3447_v1 = vadd.f32 %v3334_v47, %v3333_v26  ;;  %12105 = vst [vmem:[#allocation11_spill] sm:$0xff] %v10956_v15 }
 0x1cb   : > { %v10938_v50 = vpop.f32.mrb[92].mxu0  ;;  %v3606_v21 = vadd.f32 %v3418_v27, %v12104_v2  ;;  %v3430_v0 = vadd.f32 %v3429_v37, %v3428_v57  ;;  %v3436_v34 = vrot.slane %v3435_v53, 2  ;;  %v3335_v8 = vmul.f32 %v10840_v4, %v9529_v45  ;;  %v7640_v4 = vld [vmem:[%s12032_s9 + $0x128] sm:$0xff] }
 0x1cc   : > { %v10944_v18 = vpop.f32.mrb[93].mxu0  ;;  %6560 = vperm.xlu0 %9165, %v7636_v55   ;;  %v3425_v59 = vadd.f32 %v3424_v51, %v3423_v24  ;;  %v10966_v55 = vpop.permute.xlu1 %4152  ;;  %v3442_v38 = vadd.f32 %v3441_v25, %v3440_v14  ;;  %v3448_v47 = vrot.slane %v3447_v1, 4 }
 0x1cd   : > { %v3902_v11 = vsel %vm3901_vm15, %v3606_v21, %v3900_v3  ;;  %v12106_v3 = vld [vmem:[#allocation15_spill] sm:$0xff]  ;;  %v3431_v57 = vrot.slane %v3430_v0, 1  ;;  %v3437_v52 = vadd.f32 %v3436_v34, %v3435_v53  ;;  %v3454_v2 = vadd.f32 %v3336_v58, %v3335_v8  ;;  %v7593_v53 = vld [vmem:[%s12034_s11 + $0xf0] sm:$0xff] }
 0x1ce   : > { %6169 = vperm.xlu1 %9167, %v7591_v62   ;;  %v3607_v27 = vadd.f32 %v3425_v59, %v12106_v3  ;;  %v3338_v21 = vmul.f32 %v10853_v22, %v9531_v46  ;;  %v3443_v26 = vrot.slane %v3442_v38, 2  ;;  %v3449_v59 = vadd.f32 %v3448_v47, %v3447_v1 }
 0x1cf   : > { %v10954_v54 = vpop.f32.mrb[94].mxu0  ;;  %v3432_v51 = vadd.f32 %v3431_v57, %v3430_v0  ;;  %v3438_v37 = vrot.slane %v3437_v52, 1  ;;  %v3455_v14 = vrot.slane %v3454_v2, 4  ;;  %v3337_v22 = vmul.f32 %v10861_v5, %v9529_v45  ;;  %v7642_v5 = vld [vmem:[%s12032_s9 + $0x138] sm:$0xff] }
 0x1d0   : > { %v10964_v24 = vpop.f32.mrb[95].mxu0  ;;  %6570 = vperm.xlu0 %9165, %v7638_v39   ;;  %v3904_v62 = vsel %vm3903_vm1, %v3607_v27, %v3902_v11  ;;  %v3340_v11 = vmul.f32 %v10876_v43, %v9531_v46  ;;  %v12107_v39 = vld [vmem:[#allocation16_spill] sm:$0xff]  ;;  %v3444_v25 = vadd.f32 %v3443_v26, %v3442_v38  ;;  %v3450_v1 = vrot.slane %v3449_v59, 2  ;;  %v10990_v47 = vpop.permute.xlu1 %4162 }
 0x1d1   : > { %v3608_v0 = vadd.f32 %v3432_v51, %v12107_v39  ;;  %v3439_v34 = vadd.f32 %v3438_v37, %v3437_v52  ;;  %v3456_v27 = vadd.f32 %v3455_v14, %v3454_v2  ;;  %v3461_v8 = vadd.f32 %v3338_v21, %v3337_v22  ;;  %v12109_v52 = vld [vmem:[#allocation18_spill] sm:$0xff] }
 0x1d2   : > { %6491 = vperm.xlu1 %9167, %v7621_v12   ;;  %v10986_v12 = vpop.permute.xlu0 %4351  ;;  %v3339_v57 = vmul.f32 %v10883_v42, %v9529_v45  ;;  %v3445_v51 = vrot.slane %v3444_v25, 1  ;;  %v3451_v37 = vadd.f32 %v3450_v1, %v3449_v59  ;;  %v7623_v42 = vld [vmem:[%s12030_s7 + $0x120] sm:$0xff]  ;;  %v7660_v1 = vld [vmem:[%s12034_s11 + $0x108] sm:$0xff] }
 0x1d3   : > { %v10974_v3 = vpop.f32.mrb[96].mxu0  ;;  %12108 = vst [vmem:[#allocation13_spill] sm:$0xff] %v10986_v12  ;;  %v10996_v43 = vsel %vm3905_vm2, %v3608_v0, %v3904_v62  ;;  %v3609_v38 = vadd.f32 %v3439_v34, %v12109_v52  ;;  %v3457_v2 = vrot.slane %v3456_v27, 2  ;;  %v3462_v21 = vrot.slane %v3461_v8, 4 }
 0x1d4   : > { %v10983_v58 = vpop.f32.mrb[97].mxu0  ;;  %6580 = vperm.xlu0 %9165, %v7640_v4   ;;  %v3468_v26 = vadd.f32 %v3340_v11, %v3339_v57  ;;  %v3446_v62 = vadd.f32 %v3445_v51, %v3444_v25  ;;  %v3452_v22 = vrot.slane %v3451_v37, 1  ;;  %v3341_v34 = vmul.f32 %v10902_v31, %v9529_v45  ;;  %v12110_v11 = vld [vmem:[#allocation20_spill] sm:$0xff]  ;;  %v7625_v25 = vld [vmem:[%s12030_s7 + $0x130] sm:$0xff] }
 0x1d5   : > { %v3458_v39 = vadd.f32 %v3457_v2, %v3456_v27  ;;  %v3463_v0 = vadd.f32 %v3462_v21, %v3461_v8  ;;  %v12113_v21 = vld [vmem:[#allocation23_spill] sm:$0xff] }
 0x1d6   : > { %6179 = vperm.xlu1 %9167, %v7593_v53   ;;  %v3342_v53 = vmul.f32 %v10894_v40, %v9531_v46  ;;  %v3469_v59 = vrot.slane %v3468_v26, 4  ;;  %v3610_v57 = vadd.f32 %v3446_v62, %v12110_v11  ;;  %v3453_v52 = vadd.f32 %v3452_v22, %v3451_v37  ;;  %v11016_v12 = vpop.permute.xlu0 %4361 }
 0x1d7   : > { %v10999_v4 = vpop.f32.mrb[98].mxu0  ;;  %12111 = vst [vmem:[#allocation15_spill] sm:$0xff] %v11016_v12  ;;  %v3459_v27 = vrot.slane %v3458_v39, 1  ;;  %v3464_v8 = vrot.slane %v3463_v0, 2  ;;  %v3344_v62 = vmul.f32 %v10918_v10, %v9531_v46  ;;  %v7635_v10 = vld [vmem:[%s12032_s9 + $0x100] sm:$0xff] }
 0x1d8   : > { %v11006_v14 = vpop.f32.mrb[99].mxu0  ;;  %6590 = vperm.xlu0 %9165, %v7642_v5   ;;  %v3470_v5 = vadd.f32 %v3469_v59, %v3468_v26  ;;  %v3475_v31 = vadd.f32 %v3342_v53, %v3341_v34  ;;  %v3907_v2 = vsel %vm3893_vm0, %v3610_v57, %v3609_v38  ;;  %v3611_v37 = vadd.f32 %v3453_v52, %v12113_v21  ;;  %v7662_v26 = vld [vmem:[%s12034_s11 + $0x118] sm:$0xff] }
 0x1d9   : > { %v3460_v22 = vadd.f32 %v3459_v27, %v3458_v39  ;;  %v3465_v11 = vadd.f32 %v3464_v8, %v3463_v0  ;;  %v3343_v38 = vmul.f32 %v10924_v28, %v9529_v45  ;;  %v12114_v39 = vld [vmem:[#allocation25_spill] sm:$0xff]  ;;  %v3346_v27 = vmul.f32 %v10938_v50, %v9531_v46 }
 0x1da   : > { %6501 = vperm.xlu1 %9167, %v7623_v42   ;;  %v11023_v42 = vpop.permute.xlu1 %4172  ;;  %v3471_v12 = vrot.slane %v3470_v5, 2  ;;  %v3476_v15 = vrot.slane %v3475_v31, 4  ;;  %v3908_v53 = vsel %vm3895_vm12, %v3611_v37, %v3907_v2  ;;  %v11045_v8 = vpop.permute.xlu0 %4683 }
 0x1db   : > { %v11014_v40 = vpop.f32.mrb[100].mxu0  ;;  %12112 = vst [vmem:[#allocation16_spill] sm:$0xff] %v11023_v42  ;;  %v3612_v0 = vadd.f32 %v3460_v22, %v12114_v39  ;;  %v3466_v34 = vrot.slane %v3465_v11, 1  ;;  %12115 = vst [vmem:[#allocation18_spill] sm:$0xff] %v11045_v8 }
 0x1dc   : > { %v11021_v51 = vpop.f32.mrb[101].mxu0  ;;  %6755 = vperm.xlu0 %9165, %v7660_v1   ;;  %v3472_v1 = vadd.f32 %v3471_v12, %v3470_v5  ;;  %v3477_v57 = vadd.f32 %v3476_v15, %v3475_v31  ;;  %v6933_v15 = vld [vmem:[%s12035_s12] sm:$0xff]  ;;  %v3345_v5 = vmul.f32 %v10944_v18, %v9529_v45  ;;  %v7637_v31 = vld [vmem:[%s12032_s9 + $0x110] sm:$0xff] }
 0x1dd   : > { %v3909_v28 = vsel %vm3897_vm13, %v3612_v0, %v3908_v53  ;;  %v3467_v2 = vadd.f32 %v3466_v34, %v3465_v11  ;;  %v3348_v53 = vmul.f32 %v10954_v54, %v9531_v46  ;;  %v12118_v0 = vld [vmem:[#allocation30_spill] sm:$0xff] }
 0x1de   : > { %6511 = vperm.xlu1 %9167, %v7625_v25   ;;  %v3482_v25 = vadd.f32 %v3344_v62, %v3343_v38  ;;  %v3473_v21 = vrot.slane %v3472_v1, 1  ;;  %v3478_v37 = vrot.slane %v3477_v57, 2  ;;  %v11048_v42 = vpop.permute.xlu1 %4182  ;;  %v12117_v62 = vld [vmem:[#allocation28_spill] sm:$0xff]  ;;  %v3489_v39 = vadd.f32 %v3346_v27, %v3345_v5 }
 0x1df   : > { %v11035_v59 = vpop.f32.mrb[102].mxu0  ;;  %12116 = vst [vmem:[#allocation20_spill] sm:$0xff] %v11048_v42  ;;  %v3613_v22 = vadd.f32 %v3467_v2, %v12117_v62  ;;  %v3347_v42 = vmul.f32 %v10964_v24, %v9529_v45  ;;  %v11076_v2 = vpop.permute.xlu0 %4371  ;;  %v3352_v62 = vmul.f32 %v10999_v4, %v9531_v46 }
 0x1e0   : > { %v11041_v52 = vpop.f32.mrb[103].mxu0  ;;  %6765 = vperm.xlu0 %9165, %v7662_v26   ;;  %v3483_v12 = vrot.slane %v3482_v25, 4  ;;  %v3474_v11 = vadd.f32 %v3473_v21, %v3472_v1  ;;  %v3479_v26 = vadd.f32 %v3478_v37, %v3477_v57  ;;  %v7664_v1 = vld [vmem:[%s12034_s11 + $0x128] sm:$0xff]  ;;  %v3490_v54 = vrot.slane %v3489_v39, 4  ;;  %12119 = vst [vmem:[#allocation23_spill] sm:$0xff] %v11076_v2 }
 0x1e1   : > { %v3910_v18 = vsel %vm3899_vm14, %v3613_v22, %v3909_v28  ;;  %v7639_v28 = vld [vmem:[%s12032_s9 + $0x120] sm:$0xff]  ;;  %v3496_v37 = vadd.f32 %v3348_v53, %v3347_v42  ;;  %v12120_v22 = vld [vmem:[#allocation33_spill] sm:$0xff] }
 0x1e2   : > { %6555 = vperm.xlu1 %9167, %v7635_v10   ;;  %v3484_v10 = vadd.f32 %v3483_v12, %v3482_v25  ;;  %v3614_v34 = vadd.f32 %v3474_v11, %v12118_v0  ;;  %v3480_v8 = vrot.slane %v3479_v26, 1  ;;  %v3350_v25 = vmul.f32 %v10974_v3, %v9531_v46  ;;  %v11084_v12 = vpop.permute.xlu1 %4346  ;;  %v7665_v42 = vld [vmem:[%s12034_s11 + $0x130] sm:$0xff] }
 0x1e3   : > { %v11055_v50 = vpop.f32.mrb[104].mxu0  ;;  %v3349_v3 = vmul.f32 %v10983_v58, %v9529_v45  ;;  %v3497_v0 = vrot.slane %v3496_v37, 4  ;;  %v7641_v58 = vld [vmem:[%s12032_s9 + $0x130] sm:$0xff] }
 0x1e4   : > { %v11063_v38 = vpop.f32.mrb[105].mxu0  ;;  %6943 = vperm.xlu0 %9165, %v6933_v15   ;;  %v3485_v57 = vrot.slane %v3484_v10, 2  ;;  %v3911_v24 = vsel %vm3901_vm15, %v3614_v34, %v3910_v18  ;;  %v3481_v21 = vadd.f32 %v3480_v8, %v3479_v26  ;;  %v3351_v18 = vmul.f32 %v11006_v14, %v9529_v45  ;;  %v7666_v14 = vld [vmem:[%s12034_s11 + $0x138] sm:$0xff] }
 0x1e5   : > { %v3503_v53 = vadd.f32 %v3350_v25, %v3349_v3  ;;  %v3354_v3 = vmul.f32 %v11014_v40, %v9531_v46  ;;  %v7659_v40 = vld [vmem:[%s12034_s11 + $0x100] sm:$0xff] }
 0x1e6   : > { %6565 = vperm.xlu1 %9167, %v7637_v31   ;;  %v3486_v5 = vadd.f32 %v3485_v57, %v3484_v10  ;;  %v3491_v31 = vadd.f32 %v3490_v54, %v3489_v39  ;;  %v3615_v11 = vadd.f32 %v3481_v21, %v12120_v22  ;;  %v3498_v39 = vadd.f32 %v3497_v0, %v3496_v37  ;;  %v11108_v22 = vpop.permute.xlu1 %4356 }
 0x1e7   : > { %v11074_v27 = vpop.f32.mrb[106].mxu0  ;;  %v3504_v54 = vrot.slane %v3503_v53, 4  ;;  %v3510_v21 = vadd.f32 %v3352_v62, %v3351_v18  ;;  %12122 = vst [vmem:[#allocation28_spill] sm:$0xff] %v11108_v22 }
 0x1e8   : > { %v11082_v15 = vpop.f32.mrb[107].mxu0  ;;  %6775 = vperm.xlu0 %9165, %v7664_v1   ;;  %v3487_v8 = vrot.slane %v3486_v5, 1  ;;  %v3492_v26 = vrot.slane %v3491_v31, 2  ;;  %v3912_v4 = vsel %vm3903_vm1, %v3615_v11, %v3911_v24  ;;  %v3499_v25 = vrot.slane %v3498_v39, 2  ;;  %v12123_v24 = vld [vmem:[#allocation36_spill] sm:$0xff] }
 0x1e9   : > { %v3353_v11 = vmul.f32 %v11021_v51, %v9529_v45 }
 0x1ea   : > { %6575 = vperm.xlu1 %9167, %v7639_v28   ;;  %v3488_v1 = vadd.f32 %v3487_v8, %v3486_v5  ;;  %v3493_v57 = vadd.f32 %v3492_v26, %v3491_v31  ;;  %v11104_v28 = vpop.permute.xlu0 %4693  ;;  %v3505_v31 = vadd.f32 %v3504_v54, %v3503_v53  ;;  %v3500_v62 = vadd.f32 %v3499_v25, %v3498_v39  ;;  %v6938_v39 = vld [vmem:[%s12035_s12 + $0x28] sm:$0xff]  ;;  %v12124_v25 = vld [vmem:[#allocation38_spill] sm:$0xff] }
 0x1eb   : > { %v11094_v10 = vpop.f32.mrb[108].mxu0  ;;  %12121 = vst [vmem:[#allocation25_spill] sm:$0xff] %v11104_v28  ;;  %v3356_v8 = vmul.f32 %v11035_v59, %v9531_v46 }
 0x1ec   : > { %v11102_v34 = vpop.f32.mrb[109].mxu0  ;;  %6780 = vperm.xlu0 %9165, %v7665_v42   ;;  %v3616_v37 = vadd.f32 %v3488_v1, %v12123_v24  ;;  %v3494_v5 = vrot.slane %v3493_v57, 1  ;;  %v3511_v42 = vrot.slane %v3510_v21, 4  ;;  %v3506_v53 = vrot.slane %v3505_v31, 2 }
 0x1ed   : > { %v3517_v1 = vadd.f32 %v3354_v3, %v3353_v11  ;;  %v3501_v54 = vrot.slane %v3500_v62, 1 }
 0x1ee   : > { %6585 = vperm.xlu1 %9167, %v7641_v58   ;;  %v3913_v58 = vsel %vm3905_vm2, %v3616_v37, %v3912_v4  ;;  %v3495_v18 = vadd.f32 %v3494_v5, %v3493_v57  ;;  %v3512_v24 = vadd.f32 %v3511_v42, %v3510_v21  ;;  %v3507_v2 = vadd.f32 %v3506_v53, %v3505_v31  ;;  %v11137_v3 = vpop.permute.xlu0 %4381  ;;  %v11147_v31 = vpop.permute.xlu1 %4678 }
 0x1ef   : > { %v11116_v0 = vpop.f32.mrb[110].mxu0  ;;  %v11127_v51 = vpack.c.bf16 %v3913_v58, %v10996_v43  ;;  %v3518_v28 = vrot.slane %v3517_v1, 4  ;;  %v3355_v4 = vmul.f32 %v11041_v52, %v9529_v45  ;;  %12125 = vst [vmem:[#allocation30_spill] sm:$0xff] %v11137_v3  ;;  %v7661_v43 = vld [vmem:[%s12034_s11 + $0x110] sm:$0xff]  ;;  %v3502_v21 = vadd.f32 %v3501_v54, %v3500_v62  ;;  %12126 = vst [vmem:[#allocation33_spill] sm:$0xff] %v11147_v31 }
 0x1f0   : > { %v11123_v26 = vpop.f32.mrb[111].mxu0  ;;  %6785 = vperm.xlu0 %9165, %v7666_v14   ;;  %v3617_v59 = vadd.f32 %v3495_v18, %v12124_v25  ;;  %v3513_v14 = vrot.slane %v3512_v24, 2  ;;  %v3358_v37 = vmul.f32 %v11055_v50, %v9531_v46  ;;  %v3508_v52 = vrot.slane %v3507_v2, 1  ;;  %v12127_v62 = vld [vmem:[#allocation41_spill] sm:$0xff]  ;;  %v6940_v50 = vld [vmem:[%s12035_s12 + $0x38] sm:$0xff] }
 0x1f1   : > { %8793 = vmatprep.subr.bf16.mxu1 %v11127_v51  ;;  %v3519_v11 = vadd.f32 %v3518_v28, %v3517_v1  ;;  %v3357_v42 = vmul.f32 %v11063_v38, %v9529_v45  ;;  %v3618_v58 = vadd.f32 %v3502_v21, %v12127_v62  ;;  %v3360_v53 = vmul.f32 %v11074_v27, %v9531_v46  ;;  %v7663_v38 = vld [vmem:[%s12034_s11 + $0x120] sm:$0xff] }
 0x1f2   : > { %6750 = vperm.xlu1 %9167, %v7659_v40   ;;  %8795 = vmatpush3.bf16.msra.mxu1 %v11127_v51  ;;  %v3524_v40 = vadd.f32 %v3356_v8, %v3355_v4  ;;  %v3514_v18 = vadd.f32 %v3513_v14, %v3512_v24  ;;  %v3509_v54 = vadd.f32 %v3508_v52, %v3507_v2  ;;  %v11165_v52 = vpop.permute.xlu0 %4703  ;;  %v11169_v22 = vpop.permute.xlu1 %4366 }
 0x1f3   : > { %v11135_v57 = vpop.f32.mrb[112].mxu0  ;;  %v3520_v28 = vrot.slane %v3519_v11, 2  ;;  %v3531_v25 = vadd.f32 %v3358_v37, %v3357_v42  ;;  %v3359_v27 = vmul.f32 %v11082_v15, %v9529_v45  ;;  %12129 = vst [vmem:[#allocation36_spill] sm:$0xff] %v11165_v52  ;;  %v3362_v3 = vmul.f32 %v11094_v10, %v9531_v46 }
 0x1f4   : > { %v11145_v5 = vpop.f32.mrb[113].mxu0  ;;  %6968 = vperm.xlu0 %9165, %v6938_v39   ;;  %v3525_v1 = vrot.slane %v3524_v40, 4  ;;  %v3914_v39 = vsel %vm3893_vm0, %v3618_v58, %v3617_v59  ;;  %v3515_v24 = vrot.slane %v3514_v18, 1 }
 0x1f5   : > { %v3521_v14 = vadd.f32 %v3520_v28, %v3519_v11  ;;  %v3532_v2 = vrot.slane %v3531_v25, 4  ;;  %v3538_v42 = vadd.f32 %v3360_v53, %v3359_v27  ;;  %v6934_v11 = vld [vmem:[%s12035_s12 + $0x8] sm:$0xff]  ;;  %v3361_v53 = vmul.f32 %v11102_v34, %v9529_v45 }
 0x1f6   : > { %6760 = vperm.xlu1 %9167, %v7661_v43   ;;  %v12128_v43 = vld [vmem:[#allocation43_spill] sm:$0xff]  ;;  %v3526_v62 = vadd.f32 %v3525_v1, %v3524_v40  ;;  %v3516_v37 = vadd.f32 %v3515_v24, %v3514_v18  ;;  %v12130_v40 = vld [vmem:[#allocation46_spill] sm:$0xff] }
 0x1f7   : > { %v8387_v8 = vpop.f32.mrb[114].mxu0  ;;  %v3619_v21 = vadd.f32 %v3509_v54, %v12128_v43  ;;  %v3522_v15 = vrot.slane %v3521_v14, 1  ;;  %v3533_v31 = vadd.f32 %v3532_v2, %v3531_v25  ;;  %v3539_v18 = vrot.slane %v3538_v42, 4  ;;  %v12131_v43 = vld [vmem:[#allocation49_spill] sm:$0xff] }
 0x1f8   : > { %v3264_v4 = vpop.f32.mrb[115].mxu0  ;;  %6978 = vperm.xlu0 %9165, %v6940_v50   ;;  %v3527_v58 = vrot.slane %v3526_v62, 2  ;;  %v3620_v50 = vadd.f32 %v3516_v37, %v12130_v40  ;;  %v3545_v27 = vadd.f32 %v3362_v3, %v3361_v53  ;;  %v3363_v40 = vmul.f32 %v11123_v26, %v9529_v45  ;;  %v11189_v3 = vpop.permute.xlu1 %4688 }
 0x1f9   : > { %v3915_v59 = vsel %vm3895_vm12, %v3619_v21, %v3914_v39  ;;  %v3523_v28 = vadd.f32 %v3522_v15, %v3521_v14  ;;  %v3364_v39 = vmul.f32 %v11116_v0, %v9531_v46  ;;  %v3540_v24 = vadd.f32 %v3539_v18, %v3538_v42  ;;  %v6935_v14 = vld [vmem:[%s12035_s12 + $0x10] sm:$0xff] }
 0x1fa   : > { %6770 = vperm.xlu1 %9167, %v7663_v38   ;;  %v3528_v1 = vadd.f32 %v3527_v58, %v3526_v62  ;;  %v3534_v38 = vrot.slane %v3533_v31, 2  ;;  %v3916_v25 = vsel %vm3897_vm13, %v3620_v50, %v3915_v59  ;;  %v3546_v15 = vrot.slane %v3545_v27, 4 }
 0x1fb   : > { %v8390_v54 = vpop.f32.mrb[116].mxu0  ;;  %v3621_v21 = vadd.f32 %v3523_v28, %v12131_v43  ;;  %v3541_v62 = vrot.slane %v3540_v24, 2  ;;  %v3366_v0 = vmul.f32 %v11135_v57, %v9531_v46  ;;  %v3365_v18 = vmul.f32 %v11145_v5, %v9529_v45  ;;  %v12132_v28 = vld [vmem:[#allocation51_spill] sm:$0xff] }
 0x1fc   : > { %v3274_v10 = vpop.f32.mrb[117].mxu0  ;;  %v3529_v2 = vrot.slane %v3528_v1, 1  ;;  %v3535_v37 = vadd.f32 %v3534_v38, %v3533_v31  ;;  %v3547_v26 = vadd.f32 %v3546_v15, %v3545_v27  ;;  %v3368_v53 = vmul.f32 %v8387_v8, %v9531_v46 }
 0x1fd   : > { %v3917_v59 = vsel %vm3899_vm14, %v3621_v21, %v3916_v25  ;;  %v3542_v50 = vadd.f32 %v3541_v62, %v3540_v24  ;;  %v6936_v25 = vld [vmem:[%s12035_s12 + $0x18] sm:$0xff]  ;;  %v3367_v24 = vmul.f32 %v3264_v4, %v9529_v45  ;;  %v3369_v4 = vmul.f32 %v3274_v10, %v9529_v45 }
 0x1fe   : > { %6948 = vperm.xlu1 %9167, %v6934_v11   ;;  %v3530_v58 = vadd.f32 %v3529_v2, %v3528_v1  ;;  %v3536_v31 = vrot.slane %v3535_v37, 1  ;;  %v3552_v11 = vadd.f32 %v3364_v39, %v3363_v40  ;;  %v3548_v21 = vrot.slane %v3547_v26, 2  ;;  %v12133_v2 = vld [vmem:[#allocation54_spill] sm:$0xff] }
 0x1ff   : > { %v8393_v34 = vpop.f32.mrb[118].mxu0  ;;  %v3543_v1 = vrot.slane %v3542_v50, 1  ;;  %v3559_v39 = vadd.f32 %v3366_v0, %v3365_v18  ;;  %v3566_v15 = vadd.f32 %v3368_v53, %v3367_v24  ;;  %v3370_v0 = vmul.f32 %v8390_v54, %v9531_v46 }
 0x200   : > { %v3284_v42 = vpop.f32.mrb[119].mxu0  ;;  %v3622_v38 = vadd.f32 %v3530_v58, %v12132_v28  ;;  %v3537_v43 = vadd.f32 %v3536_v31, %v3535_v37  ;;  %v3553_v57 = vrot.slane %v3552_v11, 4  ;;  %v3549_v62 = vadd.f32 %v3548_v21, %v3547_v26  ;;  %v11202_v58 = vpop.permute.xlu1 %4376 }
 0x201   : > { %v3560_v37 = vrot.slane %v3559_v39, 4  ;;  %v3567_v53 = vrot.slane %v3566_v15, 4 }
 0x202   : > { %6953 = vperm.xlu1 %9167, %v6935_v14   ;;  %v3918_v5 = vsel %vm3901_vm15, %v3622_v38, %v3917_v59  ;;  %v3623_v8 = vadd.f32 %v3537_v43, %v12133_v2  ;;  %v3554_v40 = vadd.f32 %v3553_v57, %v3552_v11  ;;  %v3544_v14 = vadd.f32 %v3543_v1, %v3542_v50  ;;  %v6937_v59 = vld [vmem:[%s12035_s12 + $0x20] sm:$0xff] }
 0x203   : > { %v8396_v52 = vpop.f32.mrb[120].mxu0  ;;  %v3550_v50 = vrot.slane %v3549_v62, 1  ;;  %v3561_v26 = vadd.f32 %v3560_v37, %v3559_v39  ;;  %v3573_v57 = vadd.f32 %v3370_v0, %v3369_v4  ;;  %v3371_v1 = vmul.f32 %v3284_v42, %v9529_v45 }
 0x204   : > { %v3294_v27 = vpop.f32.mrb[121].mxu0  ;;  %v3919_v31 = vsel %vm3903_vm1, %v3623_v8, %v3918_v5  ;;  %v3555_v28 = vrot.slane %v3554_v40, 2  ;;  %v3624_v11 = vadd.f32 %v3544_v14, %v10690_v36  ;;  %v3568_v24 = vadd.f32 %v3567_v53, %v3566_v15  ;;  %v6939_v8 = vld [vmem:[%s12035_s12 + $0x30] sm:$0xff]  ;;  %v11222_v37 = vpop.permute.xlu1 %4698 }
 0x205   : > { %v3551_v10 = vadd.f32 %v3550_v50, %v3549_v62  ;;  %v3562_v21 = vrot.slane %v3561_v26, 2  ;;  %v3574_v2 = vrot.slane %v3573_v57, 4  ;;  %v3374_v39 = vmul.f32 %v8396_v52, %v9531_v46  ;;  %v3853_v52 = vld [vmem:[%s12029_s6] sm:$0xff] }
 0x206   : > { %6958 = vperm.xlu1 %9167, %v6936_v25   ;;  %v3556_v43 = vadd.f32 %v3555_v28, %v3554_v40  ;;  %v3372_v25 = vmul.f32 %v8393_v34, %v9531_v46  ;;  %v11214_v54 = vsel %vm3905_vm2, %v3624_v11, %v3919_v31  ;;  %v3569_v42 = vrot.slane %v3568_v24, 2  ;;  %8408 = vmatprep.mubr.msk.f32.mxu1 %vm3932_vm3, %v3853_v52 }
 0x207   : > { %v8399_v18 = vpop.f32.mrb[122].mxu0  ;;  %v3625_v34 = vadd.f32 %v3551_v10, %v10717_v49  ;;  %v3563_v40 = vadd.f32 %v3562_v21, %v3561_v26  ;;  %v3373_v14 = vmul.f32 %v3294_v27, %v9529_v45  ;;  %v3575_v15 = vadd.f32 %v3574_v2, %v3573_v57  ;;  %v7002_v26 = vld [vmem:[#allocation2] sm:$0x1] }
 0x208   : > { %v3304_v38 = vpop.f32.mrb[123].mxu0  ;;  %v3557_v5 = vrot.slane %v3556_v43, 1  ;;  %v3580_v36 = vadd.f32 %v3372_v25, %v3371_v1  ;;  %v3376_v28 = vmul.f32 %v8399_v18, %v9531_v46  ;;  %v3570_v4 = vadd.f32 %v3569_v42, %v3568_v24 }
 0x209   : > { %v3564_v0 = vrot.slane %v3563_v40, 1  ;;  %v3375_v49 = vmul.f32 %v3304_v38, %v9529_v45  ;;  %v3576_v27 = vrot.slane %v3575_v15, 2 }
 0x20a   : > { %6963 = vperm.xlu1 %9167, %v6937_v59   ;;  %v3558_v62 = vadd.f32 %v3557_v5, %v3556_v43  ;;  %v3581_v31 = vrot.slane %v3580_v36, 4  ;;  %v3587_v59 = vadd.f32 %v3374_v39, %v3373_v14  ;;  %v3571_v43 = vrot.slane %v3570_v4, 1 }
 0x20b   : > { %v3565_v53 = vadd.f32 %v3564_v0, %v3563_v40  ;;  %v3594_v46 = vadd.f32 %v3376_v28, %v3375_v49  ;;  %v3577_v25 = vadd.f32 %v3576_v27, %v3575_v15 }
 0x20c   : > { %v3626_v11 = vadd.f32 %v3558_v62, %v10746_v35  ;;  %v3582_v50 = vadd.f32 %v3581_v31, %v3580_v36  ;;  %v3588_v57 = vrot.slane %v3587_v59, 4  ;;  %v3572_v45 = vadd.f32 %v3571_v43, %v3570_v4  ;;  %v11233_v35 = vpop.permute.xlu1 %4708  ;;  %v3859_v43 = vld [vmem:[%s12029_s6 + $0x30] sm:$0xff] }
 0x20d   : > { %v3627_v10 = vadd.f32 %v3565_v53, %v10764_v48  ;;  %v3595_v21 = vrot.slane %v3594_v46, 4  ;;  %v3578_v24 = vrot.slane %v3577_v25, 1  ;;  %v3858_v53 = vld [vmem:[%s12029_s6 + $0x28] sm:$0xff] }
 0x20e   : > { %6973 = vperm.xlu1 %9167, %v6939_v8   ;;  %v3921_v18 = vsel %vm3893_vm0, %v3626_v11, %v3625_v34  ;;  %v3583_v1 = vrot.slane %v3582_v50, 2  ;;  %v3589_v38 = vadd.f32 %v3588_v57, %v3587_v59  ;;  %v3628_v36 = vadd.f32 %v3572_v45, %v10796_v9  ;;  %v3860_v57 = vld [vmem:[%s12029_s6 + $0x38] sm:$0xff] }
 0x20f   : > { %v3922_v2 = vsel %vm3895_vm12, %v3627_v10, %v3921_v18  ;;  %v3596_v8 = vadd.f32 %v3595_v21, %v3594_v46  ;;  %v3579_v40 = vadd.f32 %v3578_v24, %v3577_v25  ;;  %v4126_v46 = vld [vmem:[%s12031_s8] sm:$0xff] }
 0x210   : > { %v3584_v5 = vadd.f32 %v3583_v1, %v3582_v50  ;;  %v3590_v39 = vrot.slane %v3589_v38, 2  ;;  %v3923_v42 = vsel %vm3897_vm13, %v3628_v36, %v3922_v2  ;;  %v12134_v18 = vld [vmem:[#allocation8_spill] sm:$0xff] }
 0x211   : > { %v3597_v48 = vrot.slane %v3596_v8, 2  ;;  %v3629_v62 = vadd.f32 %v3579_v40, %v10818_v63  ;;  %v3727_v25 = vsub.s32 1, %v12134_v18  ;;  %v9168_v1 = vld [vmem:[%s9394_s25] sm:$0xff]  ;;  %v3779_v45 = vsub.s32 2, %v12134_v18  ;;  %s7028_s25 = sshll.u32 %s528_s13, 4  ;;  %s11978_s25 = int_to_ptr.vmem [resolvable:$true] %s7028_s25 }
 0x212   : > { %7005 = vperm.xlu1 %9167, %v7002_v26   ;;  %v3585_v34 = vrot.slane %v3584_v5, 1  ;;  %v3591_v14 = vadd.f32 %v3590_v39, %v3589_v38  ;;  %v12135_v38 = vld [vmem:[#allocation9_spill] sm:$0xff]  ;;  %v12136_v24 = vld [vmem:[#allocation12_spill] sm:$0xff]  ;;  %s9169_s29 = scalar_lea.vmem %s11978_s25, 16  ;;  %p9176_p1 = scmp.lt.s32.totalorder %s11978_s25, %s9174_s0 }
 0x213   : > { %v3598_v28 = vadd.f32 %v3597_v48, %v3596_v8  ;;  %v3924_v52 = vsel %vm3899_vm14, %v3629_v62, %v3923_v42  ;;  %v3728_v10 = vrot.slane %v9168_v1, %v3727_v25  ;;  %v3684_v21 = vrot.slane %v9168_v1, %v12135_v38  ;;  %v12137_v36 = vld [vmem:[#allocation40_spill] sm:$0xff]  ;;  %v12138_v8 = vld [vmem:[#allocation10_spill] sm:$0xff]  ;;  %v12141_v62 = vld [vmem:[#allocation19_spill] sm:$0xff]  ;;  %p9170_p12 = scmp.ne.s32.totalorder %s11978_s25, %s9169_s29  ;;  %p9177_p2 = scmp.lt.s32.totalorder %s9175_s1, %s9169_s29 }
 0x214   : > { %v3586_v15 = vadd.f32 %v3585_v34, %v3584_v5  ;;  %v3592_v31 = vrot.slane %v3591_v14, 1  ;;  %v3780_v2 = vrot.slane %v9168_v1, %v3779_v45  ;;  %v12139_v34 = vld [vmem:[#allocation37_spill] sm:$0xff]  ;;  %v12151_v1 = vld [vmem:[#allocation39_spill] sm:$0xff] }
 0x215   : > { %v3599_v59 = vrot.slane %v3598_v28, 1  ;;  %v3730_v5 = vmul.f32 %v3728_v10, %v12136_v24  ;;  %v3686_v39 = vmul.f32 %v3684_v21, %v12137_v36  ;;  %v3729_v40 = vmul.f32 %v3728_v10, %v12138_v8  ;;  %v12152_v36 = vld [vmem:[#allocation27_spill] sm:$0xff]  ;;  %v12153_v8 = vld [vmem:[#allocation34_spill] sm:$0xff]  ;;  %p9171_p13 = pnand %p9170_p12, %p9372_p4  ;;  %p9178_p3 = por %p9177_p2, %p9176_p1 }
 0x216   : > { %v3630_v0 = vadd.f32 %v3586_v15, %v10844_v60  ;;  %v3593_v4 = vadd.f32 %v3592_v31, %v3591_v14  ;;  %v3854_v60 = vld [vmem:[%s12029_s6 + $0x8] sm:$0xff]  ;;  %v3685_v42 = vmul.f32 %v3684_v21, %v12139_v34  ;;  %v3731_v15 = vmul.f32 %v3728_v10, %v12141_v62  ;;  %v12142_v31 = vld [vmem:[#allocation14_spill] sm:$0xff] }
 0x217   : > { %v3600_v11 = vadd.f32 %v3599_v59, %v3598_v28  ;;  %v12140_v14 = vld [vmem:[#allocation17_spill] sm:$0xff]  ;;  %v3782_v28 = vmul.f32 %v3780_v2, %v12142_v31  ;;  %v12144_v59 = vld [vmem:[#allocation44_spill] sm:$0xff]  ;;  %v3734_v45 = vmul.f32 %v3728_v10, %v12151_v1  ;;  %p9172_p0 = pneg %p9171_p13 }
 0x218   : > { %v3925_v9 = vsel %vm3901_vm15, %v3630_v0, %v3924_v52  ;;  %v3631_v49 = vadd.f32 %v3593_v4, %v10873_v44  ;;  %v3855_v44 = vld [vmem:[%s12029_s6 + $0x10] sm:$0xff]  ;;  %v3687_v48 = vmul.f32 %v3684_v21, %v12140_v14  ;;  %v3738_v4 = vadd.f32 %v3730_v5, %v3686_v39 }
 0x219   : > { %v3632_v50 = vadd.f32 %v3600_v11, %v10890_v29  ;;  %v3856_v29 = vld [vmem:[%s12029_s6 + $0x18] sm:$0xff]  ;;  %v3786_v39 = vmul.f32 %v3780_v2, %v12152_v36  ;;  %p9179_p5 = pnand %p9178_p3, %p9172_p0 }
 0x21a   : > { %v3926_v27 = vsel %vm3903_vm1, %v3631_v49, %v3925_v9  ;;  %v12143_v52 = vld [vmem:[#allocation22_spill] sm:$0xff]  ;;  %v3688_v9 = vmul.f32 %v3684_v21, %v12144_v59  ;;  %v12145_v49 = vld [vmem:[#allocation21_spill] sm:$0xff]  ;;  %v3790_v24 = vadd.f32 %v3782_v28, %v3738_v4 }
 0x21b   : > { %v3927_v63 = vsel %vm3905_vm2, %v3632_v50, %v3926_v27  ;;  %v3732_v0 = vmul.f32 %v3728_v10, %v12143_v52  ;;  %v3781_v11 = vmul.f32 %v3780_v2, %v12145_v49  ;;  %v3737_v27 = vadd.f32 %v3729_v40, %v3685_v42  ;;  %v12146_v50 = vld [vmem:[#allocation24_spill] sm:$0xff]  ;;  %v12154_v42 = vld [vmem:[#allocation53_spill] sm:$0xff]  ;;  %v12156_v59 = vld [vmem:[#allocation42_spill] sm:$0xff] }
 0x21c   : > { %v11247_v26 = vpack.c.bf16 %v3927_v63, %v11214_v54  ;;  %v3857_v54 = vld [vmem:[%s12029_s6 + $0x20] sm:$0xff]  ;;  %v3783_v63 = vmul.f32 %v3780_v2, %v12146_v50  ;;  %v3736_v40 = vmul.f32 %v3728_v10, %v12153_v8  ;;  %v3692_v14 = vmul.f32 %v3684_v21, %v12154_v42  ;;  %v12158_v4 = vld [vmem:[#allocation29_spill] sm:$0xff] }
 0x21d   : > { %v3740_v25 = vadd.f32 %v3732_v0, %v3688_v9  ;;  %v3789_v5 = vadd.f32 %v3781_v11, %v3737_v27  ;;  %v3785_v49 = vmul.f32 %v3780_v2, %v12156_v59  ;;  %v12157_v50 = vld [vmem:[#allocation55_spill] sm:$0xff]  ;;  %v3735_v9 = vmul.f32 %v3728_v10, %v10715_v16 }
 0x21e   : > { %8797 = vmatprep.subr.bf16.mxu1 %v11247_v26  ;;  %v3691_v0 = vmul.f32 %v3684_v21, %v12157_v50  ;;  %v3787_v16 = vmul.f32 %v3780_v2, %v10741_v19 }
 0x21f   : > { %8799 = vmatpush3.bf16.msra.mxu1 %v11247_v26  ;;  %v3845_v11 = vadd.f32 %v12158_v4, %v3789_v5 }
 0x220   : > { %v3743_v1 = vadd.f32 %v3735_v9, %v3691_v0 }
 0x222   : > { %8409 = vmatmul.mubr.msk.f32.vlgmr.msra.gmra.mrb[68].mxu1 %vm3932_vm3, %v3854_v60  ;;  %v3739_v60 = vadd.f32 %v3731_v15, %v3687_v48  ;;  %v12155_v15 = vld [vmem:[#allocation47_spill] sm:$0xff]  ;;  %v3795_v19 = vadd.f32 %v3787_v16, %v3743_v1 }
 0x223   : > { %8411 = vmatprep.mubr.msk.f32.mxu1 %vm3932_vm3, %v3855_v44  ;;  %v12147_v44 = vld [vmem:[#allocation31_spill] sm:$0xff]  ;;  %v3846_v31 = vadd.f32 %v12155_v15, %v3790_v24 }
 0x224   : > { %v3791_v34 = vadd.f32 %v3783_v63, %v3739_v60  ;;  %v3744_v60 = vadd.f32 %v3736_v40, %v3692_v14  ;;  %v12163_v14 = vld [vmem:[#allocation56_spill] sm:$0xff]  ;;  %v3851_v9 = vadd.f32 %v10867_v13, %v3795_v19 }
 0x225   : > { %v4320_v1 = vld [vmem:[%s12033_s10] sm:$0xff] }
 0x226   : > { %8412 = vmatmul.mubr.msk.f32.gmra.mrb[70].mxu1 %vm3932_vm3, %v3856_v29  ;;  %v3733_v29 = vmul.f32 %v3728_v10, %v12147_v44  ;;  %v12162_v10 = vld [vmem:[#allocation50_spill] sm:$0xff] }
 0x227   : > { %8414 = vmatprep.mubr.msk.f32.mxu1 %vm3932_vm3, %v3857_v54  ;;  %v12148_v54 = vld [vmem:[#allocation26_spill] sm:$0xff] }
 0x22a   : > { %8415 = vmatmul.mubr.msk.f32.gmra.mrb[72].mxu1 %vm3932_vm3, %v3858_v53  ;;  %v3784_v53 = vmul.f32 %v3780_v2, %v12148_v54  ;;  %v12159_v54 = vld [vmem:[#allocation45_spill] sm:$0xff] }
 0x22b   : > { %8417 = vmatprep.mubr.msk.f32.mxu1 %vm3932_vm3, %v3859_v43  ;;  %v12149_v43 = vld [vmem:[#allocation32_spill] sm:$0xff]  ;;  %v3847_v63 = vadd.f32 %v12159_v54, %v3791_v34 }
 0x22c   : > { %v3792_v52 = vadd.f32 %v3784_v53, %v3740_v25 }
 0x22e   : > { %8418 = vmatmul.mubr.msk.f32.gmra.mrb[74].mxu1 %vm3932_vm3, %v3860_v57  ;;  %v3689_v57 = vmul.f32 %v3684_v21, %v12149_v43 }
 0x22f   : > { %8436 = vmatprep.mubr.msk.f32.mxu1 %vm4190_vm4, %v4126_v46  ;;  %v12150_v46 = vld [vmem:[#allocation35_spill] sm:$0xff] }
 0x230   : > { %v3690_v18 = vmul.f32 %v3684_v21, %v12150_v46  ;;  %v3741_v48 = vadd.f32 %v3733_v29, %v3689_v57  ;;  %v12160_v29 = vld [vmem:[#allocation48_spill] sm:$0xff]  ;;  %v3788_v46 = vmul.f32 %v3780_v2, %v10777_v6 }
 0x231   : > { %v3848_v57 = vadd.f32 %v12160_v29, %v3792_v52 }
 0x232   : > { %v3742_v62 = vadd.f32 %v3734_v45, %v3690_v18  ;;  %v12161_v18 = vld [vmem:[#allocation52_spill] sm:$0xff]  ;;  %v3793_v21 = vadd.f32 %v3785_v49, %v3741_v48  ;;  %v3796_v6 = vadd.f32 %v3788_v46, %v3744_v60 }
 0x233   : > { %v4130_v46 = vld [vmem:[%s12031_s8 + $0x20] sm:$0xff] }
 0x234   : > { %v3794_v53 = vadd.f32 %v3786_v39, %v3742_v62  ;;  %v3849_v48 = vadd.f32 %v12163_v14, %v3793_v21  ;;  %v4133_v21 = vld [vmem:[%s12031_s8 + $0x38] sm:$0xff] }
 0x236   : > { %v3850_v39 = vadd.f32 %v10806_v20, %v3794_v53  ;;  %v4131_v53 = vld [vmem:[%s12031_s8 + $0x28] sm:$0xff] }
 0x2f5   : > { %v8410_v28 = vpop.f32.mrb[68].mxu1 }
 0x2f6   : > { %v4063_v27 = vadd.f32 %v8410_v28, %v3846_v31  ;;  %v4023_v44 = vpop.f32.mrb[69].mxu1 }
 0x2f7   : > { %v4062_v43 = vadd.f32 %v4023_v44, %v3845_v11 }
 0x2f8   : > { %v11315_v25 = vadd.f32 %v12161_v18, %v4063_v27  ;;  %v4132_v18 = vld [vmem:[%s12031_s8 + $0x30] sm:$0xff] }
 0x2f9   : > { %v11319_v45 = vadd.f32 %v12162_v10, %v4062_v43  ;;  %v8413_v24 = vpop.f32.mrb[70].mxu1 }
 0x2fa   : > { %v4135_v5 = vmax.f32 %v11315_v25, 0.0  ;;  %v4065_v36 = vadd.f32 %v8413_v24, %v3848_v57  ;;  %v4033_v8 = vpop.f32.mrb[71].mxu1  ;;  %v4127_v57 = vld [vmem:[%s12031_s8 + $0x8] sm:$0xff] }
 0x2fb   : > { %v4134_v40 = vmax.f32 %v11319_v45, 0.0  ;;  %v4064_v34 = vadd.f32 %v4033_v8, %v3847_v63 }
 0x2fc   : > { %v11325_v42 = vadd.f32 %v10735_v17, %v4065_v36  ;;  %v12164_v17 = vld [vmem:[#allocation57_spill] sm:$0xff] }
 0x2fd   : > { %v11329_v2 = vadd.f32 %v10842_v41, %v4064_v34  ;;  %v8416_v62 = vpop.f32.mrb[72].mxu1  ;;  %v8800_v15 = vpack.c.bf16 %v4135_v5, %v4134_v40  ;;  %v3852_v0 = vadd.f32 %v12164_v17, %v3796_v6 }
 0x2fe   : > { %v4137_v31 = vmax.f32 %v11325_v42, 0.0  ;;  %v4067_v52 = vadd.f32 %v8416_v62, %v3850_v39  ;;  %v4043_v59 = vpop.f32.mrb[73].mxu1 }
 0x2ff   : > { %v4136_v49 = vmax.f32 %v11329_v2, 0.0  ;;  %v4066_v50 = vadd.f32 %v4043_v59, %v3849_v48  ;;  %8801 = vmatprep.subr.bf16.mxu1 %v8800_v15 }
 0x300   : > { %v11334_v20 = vadd.f32 %v10802_v61, %v4067_v52  ;;  %8803 = vmatpush3.bf16.msra.mxu1 %v8800_v15  ;;  %v12165_v52 = vld [vmem:[#allocation16_spill] sm:$0xff] }
 0x301   : > { %v11339_v41 = vadd.f32 %v10904_v23, %v4066_v50  ;;  %v8419_v28 = vpop.f32.mrb[74].mxu1  ;;  %v8804_v4 = vpack.c.bf16 %v4137_v31, %v4136_v49 }
 0x302   : > { %v4139_v11 = vmax.f32 %v11334_v20, 0.0  ;;  %v4069_v27 = vadd.f32 %v8419_v28, %v3852_v0  ;;  %v4053_v44 = vpop.f32.mrb[75].mxu1 }
 0x303   : > { %v4138_v54 = vmax.f32 %v11339_v41, 0.0  ;;  %v4068_v63 = vadd.f32 %v4053_v44, %v3851_v9  ;;  %8805 = vmatprep.subr.bf16.mxu1 %v8804_v4  ;;  %v12167_v9 = vld [vmem:[#allocation20_spill] sm:$0xff]  ;;  %v4322_v44 = vld [vmem:[%s12033_s10 + $0x10] sm:$0xff] }
 0x304   : > { %v11344_v61 = vadd.f32 %v10831_v7, %v4069_v27  ;;  %8807 = vmatpush3.bf16.msra.mxu1 %v8804_v4  ;;  %v4128_v7 = vld [vmem:[%s12031_s8 + $0x10] sm:$0xff]  ;;  %v4321_v27 = vld [vmem:[%s12033_s10 + $0x8] sm:$0xff] }
 0x305   : > { %v11347_v60 = vadd.f32 %v10929_v56, %v4068_v63  ;;  %v8808_v13 = vpack.c.bf16 %v4139_v11, %v4138_v54  ;;  %v4129_v56 = vld [vmem:[%s12031_s8 + $0x18] sm:$0xff]  ;;  %v4324_v63 = vld [vmem:[%s12033_s10 + $0x20] sm:$0xff] }
 0x306   : > { %v4141_v23 = vmax.f32 %v11344_v61, 0.0  ;;  %v4323_v54 = vld [vmem:[%s12033_s10 + $0x18] sm:$0xff] }
 0x307   : > { %v4140_v43 = vmax.f32 %v11347_v60, 0.0  ;;  %8809 = vmatprep.subr.bf16.mxu1 %v8808_v13 }
 0x308   : > { %8811 = vmatpush3.bf16.msra.mxu1 %v8808_v13  ;;  %v4325_v13 = vld [vmem:[%s12033_s10 + $0x28] sm:$0xff] }
 0x309   : > { %v8812_v29 = vpack.c.bf16 %v4141_v23, %v4140_v43  ;;  %v4326_v23 = vld [vmem:[%s12033_s10 + $0x30] sm:$0xff]  ;;  %v4327_v43 = vld [vmem:[%s12033_s10 + $0x38] sm:$0xff] }
 0x30b   : > { %8813 = vmatprep.subr.bf16.mxu1 %v8812_v29 }
 0x30c   : > { %8815 = vmatpush3.bf16.msra.mxu1 %v8812_v29  ;;  %v7387_v29 = vld [vmem:[%s12029_s6 + $0x40] sm:$0xff] }
 0x30f   : > { %8437 = vmatmul.mubr.msk.f32.vlgmr.msra.gmra.mrb[76].mxu1 %vm4190_vm4, %v4127_v57  ;;  %v7388_v57 = vld [vmem:[%s12029_s6 + $0x48] sm:$0xff] }
 0x310   : > { %8439 = vmatprep.mubr.msk.f32.mxu1 %vm4190_vm4, %v4128_v7  ;;  %v7389_v7 = vld [vmem:[%s12029_s6 + $0x50] sm:$0xff] }
 0x313   : > { %8440 = vmatmul.mubr.msk.f32.gmra.mrb[78].mxu1 %vm4190_vm4, %v4129_v56  ;;  %v7390_v56 = vld [vmem:[%s12029_s6 + $0x58] sm:$0xff] }
 0x314   : > { %8442 = vmatprep.mubr.msk.f32.mxu1 %vm4190_vm4, %v4130_v46  ;;  %v7391_v46 = vld [vmem:[%s12029_s6 + $0x60] sm:$0xff] }
 0x317   : > { %8443 = vmatmul.mubr.msk.f32.gmra.mrb[80].mxu1 %vm4190_vm4, %v4131_v53  ;;  %v7392_v53 = vld [vmem:[%s12029_s6 + $0x68] sm:$0xff] }
 0x318   : > { %8445 = vmatprep.mubr.msk.f32.mxu1 %vm4190_vm4, %v4132_v18  ;;  %v7393_v18 = vld [vmem:[%s12029_s6 + $0x70] sm:$0xff] }
 0x31b   : > { %8446 = vmatmul.mubr.msk.f32.gmra.mrb[82].mxu1 %vm4190_vm4, %v4133_v21  ;;  %v7394_v21 = vld [vmem:[%s12029_s6 + $0x78] sm:$0xff] }
 0x31c   : > { %8464 = vmatprep.mubr.msk.f32.mxu1 %vm4190_vm4, %v4320_v1  ;;  %v7411_v1 = vld [vmem:[%s12031_s8 + $0x40] sm:$0xff] }
 0x3e2   : > { %v8438_v16 = vpop.f32.mrb[76].mxu1 }
 0x3e3   : > { %v4287_v10 = vadd.f32 %v8438_v16, %v10863_v32  ;;  %v4281_v24 = vpop.f32.mrb[77].mxu1  ;;  %v12168_v16 = vld [vmem:[#allocation13_spill] sm:$0xff] }
 0x3e4   : > { %v4282_v5 = vadd.f32 %v4281_v24, %v10966_v55 }
 0x3e5   : > { %v4329_v36 = vmax.f32 %v4287_v10, 0.0  ;;  %v8994_v10 = vadd.f32 %v12168_v16, %v11315_v25  ;;  %v7435_v16 = vld [vmem:[%s12033_s10 + $0x40] sm:$0xff] }
 0x3e6   : > { %v4328_v8 = vmax.f32 %v4282_v5, 0.0  ;;  %v8441_v40 = vpop.f32.mrb[78].mxu1  ;;  %v8996_v5 = vadd.f32 %v11084_v12, %v11319_v45 }
 0x3e7   : > { %v4297_v34 = vadd.f32 %v8441_v40, %v10896_v33  ;;  %v4291_v6 = vpop.f32.mrb[79].mxu1  ;;  %v12166_v33 = vld [vmem:[#allocation11_spill] sm:$0xff] }
 0x3e8   : > { %v8816_v39 = vpack.c.bf16 %v4329_v36, %v4328_v8  ;;  %v4292_v14 = vadd.f32 %v4291_v6, %v10990_v47 }
 0x3e9   : > { %v4331_v48 = vmax.f32 %v4297_v34, 0.0  ;;  %v12169_v34 = vld [vmem:[#allocation18_spill] sm:$0xff] }
 0x3ea   : > { %v4330_v19 = vmax.f32 %v4292_v14, 0.0  ;;  %v8444_v62 = vpop.f32.mrb[80].mxu1  ;;  %8817 = vmatprep.subr.bf16.mxu1 %v8816_v39 }
 0x3eb   : > { %v4307_v15 = vadd.f32 %v8444_v62, %v10926_v30  ;;  %v4301_v31 = vpop.f32.mrb[81].mxu1  ;;  %8819 = vmatpush3.bf16.msra.mxu1 %v8816_v39  ;;  %v12170_v39 = vld [vmem:[#allocation15_spill] sm:$0xff] }
 0x3ec   : > { %v8820_v32 = vpack.c.bf16 %v4331_v48, %v4330_v19  ;;  %v4302_v55 = vadd.f32 %v4301_v31, %v12165_v52  ;;  %v8998_v14 = vadd.f32 %v12170_v39, %v11325_v42  ;;  %v12171_v48 = vld [vmem:[#allocation33_spill] sm:$0xff] }
 0x3ed   : > { %v4333_v59 = vmax.f32 %v4307_v15, 0.0  ;;  %v12172_v15 = vld [vmem:[#allocation28_spill] sm:$0xff] }
 0x3ee   : > { %v4332_v49 = vmax.f32 %v4302_v55, 0.0  ;;  %v8447_v50 = vpop.f32.mrb[82].mxu1  ;;  %8821 = vmatprep.subr.bf16.mxu1 %v8820_v32  ;;  %v9000_v25 = vadd.f32 %v12172_v15, %v11329_v2  ;;  %v12173_v55 = vld [vmem:[#allocation25_spill] sm:$0xff]  ;;  %v9004_v2 = vadd.f32 %v11169_v22, %v11339_v41  ;;  %v9008_v41 = vadd.f32 %v11202_v58, %v11347_v60 }
 0x3ef   : > { %v4317_v17 = vadd.f32 %v8447_v50, %v12166_v33  ;;  %v4311_v0 = vpop.f32.mrb[83].mxu1  ;;  %8823 = vmatpush3.bf16.msra.mxu1 %v8820_v32 }
 0x3f0   : > { %v8824_v47 = vpack.c.bf16 %v4333_v59, %v4332_v49  ;;  %v4312_v28 = vadd.f32 %v4311_v0, %v12167_v9  ;;  %v12174_v49 = vld [vmem:[#allocation23_spill] sm:$0xff] }
 0x3f1   : > { %v4335_v4 = vmax.f32 %v4317_v17, 0.0  ;;  %v9002_v42 = vadd.f32 %v12174_v49, %v11334_v20 }
 0x3f2   : > { %v4334_v11 = vmax.f32 %v4312_v28, 0.0  ;;  %8825 = vmatprep.subr.bf16.mxu1 %v8824_v47 }
 0x3f3   : > { %8827 = vmatpush3.bf16.msra.mxu1 %v8824_v47 }
 0x3f4   : > { %v8828_v30 = vpack.c.bf16 %v4335_v4, %v4334_v11  ;;  %v12175_v11 = vld [vmem:[#allocation36_spill] sm:$0xff] }
 0x3f6   : > { %8829 = vmatprep.subr.bf16.mxu1 %v8828_v30 }
 0x3f7   : > { %8831 = vmatpush3.bf16.msra.mxu1 %v8828_v30 }
 0x3f8   : > { %8833 = vmatprep.subr.bf16.mxu1 %v11127_v51 }
 0x3fa   : > { %8465 = vmatmul.mubr.msk.f32.vlgmr.msra.gmra.mrb[84].mxu1 %vm4190_vm4, %v4321_v27 }
 0x3fb   : > { %8835 = vmatpush3.bf16.msra.mxu1 %v11127_v51  ;;  %8467 = vmatprep.mubr.msk.f32.mxu1 %vm4190_vm4, %v4322_v44 }
 0x3fc   : > { %8837 = vmatprep.subr.bf16.mxu1 %v11247_v26 }
 0x3fe   : > { %8468 = vmatmul.mubr.msk.f32.gmra.mrb[86].mxu1 %vm4190_vm4, %v4323_v54 }
 0x3ff   : > { %8839 = vmatpush3.bf16.msra.mxu1 %v11247_v26  ;;  %8470 = vmatprep.mubr.msk.f32.mxu1 %vm4190_vm4, %v4324_v63 }
 0x402   : > { %8471 = vmatmul.mubr.msk.f32.gmra.mrb[88].mxu1 %vm4190_vm4, %v4325_v13 }
 0x403   : > { %8473 = vmatprep.mubr.msk.f32.mxu1 %vm4190_vm4, %v4326_v23  ;;  %v4714_v23 = vpop.permute.xlu0 %4713 }
 0x406   : > { %8474 = vmatmul.mubr.msk.f32.gmra.mrb[90].mxu1 %vm4190_vm4, %v4327_v43 }
 0x407   : > { %8484 = vmatprep.mubr.msk.f32.mxu1 %vm3932_vm3, %v7387_v29 }
 0x40a   : > { %8485 = vmatmul.mubr.msk.f32.vlgmr.msra.gmra.mrb[84].mxu1 %vm3932_vm3, %v7388_v57 }
 0x40b   : > { %8487 = vmatprep.mubr.msk.f32.mxu1 %vm3932_vm3, %v7389_v7 }
 0x40e   : > { %8488 = vmatmul.mubr.msk.f32.gmra.mrb[86].mxu1 %vm3932_vm3, %v7390_v56  ;;  %v7412_v56 = vld [vmem:[%s12031_s8 + $0x48] sm:$0xff] }
 0x40f   : > { %8490 = vmatprep.mubr.msk.f32.mxu1 %vm3932_vm3, %v7391_v46  ;;  %v7413_v46 = vld [vmem:[%s12031_s8 + $0x50] sm:$0xff] }
 0x412   : > { %8491 = vmatmul.mubr.msk.f32.gmra.mrb[88].mxu1 %vm3932_vm3, %v7392_v53  ;;  %v7415_v53 = vld [vmem:[%s12031_s8 + $0x60] sm:$0xff] }
 0x413   : > { %8493 = vmatprep.mubr.msk.f32.mxu1 %vm3932_vm3, %v7393_v18  ;;  %v7416_v18 = vld [vmem:[%s12031_s8 + $0x68] sm:$0xff] }
 0x416   : > { %8494 = vmatmul.mubr.msk.f32.gmra.mrb[90].mxu1 %vm3932_vm3, %v7394_v21  ;;  %v7417_v21 = vld [vmem:[%s12031_s8 + $0x70] sm:$0xff] }
 0x417   : > { %8512 = vmatprep.mubr.msk.f32.mxu1 %vm4190_vm4, %v7411_v1  ;;  %v7418_v1 = vld [vmem:[%s12031_s8 + $0x78] sm:$0xff] }
 0x4dd   : > { %v8486_v24 = vpop.f32.mrb[84].mxu1 }
 0x4de   : > { %v8995_v36 = vadd.f32 %v8994_v10, %v8486_v24  ;;  %v4620_v8 = vpop.f32.mrb[85].mxu1  ;;  %v4758_v10 = vpop.permute.xlu0 %4757 }
 0x4df   : > { %v8997_v40 = vadd.f32 %v8996_v5, %v4620_v8  ;;  %v4753_v24 = vpop.permute.xlu1 %4752 }
 0x4e0   : > { %v11464_v6 = vadd.f32 %v8995_v36, %v12169_v34 }
 0x4e1   : > { %v11469_v19 = vadd.f32 %v8997_v40, %v12171_v48  ;;  %v8489_v62 = vpop.f32.mrb[86].mxu1 }
 0x4e2   : > { %v4734_v31 = vmax.f32 %v11464_v6, 0.0  ;;  %v8999_v32 = vadd.f32 %v8998_v14, %v8489_v62  ;;  %v4630_v12 = vpop.f32.mrb[87].mxu1  ;;  %v4768_v5 = vpop.permute.xlu0 %4767 }
 0x4e3   : > { %v4733_v45 = vmax.f32 %v11469_v19, 0.0  ;;  %v9001_v52 = vadd.f32 %v9000_v25, %v4630_v12  ;;  %v4763_v8 = vpop.permute.xlu1 %4762 }
 0x4e4   : > { %v11476_v59 = vadd.f32 %v8999_v32, %v12173_v55 }
 0x4e5   : > { %v11481_v50 = vadd.f32 %v9001_v52, %v11189_v3  ;;  %v8492_v33 = vpop.f32.mrb[88].mxu1  ;;  %v8840_v17 = vpack.c.bf16 %v4734_v31, %v4733_v45  ;;  %v12176_v3 = vld [vmem:[#allocation30_spill] sm:$0xff] }
 0x4e6   : > { %v4736_v0 = vmax.f32 %v11476_v59, 0.0  ;;  %v9003_v47 = vadd.f32 %v9002_v42, %v8492_v33  ;;  %v4640_v9 = vpop.f32.mrb[89].mxu1  ;;  %v9006_v20 = vadd.f32 %v12176_v3, %v11344_v61  ;;  %v4778_v31 = vpop.permute.xlu0 %4777 }
 0x4e7   : > { %v4735_v28 = vmax.f32 %v11481_v50, 0.0  ;;  %v9005_v4 = vadd.f32 %v9004_v2, %v4640_v9  ;;  %8841 = vmatprep.subr.bf16.mxu1 %v8840_v17  ;;  %v4773_v45 = vpop.permute.xlu1 %4772 }
 0x4e8   : > { %v11488_v30 = vadd.f32 %v9003_v47, %v12175_v11  ;;  %8843 = vmatpush3.bf16.msra.mxu1 %v8840_v17 }
 0x4e9   : > { %v11493_v27 = vadd.f32 %v9005_v4, %v11222_v37  ;;  %v8495_v22 = vpop.f32.mrb[90].mxu1  ;;  %v8844_v44 = vpack.c.bf16 %v4736_v0, %v4735_v28 }
 0x4ea   : > { %v4738_v54 = vmax.f32 %v11488_v30, 0.0  ;;  %v9007_v63 = vadd.f32 %v9006_v20, %v8495_v22  ;;  %v4650_v13 = vpop.f32.mrb[91].mxu1  ;;  %v4788_v47 = vpop.permute.xlu0 %4787 }
 0x4eb   : > { %v4737_v43 = vmax.f32 %v11493_v27, 0.0  ;;  %v9009_v29 = vadd.f32 %v9008_v41, %v4650_v13  ;;  %8845 = vmatprep.subr.bf16.mxu1 %v8844_v44  ;;  %v4783_v4 = vpop.permute.xlu1 %4782  ;;  %v7437_v13 = vld [vmem:[%s12033_s10 + $0x50] sm:$0xff] }
 0x4ec   : > { %v11499_v57 = vadd.f32 %v9007_v63, %v4714_v23  ;;  %8847 = vmatpush3.bf16.msra.mxu1 %v8844_v44  ;;  %v7436_v63 = vld [vmem:[%s12033_s10 + $0x48] sm:$0xff]  ;;  %v7438_v23 = vld [vmem:[%s12033_s10 + $0x58] sm:$0xff] }
 0x4ed   : > { %v11502_v37 = vadd.f32 %v9009_v29, %v11233_v35  ;;  %v8848_v61 = vpack.c.bf16 %v4738_v54, %v4737_v43  ;;  %v7414_v35 = vld [vmem:[%s12031_s8 + $0x58] sm:$0xff]  ;;  %v7439_v43 = vld [vmem:[%s12033_s10 + $0x60] sm:$0xff]  ;;  %v7440_v29 = vld [vmem:[%s12033_s10 + $0x68] sm:$0xff] }
 0x4ee   : > { %v4740_v7 = vmax.f32 %v11499_v57, 0.0 }
 0x4ef   : > { %v4739_v58 = vmax.f32 %v11502_v37, 0.0  ;;  %8849 = vmatprep.subr.bf16.mxu1 %v8848_v61 }
 0x4f0   : > { %8851 = vmatpush3.bf16.msra.mxu1 %v8848_v61  ;;  %v7441_v61 = vld [vmem:[%s12033_s10 + $0x70] sm:$0xff] }
 0x4f1   : > { %v8852_v60 = vpack.c.bf16 %v4740_v7, %v4739_v58  ;;  %v7442_v7 = vld [vmem:[%s12033_s10 + $0x78] sm:$0xff]  ;;  %v7459_v58 = vld [vmem:[%s12029_s6 + $0x80] sm:$0xff] }
 0x4f3   : > { %8853 = vmatprep.subr.bf16.mxu1 %v8852_v60 }
 0x4f4   : > { %8855 = vmatpush3.bf16.msra.mxu1 %v8852_v60  ;;  %v7460_v60 = vld [vmem:[%s12029_s6 + $0x88] sm:$0xff] }
 0x4f7   : > { %8513 = vmatmul.mubr.msk.f32.vlgmr.msra.gmra.mrb[92].mxu1 %vm4190_vm4, %v7412_v56  ;;  %v7461_v56 = vld [vmem:[%s12029_s6 + $0x90] sm:$0xff] }
 0x4f8   : > { %8515 = vmatprep.mubr.msk.f32.mxu1 %vm4190_vm4, %v7413_v46  ;;  %v7462_v46 = vld [vmem:[%s12029_s6 + $0x98] sm:$0xff] }
 0x4fb   : > { %8516 = vmatmul.mubr.msk.f32.gmra.mrb[94].mxu1 %vm4190_vm4, %v7414_v35  ;;  %v7463_v35 = vld [vmem:[%s12029_s6 + $0xa0] sm:$0xff] }
 0x4fc   : > { %8518 = vmatprep.mubr.msk.f32.mxu1 %vm4190_vm4, %v7415_v53  ;;  %v7464_v53 = vld [vmem:[%s12029_s6 + $0xa8] sm:$0xff] }
 0x4ff   : > { %8519 = vmatmul.mubr.msk.f32.gmra.mrb[96].mxu1 %vm4190_vm4, %v7416_v18  ;;  %v7465_v18 = vld [vmem:[%s12029_s6 + $0xb0] sm:$0xff] }
 0x500   : > { %8521 = vmatprep.mubr.msk.f32.mxu1 %vm4190_vm4, %v7417_v21  ;;  %v7466_v21 = vld [vmem:[%s12029_s6 + $0xb8] sm:$0xff] }
 0x503   : > { %8522 = vmatmul.mubr.msk.f32.gmra.mrb[98].mxu1 %vm4190_vm4, %v7418_v1  ;;  %v7483_v1 = vld [vmem:[%s12031_s8 + $0x80] sm:$0xff] }
 0x504   : > { %8540 = vmatprep.mubr.msk.f32.mxu1 %vm4190_vm4, %v7435_v16  ;;  %v4953_v16 = vpop.permute.xlu0 %4952 }
 0x5ca   : > { %v8514_v36 = vpop.f32.mrb[92].mxu1 }
 0x5cb   : > { %v4886_v40 = vadd.f32 %v8514_v36, %v4758_v10  ;;  %v4880_v34 = vpop.f32.mrb[93].mxu1  ;;  %v4948_v10 = vpop.permute.xlu1 %4947 }
 0x5cc   : > { %v4881_v39 = vadd.f32 %v4880_v34, %v4753_v24  ;;  %v4963_v24 = vpop.permute.xlu0 %4962 }
 0x5cd   : > { %v4929_v14 = vmax.f32 %v4886_v40, 0.0 }
 0x5ce   : > { %v4928_v48 = vmax.f32 %v4881_v39, 0.0  ;;  %v8517_v62 = vpop.f32.mrb[94].mxu1 }
 0x5cf   : > { %v4896_v15 = vadd.f32 %v8517_v62, %v4768_v5  ;;  %v4890_v25 = vpop.f32.mrb[95].mxu1  ;;  %v4958_v5 = vpop.permute.xlu1 %4957 }
 0x5d0   : > { %v8856_v32 = vpack.c.bf16 %v4929_v14, %v4928_v48  ;;  %v4891_v12 = vadd.f32 %v4890_v25, %v4763_v8  ;;  %v5285_v36 = vpop.permute.xlu0 %5284  ;;  %v9010_v48 = vadd.f32 %v4953_v16, %v11464_v6  ;;  %v7485_v16 = vld [vmem:[%s12031_s8 + $0x90] sm:$0xff] }
 0x5d1   : > { %v4931_v52 = vmax.f32 %v4896_v15, 0.0  ;;  %v9012_v15 = vadd.f32 %v4948_v10, %v11469_v19  ;;  %v7486_v10 = vld [vmem:[%s12031_s8 + $0x98] sm:$0xff] }
 0x5d2   : > { %v4930_v55 = vmax.f32 %v4891_v12, 0.0  ;;  %v8520_v49 = vpop.f32.mrb[96].mxu1  ;;  %8857 = vmatprep.subr.bf16.mxu1 %v8856_v32 }
 0x5d3   : > { %v4906_v42 = vadd.f32 %v8520_v49, %v4778_v31  ;;  %v4900_v33 = vpop.f32.mrb[97].mxu1  ;;  %8859 = vmatpush3.bf16.msra.mxu1 %v8856_v32  ;;  %v5280_v8 = vpop.permute.xlu1 %5279 }
 0x5d4   : > { %v8860_v2 = vpack.c.bf16 %v4931_v52, %v4930_v55  ;;  %v4901_v17 = vadd.f32 %v4900_v33, %v4773_v45  ;;  %v4973_v40 = vpop.permute.xlu0 %4972  ;;  %v9014_v55 = vadd.f32 %v4963_v24, %v11476_v59  ;;  %v9016_v33 = vadd.f32 %v4958_v5, %v11481_v50  ;;  %v7487_v24 = vld [vmem:[%s12031_s8 + $0xa0] sm:$0xff]  ;;  %v7488_v5 = vld [vmem:[%s12031_s8 + $0xa8] sm:$0xff] }
 0x5d5   : > { %v4933_v0 = vmax.f32 %v4906_v42, 0.0 }
 0x5d6   : > { %v4932_v9 = vmax.f32 %v4901_v17, 0.0  ;;  %v8523_v28 = vpop.f32.mrb[98].mxu1  ;;  %8861 = vmatprep.subr.bf16.mxu1 %v8860_v2 }
 0x5d7   : > { %v4916_v11 = vadd.f32 %v8523_v28, %v4788_v47  ;;  %v4910_v3 = vpop.f32.mrb[99].mxu1  ;;  %8863 = vmatpush3.bf16.msra.mxu1 %v8860_v2  ;;  %v4968_v34 = vpop.permute.xlu1 %4967 }
 0x5d8   : > { %v8864_v20 = vpack.c.bf16 %v4933_v0, %v4932_v9  ;;  %v4911_v22 = vadd.f32 %v4910_v3, %v4783_v4  ;;  %v5295_v39 = vpop.permute.xlu0 %5294  ;;  %v9018_v9 = vadd.f32 %v4973_v40, %v11488_v30  ;;  %v7507_v40 = vld [vmem:[%s12033_s10 + $0x80] sm:$0xff] }
 0x5d9   : > { %v4935_v41 = vmax.f32 %v4916_v11, 0.0  ;;  %v9020_v11 = vadd.f32 %v4968_v34, %v11493_v27  ;;  %8616 = vmatprep.mubr.msk.f32.mxu0 %vm4190_vm4, %v7507_v40 }
 0x5da   : > { %v4934_v44 = vmax.f32 %v4911_v22, 0.0  ;;  %8865 = vmatprep.subr.bf16.mxu1 %v8864_v20 }
 0x5db   : > { %8867 = vmatpush3.bf16.msra.mxu1 %v8864_v20  ;;  %v5290_v14 = vpop.permute.xlu1 %5289 }
 0x5dc   : > { %v8868_v54 = vpack.c.bf16 %v4935_v41, %v4934_v44  ;;  %v4983_v32 = vpop.permute.xlu0 %4982 }
 0x5dd   : > { %v9022_v30 = vadd.f32 %v4983_v32, %v11499_v57 }
 0x5de   : > { %8869 = vmatprep.subr.bf16.mxu1 %v8868_v54 }
 0x5df   : > { %8871 = vmatpush3.bf16.msra.mxu1 %v8868_v54  ;;  %v4978_v45 = vpop.permute.xlu1 %4977 }
 0x5e0   : > { %8873 = vmatprep.subr.bf16.mxu1 %v11127_v51  ;;  %v5305_v28 = vpop.permute.xlu0 %5304  ;;  %v9024_v27 = vadd.f32 %v4978_v45, %v11502_v37 }
 0x5e2   : > { %8541 = vmatmul.mubr.msk.f32.vlgmr.msra.gmra.mrb[100].mxu1 %vm4190_vm4, %v7436_v63 }
 0x5e3   : > { %8875 = vmatpush3.bf16.msra.mxu1 %v11127_v51  ;;  %8543 = vmatprep.mubr.msk.f32.mxu1 %vm4190_vm4, %v7437_v13  ;;  %v5300_v20 = vpop.permute.xlu1 %5299 }
 0x5e4   : > { %8877 = vmatprep.subr.bf16.mxu1 %v11247_v26 }
 0x5e6   : > { %8544 = vmatmul.mubr.msk.f32.gmra.mrb[102].mxu1 %vm4190_vm4, %v7438_v23 }
 0x5e7   : > { %8879 = vmatpush3.bf16.msra.mxu1 %v11247_v26  ;;  %8546 = vmatprep.mubr.msk.f32.mxu1 %vm4190_vm4, %v7439_v43 }
 0x5ea   : > { %8547 = vmatmul.mubr.msk.f32.gmra.mrb[104].mxu1 %vm4190_vm4, %v7440_v29 }
 0x5eb   : > { %8549 = vmatprep.mubr.msk.f32.mxu1 %vm4190_vm4, %v7441_v61 }
 0x5ee   : > { %8550 = vmatmul.mubr.msk.f32.gmra.mrb[106].mxu1 %vm4190_vm4, %v7442_v7 }
 0x5ef   : > { %8560 = vmatprep.mubr.msk.f32.mxu1 %vm3932_vm3, %v7459_v58  ;;  %v5315_v58 = vpop.permute.xlu0 %5314 }
 0x5f2   : > { %8561 = vmatmul.mubr.msk.f32.vlgmr.msra.gmra.mrb[100].mxu1 %vm3932_vm3, %v7460_v60 }
 0x5f3   : > { %8563 = vmatprep.mubr.msk.f32.mxu1 %vm3932_vm3, %v7461_v56  ;;  %v5359_v34 = vpop.permute.xlu0 %5358 }
 0x5f6   : > { %8564 = vmatmul.mubr.msk.f32.gmra.mrb[102].mxu1 %vm3932_vm3, %v7462_v46  ;;  %v5310_v46 = vpop.permute.xlu1 %5309 }
 0x5f7   : > { %8566 = vmatprep.mubr.msk.f32.mxu1 %vm3932_vm3, %v7463_v35 }
 0x5fa   : > { %8567 = vmatmul.mubr.msk.f32.gmra.mrb[104].mxu1 %vm3932_vm3, %v7464_v53 }
 0x5fb   : > { %8569 = vmatprep.mubr.msk.f32.mxu1 %vm3932_vm3, %v7465_v18 }
 0x5fe   : > { %8570 = vmatmul.mubr.msk.f32.gmra.mrb[106].mxu1 %vm3932_vm3, %v7466_v21 }
 0x5ff   : > { %8588 = vmatprep.mubr.msk.f32.mxu1 %vm4190_vm4, %v7483_v1  ;;  %v7484_v1 = vld [vmem:[%s12031_s8 + $0x88] sm:$0xff] }
 0x6c5   : > { %v8562_v62 = vpop.f32.mrb[100].mxu1 }
 0x6c6   : > { %v9011_v25 = vadd.f32 %v9010_v48, %v8562_v62  ;;  %v5221_v31 = vpop.f32.mrb[101].mxu1 }
 0x6c7   : > { %v9013_v12 = vadd.f32 %v9012_v15, %v5221_v31 }
 0x6c8   : > { %v11608_v52 = vadd.f32 %v9011_v25, %v5285_v36  ;;  %v7489_v36 = vld [vmem:[%s12031_s8 + $0xb0] sm:$0xff] }
 0x6c9   : > { %v11611_v49 = vadd.f32 %v9013_v12, %v5280_v8  ;;  %v8565_v42 = vpop.f32.mrb[102].mxu1  ;;  %v7490_v8 = vld [vmem:[%s12031_s8 + $0xb8] sm:$0xff] }
 0x6ca   : > { %v5335_v2 = vmax.f32 %v11608_v52, 0.0  ;;  %v9015_v6 = vadd.f32 %v9014_v55, %v8565_v42  ;;  %v5231_v17 = vpop.f32.mrb[103].mxu1 }
 0x6cb   : > { %v5334_v19 = vmax.f32 %v11611_v49, 0.0  ;;  %v9017_v0 = vadd.f32 %v9016_v33, %v5231_v17 }
 0x6cc   : > { %v11616_v47 = vadd.f32 %v9015_v6, %v5295_v39  ;;  %v5354_v39 = vpop.permute.xlu1 %5353 }
 0x6cd   : > { %v11619_v4 = vadd.f32 %v9017_v0, %v5290_v14  ;;  %v8568_v59 = vpop.f32.mrb[104].mxu1  ;;  %v8880_v3 = vpack.c.bf16 %v5335_v2, %v5334_v19  ;;  %v5369_v14 = vpop.permute.xlu0 %5368 }
 0x6ce   : > { %v5337_v50 = vmax.f32 %v11616_v47, 0.0  ;;  %v9019_v22 = vadd.f32 %v9018_v9, %v8568_v59  ;;  %v5241_v41 = vpop.f32.mrb[105].mxu1 }
 0x6cf   : > { %v5336_v44 = vmax.f32 %v11619_v4, 0.0  ;;  %v9021_v54 = vadd.f32 %v9020_v11, %v5241_v41  ;;  %8881 = vmatprep.subr.bf16.mxu1 %v8880_v3 }
 0x6d0   : > { %v11624_v63 = vadd.f32 %v9019_v22, %v5305_v28  ;;  %8883 = vmatpush3.bf16.msra.mxu1 %v8880_v3  ;;  %v5364_v62 = vpop.permute.xlu1 %5363 }
 0x6d1   : > { %v11627_v13 = vadd.f32 %v9021_v54, %v5300_v20  ;;  %v8571_v23 = vpop.f32.mrb[106].mxu1  ;;  %v8884_v43 = vpack.c.bf16 %v5337_v50, %v5336_v44  ;;  %v5379_v33 = vpop.permute.xlu0 %5378 }
 0x6d2   : > { %v5339_v29 = vmax.f32 %v11624_v63, 0.0  ;;  %v9023_v61 = vadd.f32 %v9022_v30, %v8571_v23  ;;  %v5251_v7 = vpop.f32.mrb[107].mxu1 }
 0x6d3   : > { %v5338_v60 = vmax.f32 %v11627_v13, 0.0  ;;  %v9025_v56 = vadd.f32 %v9024_v27, %v5251_v7  ;;  %8885 = vmatprep.subr.bf16.mxu1 %v8884_v43  ;;  %v7508_v7 = vld [vmem:[%s12033_s10 + $0x88] sm:$0xff] }
 0x6d4   : > { %v11632_v35 = vadd.f32 %v9023_v61, %v5315_v58  ;;  %8887 = vmatpush3.bf16.msra.mxu1 %v8884_v43  ;;  %v5374_v17 = vpop.permute.xlu1 %5373  ;;  %v7509_v58 = vld [vmem:[%s12033_s10 + $0x90] sm:$0xff] }
 0x6d5   : > { %v11634_v57 = vadd.f32 %v9025_v56, %v5310_v46  ;;  %v8888_v53 = vpack.c.bf16 %v5339_v29, %v5338_v60  ;;  %v5389_v50 = vpop.permute.xlu0 %5388  ;;  %v7510_v60 = vld [vmem:[%s12033_s10 + $0x98] sm:$0xff]  ;;  %v7511_v56 = vld [vmem:[%s12033_s10 + $0xa0] sm:$0xff]  ;;  %v7512_v46 = vld [vmem:[%s12033_s10 + $0xa8] sm:$0xff] }
 0x6d6   : > { %v5341_v18 = vmax.f32 %v11632_v35, 0.0 }
 0x6d7   : > { %v5340_v37 = vmax.f32 %v11634_v57, 0.0  ;;  %8889 = vmatprep.subr.bf16.mxu1 %v8888_v53 }
 0x6d8   : > { %8891 = vmatpush3.bf16.msra.mxu1 %v8888_v53  ;;  %v5384_v44 = vpop.permute.xlu1 %5383  ;;  %v7513_v53 = vld [vmem:[%s12033_s10 + $0xb0] sm:$0xff] }
 0x6d9   : > { %v8892_v21 = vpack.c.bf16 %v5341_v18, %v5340_v37  ;;  %v7514_v18 = vld [vmem:[%s12033_s10 + $0xb8] sm:$0xff]  ;;  %v7531_v37 = vld [vmem:[%s12029_s6 + $0xc0] sm:$0xff]  ;;  %v5554_v40 = vpop.permute.xlu0 %5553 }
 0x6db   : > { %8893 = vmatprep.subr.bf16.mxu1 %v8892_v21 }
 0x6dc   : > { %8895 = vmatpush3.bf16.msra.mxu1 %v8892_v21  ;;  %v7532_v21 = vld [vmem:[%s12029_s6 + $0xc8] sm:$0xff] }
 0x6df   : > { %8589 = vmatmul.mubr.msk.f32.vlgmr.msra.gmra.mrb[108].mxu1 %vm4190_vm4, %v7484_v1  ;;  %v7533_v1 = vld [vmem:[%s12029_s6 + $0xd0] sm:$0xff] }
 0x6e0   : > { %8591 = vmatprep.mubr.msk.f32.mxu1 %vm4190_vm4, %v7485_v16  ;;  %v7534_v16 = vld [vmem:[%s12029_s6 + $0xd8] sm:$0xff] }
 0x6e3   : > { %8592 = vmatmul.mubr.msk.f32.gmra.mrb[110].mxu1 %vm4190_vm4, %v7486_v10  ;;  %v7535_v10 = vld [vmem:[%s12029_s6 + $0xe0] sm:$0xff] }
 0x6e4   : > { %8594 = vmatprep.mubr.msk.f32.mxu1 %vm4190_vm4, %v7487_v24  ;;  %v7536_v24 = vld [vmem:[%s12029_s6 + $0xe8] sm:$0xff] }
 0x6e7   : > { %8595 = vmatmul.mubr.msk.f32.gmra.mrb[112].mxu1 %vm4190_vm4, %v7488_v5  ;;  %v7537_v5 = vld [vmem:[%s12029_s6 + $0xf0] sm:$0xff] }
 0x6e8   : > { %8597 = vmatprep.mubr.msk.f32.mxu1 %vm4190_vm4, %v7489_v36  ;;  %v7538_v36 = vld [vmem:[%s12029_s6 + $0xf8] sm:$0xff] }
 0x6eb   : > { %8598 = vmatmul.mubr.msk.f32.gmra.mrb[114].mxu1 %vm4190_vm4, %v7490_v8  ;;  %v7555_v8 = vld [vmem:[%s12031_s8 + $0xc0] sm:$0xff] }
 0x6ec   : > { %8664 = vmatprep.mubr.msk.f32.mxu1 %vm4190_vm4, %v7555_v8  ;;  %v7556_v8 = vld [vmem:[%s12031_s8 + $0xc8] sm:$0xff] }
 0x7b2   : > { %v8590_v48 = vpop.f32.mrb[108].mxu1 }
 0x7b3   : > { %v5487_v15 = vadd.f32 %v8590_v48, %v5359_v34  ;;  %v5481_v25 = vpop.f32.mrb[109].mxu1  ;;  %v5549_v34 = vpop.permute.xlu1 %5548 }
 0x7b4   : > { %v5482_v31 = vadd.f32 %v5481_v25, %v5354_v39  ;;  %v5564_v39 = vpop.permute.xlu0 %5563 }
 0x7b5   : > { %v5530_v32 = vmax.f32 %v5487_v15, 0.0 }
 0x7b6   : > { %v5529_v12 = vmax.f32 %v5482_v31, 0.0  ;;  %v8593_v45 = vpop.f32.mrb[110].mxu1 }
 0x7b7   : > { %v5497_v55 = vadd.f32 %v8593_v45, %v5369_v14  ;;  %v5491_v42 = vpop.f32.mrb[111].mxu1  ;;  %v5559_v14 = vpop.permute.xlu1 %5558 }
 0x7b8   : > { %v8896_v2 = vpack.c.bf16 %v5530_v32, %v5529_v12  ;;  %v5492_v6 = vadd.f32 %v5491_v42, %v5364_v62  ;;  %v5886_v48 = vpop.permute.xlu0 %5885  ;;  %v9026_v12 = vadd.f32 %v5554_v40, %v11608_v52  ;;  %v7557_v40 = vld [vmem:[%s12031_s8 + $0xd0] sm:$0xff] }
 0x7b9   : > { %v5532_v19 = vmax.f32 %v5497_v55, 0.0  ;;  %v9028_v55 = vadd.f32 %v5549_v34, %v11611_v49  ;;  %v7558_v34 = vld [vmem:[%s12031_s8 + $0xd8] sm:$0xff] }
 0x7ba   : > { %v5531_v0 = vmax.f32 %v5492_v6, 0.0  ;;  %v8596_v9 = vpop.f32.mrb[112].mxu1  ;;  %8897 = vmatprep.subr.bf16.mxu0 %v8896_v2 }
 0x7bb   : > { %v5507_v28 = vadd.f32 %v8596_v9, %v5379_v33  ;;  %v5501_v59 = vpop.f32.mrb[113].mxu1  ;;  %8899 = vmatpush3.bf16.msra.mxu0 %v8896_v2  ;;  %v5881_v62 = vpop.permute.xlu1 %5880 }
 0x7bc   : > { %v8900_v11 = vpack.c.bf16 %v5532_v19, %v5531_v0  ;;  %v5502_v3 = vadd.f32 %v5501_v59, %v5374_v17  ;;  %v5574_v15 = vpop.permute.xlu0 %5573  ;;  %v9030_v0 = vadd.f32 %v5564_v39, %v11616_v47  ;;  %v9032_v59 = vadd.f32 %v5559_v14, %v11619_v4  ;;  %v7559_v39 = vld [vmem:[%s12031_s8 + $0xe0] sm:$0xff]  ;;  %v7560_v14 = vld [vmem:[%s12031_s8 + $0xe8] sm:$0xff] }
 0x7bd   : > { %v5534_v20 = vmax.f32 %v5507_v28, 0.0 }
 0x7be   : > { %v5533_v22 = vmax.f32 %v5502_v3, 0.0  ;;  %v8599_v41 = vpop.f32.mrb[114].mxu1  ;;  %8901 = vmatprep.subr.bf16.mxu0 %v8900_v11 }
 0x7bf   : > { %v5517_v54 = vadd.f32 %v8599_v41, %v5389_v50  ;;  %v5511_v30 = vpop.f32.mrb[115].mxu1  ;;  %8903 = vmatpush3.bf16.msra.mxu0 %v8900_v11  ;;  %v5569_v25 = vpop.permute.xlu1 %5568 }
 0x7c0   : > { %v8904_v23 = vpack.c.bf16 %v5534_v20, %v5533_v22  ;;  %v5512_v27 = vadd.f32 %v5511_v30, %v5384_v44  ;;  %v5896_v31 = vpop.permute.xlu0 %5895  ;;  %v9034_v22 = vadd.f32 %v5574_v15, %v11624_v63  ;;  %v7579_v15 = vld [vmem:[%s12033_s10 + $0xc0] sm:$0xff] }
 0x7c1   : > { %v5536_v43 = vmax.f32 %v5517_v54, 0.0  ;;  %v9036_v54 = vadd.f32 %v5569_v25, %v11627_v13 }
 0x7c2   : > { %v5535_v29 = vmax.f32 %v5512_v27, 0.0  ;;  %8905 = vmatprep.subr.bf16.mxu0 %v8904_v23 }
 0x7c3   : > { %8907 = vmatpush3.bf16.msra.mxu0 %v8904_v23  ;;  %v5891_v32 = vpop.permute.xlu1 %5890 }
 0x7c4   : > { %v8908_v61 = vpack.c.bf16 %v5536_v43, %v5535_v29  ;;  %v5584_v2 = vpop.permute.xlu0 %5583 }
 0x7c5   : > { %v9038_v63 = vadd.f32 %v5584_v2, %v11632_v35 }
 0x7c6   : > { %8909 = vmatprep.subr.bf16.mxu0 %v8908_v61 }
 0x7c7   : > { %8911 = vmatpush3.bf16.msra.mxu0 %v8908_v61  ;;  %v5579_v17 = vpop.permute.xlu1 %5578 }
 0x7c8   : > { %8913 = vmatprep.subr.bf16.mxu0 %v11127_v51  ;;  %v5906_v41 = vpop.permute.xlu0 %5905  ;;  %v9040_v13 = vadd.f32 %v5579_v17, %v11634_v57 }
 0x7ca   : > { %8617 = vmatmul.mubr.msk.f32.vlgmr.msra.gmra.mrb[124].mxu0 %vm4190_vm4, %v7508_v7 }
 0x7cb   : > { %8915 = vmatpush3.bf16.msra.mxu0 %v11127_v51  ;;  %8619 = vmatprep.mubr.msk.f32.mxu0 %vm4190_vm4, %v7509_v58  ;;  %v5901_v23 = vpop.permute.xlu1 %5900 }
 0x7cc   : > { %8917 = vmatprep.subr.bf16.mxu0 %v11247_v26 }
 0x7ce   : > { %8620 = vmatmul.mubr.msk.f32.gmra.mrb[126].mxu0 %vm4190_vm4, %v7510_v60 }
 0x7cf   : > { %8919 = vmatpush3.bf16.msra.mxu0 %v11247_v26  ;;  %8622 = vmatprep.mubr.msk.f32.mxu0 %vm4190_vm4, %v7511_v56 }
 0x7d2   : > { %8623 = vmatmul.mubr.msk.f32.gmra.mrb[128].mxu0 %vm4190_vm4, %v7512_v46 }
 0x7d3   : > { %8625 = vmatprep.mubr.msk.f32.mxu0 %vm4190_vm4, %v7513_v53 }
 0x7d6   : > { %8626 = vmatmul.mubr.msk.f32.gmra.mrb[130].mxu0 %vm4190_vm4, %v7514_v18 }
 0x7d7   : > { %8636 = vmatprep.mubr.msk.f32.mxu0 %vm3932_vm3, %v7531_v37  ;;  %v5916_v37 = vpop.permute.xlu0 %5915 }
 0x7da   : > { %8637 = vmatmul.mubr.msk.f32.vlgmr.msra.gmra.mrb[124].mxu0 %vm3932_vm3, %v7532_v21 }
 0x7db   : > { %8639 = vmatprep.mubr.msk.f32.mxu0 %vm3932_vm3, %v7533_v1  ;;  %v5960_v25 = vpop.permute.xlu0 %5959 }
 0x7de   : > { %8640 = vmatmul.mubr.msk.f32.gmra.mrb[126].mxu0 %vm3932_vm3, %v7534_v16  ;;  %v5911_v16 = vpop.permute.xlu1 %5910 }
 0x7df   : > { %8642 = vmatprep.mubr.msk.f32.mxu0 %vm3932_vm3, %v7535_v10 }
 0x7e2   : > { %8643 = vmatmul.mubr.msk.f32.gmra.mrb[128].mxu0 %vm3932_vm3, %v7536_v24 }
 0x7e3   : > { %8645 = vmatprep.mubr.msk.f32.mxu0 %vm3932_vm3, %v7537_v5 }
 0x7e6   : > { %8646 = vmatmul.mubr.msk.f32.gmra.mrb[130].mxu0 %vm3932_vm3, %v7538_v36 }
 0x8ad   : > { %v8638_v45 = vpop.f32.mrb[124].mxu0 }
 0x8ae   : > { %v9027_v42 = vadd.f32 %v9026_v12, %v8638_v45  ;;  %v5822_v33 = vpop.f32.mrb[125].mxu0 }
 0x8af   : > { %v9029_v6 = vadd.f32 %v9028_v55, %v5822_v33 }
 0x8b0   : > { %v11740_v19 = vadd.f32 %v9027_v42, %v5886_v48  ;;  %v7561_v48 = vld [vmem:[%s12031_s8 + $0xf0] sm:$0xff] }
 0x8b1   : > { %v11743_v9 = vadd.f32 %v9029_v6, %v5881_v62  ;;  %v8641_v28 = vpop.f32.mrb[126].mxu0  ;;  %v7562_v62 = vld [vmem:[%s12031_s8 + $0xf8] sm:$0xff] }
 0x8b2   : > { %v5936_v11 = vmax.f32 %v11740_v19, 0.0  ;;  %v9031_v52 = vadd.f32 %v9030_v0, %v8641_v28  ;;  %v5832_v3 = vpop.f32.mrb[127].mxu0 }
 0x8b3   : > { %v5935_v49 = vmax.f32 %v11743_v9, 0.0  ;;  %v9033_v20 = vadd.f32 %v9032_v59, %v5832_v3 }
 0x8b4   : > { %v11748_v50 = vadd.f32 %v9031_v52, %v5896_v31  ;;  %v5955_v31 = vpop.permute.xlu1 %5954 }
 0x8b5   : > { %v11751_v44 = vadd.f32 %v9033_v20, %v5891_v32  ;;  %v8644_v47 = vpop.f32.mrb[128].mxu0  ;;  %v8920_v30 = vpack.c.bf16 %v5936_v11, %v5935_v49  ;;  %v5970_v32 = vpop.permute.xlu0 %5969 }
 0x8b6   : > { %v5938_v4 = vmax.f32 %v11748_v50, 0.0  ;;  %v9035_v27 = vadd.f32 %v9034_v22, %v8644_v47  ;;  %v5842_v43 = vpop.f32.mrb[129].mxu0 }
 0x8b7   : > { %v5937_v29 = vmax.f32 %v11751_v44, 0.0  ;;  %v9037_v61 = vadd.f32 %v9036_v54, %v5842_v43  ;;  %8921 = vmatprep.subr.bf16.mxu1 %v8920_v30 }
 0x8b8   : > { %v11756_v7 = vadd.f32 %v9035_v27, %v5906_v41  ;;  %8923 = vmatpush3.bf16.msra.mxu1 %v8920_v30  ;;  %v5965_v45 = vpop.permute.xlu1 %5964 }
 0x8b9   : > { %v11759_v58 = vadd.f32 %v9037_v61, %v5901_v23  ;;  %v8647_v60 = vpop.f32.mrb[130].mxu0  ;;  %v8924_v56 = vpack.c.bf16 %v5938_v4, %v5937_v29  ;;  %v5980_v59 = vpop.permute.xlu0 %5979 }
 0x8ba   : > { %v5940_v46 = vmax.f32 %v11756_v7, 0.0  ;;  %v9039_v53 = vadd.f32 %v9038_v63, %v8647_v60  ;;  %v5852_v18 = vpop.f32.mrb[131].mxu0 }
 0x8bb   : > { %v5939_v21 = vmax.f32 %v11759_v58, 0.0  ;;  %v9041_v1 = vadd.f32 %v9040_v13, %v5852_v18  ;;  %8925 = vmatprep.subr.bf16.mxu1 %v8924_v56  ;;  %v7580_v18 = vld [vmem:[%s12033_s10 + $0xc8] sm:$0xff] }
 0x8bc   : > { %v11764_v10 = vadd.f32 %v9039_v53, %v5916_v37  ;;  %8927 = vmatpush3.bf16.msra.mxu1 %v8924_v56  ;;  %v5975_v3 = vpop.permute.xlu1 %5974  ;;  %v7581_v37 = vld [vmem:[%s12033_s10 + $0xd0] sm:$0xff] }
 0x8bd   : > { %v11766_v35 = vadd.f32 %v9041_v1, %v5911_v16  ;;  %v8928_v24 = vpack.c.bf16 %v5940_v46, %v5939_v21  ;;  %v5990_v4 = vpop.permute.xlu0 %5989  ;;  %v7582_v21 = vld [vmem:[%s12033_s10 + $0xd8] sm:$0xff]  ;;  %v7583_v1 = vld [vmem:[%s12033_s10 + $0xe0] sm:$0xff]  ;;  %v7585_v16 = vld [vmem:[%s12033_s10 + $0xf0] sm:$0xff] }
 0x8be   : > { %v5942_v5 = vmax.f32 %v11764_v10, 0.0 }
 0x8bf   : > { %v5941_v57 = vmax.f32 %v11766_v35, 0.0  ;;  %8929 = vmatprep.subr.bf16.mxu1 %v8928_v24 }
 0x8c0   : > { %8931 = vmatpush3.bf16.msra.mxu1 %v8928_v24  ;;  %v5985_v29 = vpop.permute.xlu1 %5984  ;;  %v7586_v24 = vld [vmem:[%s12033_s10 + $0xf8] sm:$0xff] }
 0x8c1   : > { %v8932_v36 = vpack.c.bf16 %v5942_v5, %v5941_v57  ;;  %v7604_v5 = vld [vmem:[%s12029_s6 + $0x108] sm:$0xff]  ;;  %v7605_v57 = vld [vmem:[%s12029_s6 + $0x110] sm:$0xff] }
 0x8c3   : > { %8933 = vmatprep.subr.bf16.mxu1 %v8932_v36 }
 0x8c4   : > { %8935 = vmatpush3.bf16.msra.mxu1 %v8932_v36  ;;  %v7606_v36 = vld [vmem:[%s12029_s6 + $0x118] sm:$0xff] }
 0x8c7   : > { %8665 = vmatmul.mubr.msk.f32.vlgmr.msra.gmra.mrb[116].mxu1 %vm4190_vm4, %v7556_v8  ;;  %v7607_v8 = vld [vmem:[%s12029_s6 + $0x120] sm:$0xff] }
 0x8c8   : > { %8667 = vmatprep.mubr.msk.f32.mxu1 %vm4190_vm4, %v7557_v40  ;;  %v7608_v40 = vld [vmem:[%s12029_s6 + $0x128] sm:$0xff] }
 0x8cb   : > { %8668 = vmatmul.mubr.msk.f32.gmra.mrb[118].mxu1 %vm4190_vm4, %v7558_v34  ;;  %v7609_v34 = vld [vmem:[%s12029_s6 + $0x130] sm:$0xff] }
 0x8cc   : > { %8670 = vmatprep.mubr.msk.f32.mxu1 %vm4190_vm4, %v7559_v39  ;;  %v7610_v39 = vld [vmem:[%s12029_s6 + $0x138] sm:$0xff] }
 0x8cf   : > { %8671 = vmatmul.mubr.msk.f32.gmra.mrb[120].mxu1 %vm4190_vm4, %v7560_v14  ;;  %v7627_v14 = vld [vmem:[%s12031_s8 + $0x100] sm:$0xff] }
 0x8d0   : > { %8673 = vmatprep.mubr.msk.f32.mxu1 %vm4190_vm4, %v7561_v48  ;;  %8740 = vmatprep.mubr.msk.f32.mxu0 %vm4190_vm4, %v7627_v14  ;;  %v6155_v48 = vpop.permute.xlu0 %6154  ;;  %v7630_v14 = vld [vmem:[%s12031_s8 + $0x118] sm:$0xff] }
 0x8d3   : > { %8674 = vmatmul.mubr.msk.f32.gmra.mrb[122].mxu1 %vm4190_vm4, %v7562_v62  ;;  %v6150_v62 = vpop.permute.xlu1 %6149 }
 0x8d4   : > { %8692 = vmatprep.mubr.msk.f32.mxu1 %vm4190_vm4, %v7579_v15  ;;  %v6165_v15 = vpop.permute.xlu0 %6164 }
 0x99a   : > { %v8666_v12 = vpop.f32.mrb[116].mxu1 }
 0x99b   : > { %v6088_v55 = vadd.f32 %v8666_v12, %v5960_v25  ;;  %v6082_v42 = vpop.f32.mrb[117].mxu1  ;;  %v6160_v25 = vpop.permute.xlu1 %6159 }
 0x99c   : > { %v6083_v33 = vadd.f32 %v6082_v42, %v5955_v31  ;;  %v6487_v31 = vpop.permute.xlu0 %6486 }
 0x99d   : > { %v6131_v2 = vmax.f32 %v6088_v55, 0.0 }
 0x99e   : > { %v6130_v6 = vmax.f32 %v6083_v33, 0.0  ;;  %v8669_v17 = vpop.f32.mrb[118].mxu1  ;;  %v9042_v33 = vadd.f32 %v6155_v48, %v11740_v19  ;;  %v7631_v48 = vld [vmem:[%s12031_s8 + $0x120] sm:$0xff] }
 0x99f   : > { %v6098_v0 = vadd.f32 %v8669_v17, %v5970_v32  ;;  %v6092_v28 = vpop.f32.mrb[119].mxu1  ;;  %v6482_v32 = vpop.permute.xlu1 %6481 }
 0x9a0   : > { %v8936_v11 = vpack.c.bf16 %v6131_v2, %v6130_v6  ;;  %v6093_v52 = vadd.f32 %v6092_v28, %v5965_v45  ;;  %v6175_v12 = vpop.permute.xlu0 %6174  ;;  %v9044_v6 = vadd.f32 %v6150_v62, %v11743_v9  ;;  %v7632_v62 = vld [vmem:[%s12031_s8 + $0x128] sm:$0xff] }
 0x9a1   : > { %v6133_v49 = vmax.f32 %v6098_v0, 0.0 }
 0x9a2   : > { %v6132_v20 = vmax.f32 %v6093_v52, 0.0  ;;  %v8672_v22 = vpop.f32.mrb[120].mxu1  ;;  %8937 = vmatprep.subr.bf16.mxu1 %v8936_v11 }
 0x9a3   : > { %v6108_v41 = vadd.f32 %v8672_v22, %v5980_v59  ;;  %v6102_v47 = vpop.f32.mrb[121].mxu1  ;;  %8939 = vmatpush3.bf16.msra.mxu1 %v8936_v11  ;;  %v6170_v45 = vpop.permute.xlu1 %6169  ;;  %v9048_v22 = vadd.f32 %v6160_v25, %v11751_v44  ;;  %v7634_v25 = vld [vmem:[%s12031_s8 + $0x138] sm:$0xff] }
 0x9a4   : > { %v8940_v54 = vpack.c.bf16 %v6133_v49, %v6132_v20  ;;  %v6103_v30 = vadd.f32 %v6102_v47, %v5975_v3  ;;  %v6497_v55 = vpop.permute.xlu0 %6496  ;;  %v9046_v3 = vadd.f32 %v6165_v15, %v11748_v50  ;;  %v7633_v15 = vld [vmem:[%s12031_s8 + $0x130] sm:$0xff] }
 0x9a5   : > { %v6135_v23 = vmax.f32 %v6108_v41, 0.0 }
 0x9a6   : > { %v6134_v27 = vmax.f32 %v6103_v30, 0.0  ;;  %v8675_v43 = vpop.f32.mrb[122].mxu1  ;;  %8941 = vmatprep.subr.bf16.mxu1 %v8940_v54 }
 0x9a7   : > { %v6118_v61 = vadd.f32 %v8675_v43, %v5990_v4  ;;  %v6112_v63 = vpop.f32.mrb[123].mxu1  ;;  %8943 = vmatpush3.bf16.msra.mxu1 %v8940_v54  ;;  %v6492_v42 = vpop.permute.xlu1 %6491  ;;  %v9052_v43 = vadd.f32 %v6170_v45, %v11759_v58 }
 0x9a8   : > { %v8944_v60 = vpack.c.bf16 %v6135_v23, %v6134_v27  ;;  %v6113_v13 = vadd.f32 %v6112_v63, %v5985_v29  ;;  %v6185_v28 = vpop.permute.xlu0 %6184  ;;  %v9050_v23 = vadd.f32 %v6175_v12, %v11756_v7 }
 0x9a9   : > { %v6137_v56 = vmax.f32 %v6118_v61, 0.0  ;;  %v9054_v7 = vadd.f32 %v6185_v28, %v11764_v10 }
 0x9aa   : > { %v6136_v46 = vmax.f32 %v6113_v13, 0.0  ;;  %8945 = vmatprep.subr.bf16.mxu1 %v8944_v60 }
 0x9ab   : > { %8947 = vmatpush3.bf16.msra.mxu1 %v8944_v60  ;;  %v6180_v11 = vpop.permute.xlu1 %6179 }
 0x9ac   : > { %v8948_v53 = vpack.c.bf16 %v6137_v56, %v6136_v46  ;;  %v6507_v4 = vpop.permute.xlu0 %6506  ;;  %v9056_v58 = vadd.f32 %v6180_v11, %v11766_v35 }
 0x9ae   : > { %8949 = vmatprep.subr.bf16.mxu1 %v8948_v53 }
 0x9af   : > { %8951 = vmatpush3.bf16.msra.mxu1 %v8948_v53  ;;  %v6502_v61 = vpop.permute.xlu1 %6501 }
 0x9b0   : > { %8953 = vmatprep.subr.bf16.mxu1 %v11127_v51 }
 0x9b2   : > { %8693 = vmatmul.mubr.msk.f32.vlgmr.msra.gmra.mrb[124].mxu1 %vm4190_vm4, %v7580_v18 }
 0x9b3   : > { %8955 = vmatpush3.bf16.msra.mxu1 %v11127_v51  ;;  %8695 = vmatprep.mubr.msk.f32.mxu1 %vm4190_vm4, %v7581_v37  ;;  %v7584_v51 = vld [vmem:[%s12033_s10 + $0xe8] sm:$0xff] }
 0x9b4   : > { %8957 = vmatprep.subr.bf16.mxu1 %v11247_v26 }
 0x9b6   : > { %8696 = vmatmul.mubr.msk.f32.gmra.mrb[126].mxu1 %vm4190_vm4, %v7582_v21 }
 0x9b7   : > { %8959 = vmatpush3.bf16.msra.mxu1 %v11247_v26  ;;  %8698 = vmatprep.mubr.msk.f32.mxu1 %vm4190_vm4, %v7583_v1  ;;  %v7603_v26 = vld [vmem:[%s12029_s6 + $0x100] sm:$0xff] }
 0x9ba   : > { %8699 = vmatmul.mubr.msk.f32.gmra.mrb[128].mxu1 %vm4190_vm4, %v7584_v51 }
 0x9bb   : > { %8701 = vmatprep.mubr.msk.f32.mxu1 %vm4190_vm4, %v7585_v16  ;;  %v6517_v16 = vpop.permute.xlu0 %6516 }
 0x9be   : > { %8702 = vmatmul.mubr.msk.f32.gmra.mrb[130].mxu1 %vm4190_vm4, %v7586_v24 }
 0x9bf   : > { %8712 = vmatprep.mubr.msk.f32.mxu1 %vm3932_vm3, %v7603_v26 }
 0x9c2   : > { %8713 = vmatmul.mubr.msk.f32.vlgmr.msra.gmra.mrb[124].mxu1 %vm3932_vm3, %v7604_v5  ;;  %v6512_v5 = vpop.permute.xlu1 %6511 }
 0x9c3   : > { %8715 = vmatprep.mubr.msk.f32.mxu1 %vm3932_vm3, %v7605_v57 }
 0x9c6   : > { %8716 = vmatmul.mubr.msk.f32.gmra.mrb[126].mxu1 %vm3932_vm3, %v7606_v36  ;;  %v6556_v12 = vpop.permute.xlu1 %6555 }
 0x9c7   : > { %8718 = vmatprep.mubr.msk.f32.mxu1 %vm3932_vm3, %v7607_v8 }
 0x9ca   : > { %8719 = vmatmul.mubr.msk.f32.gmra.mrb[128].mxu1 %vm3932_vm3, %v7608_v40 }
 0x9cb   : > { %8721 = vmatprep.mubr.msk.f32.mxu1 %vm3932_vm3, %v7609_v34  ;;  %v7628_v34 = vld [vmem:[%s12031_s8 + $0x108] sm:$0xff] }
 0x9ce   : > { %8722 = vmatmul.mubr.msk.f32.gmra.mrb[130].mxu1 %vm3932_vm3, %v7610_v39  ;;  %v7629_v39 = vld [vmem:[%s12031_s8 + $0x110] sm:$0xff] }
 0xa95   : > { %v8714_v2 = vpop.f32.mrb[124].mxu1 }
 0xa96   : > { %v9043_v17 = vadd.f32 %v9042_v33, %v8714_v2  ;;  %v6423_v0 = vpop.f32.mrb[125].mxu1 }
 0xa97   : > { %v9045_v59 = vadd.f32 %v9044_v6, %v6423_v0 }
 0xa98   : > { %v11872_v52 = vadd.f32 %v9043_v17, %v6487_v31  ;;  %v7651_v31 = vld [vmem:[%s12033_s10 + $0x100] sm:$0xff] }
 0xa99   : > { %v11875_v49 = vadd.f32 %v9045_v59, %v6482_v32  ;;  %v8717_v20 = vpop.f32.mrb[126].mxu1  ;;  %v6561_v32 = vpop.permute.xlu0 %6560 }
 0xa9a   : > { %v6537_v41 = vmax.f32 %v11872_v52, 0.0  ;;  %v9047_v19 = vadd.f32 %v9046_v3, %v8717_v20  ;;  %v6433_v47 = vpop.f32.mrb[127].mxu1 }
 0xa9b   : > { %v6536_v9 = vmax.f32 %v11875_v49, 0.0  ;;  %v9049_v54 = vadd.f32 %v9048_v22, %v6433_v47 }
 0xa9c   : > { %v11880_v30 = vadd.f32 %v9047_v19, %v6497_v55 }
 0xa9d   : > { %v11883_v27 = vadd.f32 %v9049_v54, %v6492_v42  ;;  %v8720_v50 = vpop.f32.mrb[128].mxu1  ;;  %v8960_v29 = vpack.c.bf16 %v6537_v41, %v6536_v9  ;;  %v6571_v45 = vpop.permute.xlu0 %6570 }
 0xa9e   : > { %v6539_v44 = vmax.f32 %v11880_v30, 0.0  ;;  %v9051_v63 = vadd.f32 %v9050_v23, %v8720_v50  ;;  %v6443_v60 = vpop.f32.mrb[129].mxu1  ;;  %v6566_v42 = vpop.permute.xlu1 %6565 }
 0xa9f   : > { %v6538_v13 = vmax.f32 %v11883_v27, 0.0  ;;  %v9053_v56 = vadd.f32 %v9052_v43, %v6443_v60  ;;  %8961 = vmatprep.subr.bf16.mxu0 %v8960_v29 }
 0xaa0   : > { %v11888_v46 = vadd.f32 %v9051_v63, %v6507_v4  ;;  %8963 = vmatpush3.bf16.msra.mxu0 %v8960_v29 }
 0xaa1   : > { %v11891_v53 = vadd.f32 %v9053_v56, %v6502_v61  ;;  %v8723_v18 = vpop.f32.mrb[130].mxu1  ;;  %v8964_v37 = vpack.c.bf16 %v6539_v44, %v6538_v13  ;;  %v6581_v3 = vpop.permute.xlu0 %6580 }
 0xaa2   : > { %v6541_v21 = vmax.f32 %v11888_v46, 0.0  ;;  %v9055_v1 = vadd.f32 %v9054_v7, %v8723_v18  ;;  %v6453_v51 = vpop.f32.mrb[131].mxu1  ;;  %v6576_v41 = vpop.permute.xlu1 %6575 }
 0xaa3   : > { %v6540_v24 = vmax.f32 %v11891_v53, 0.0  ;;  %v9057_v26 = vadd.f32 %v9056_v58, %v6453_v51  ;;  %8965 = vmatprep.subr.bf16.mxu0 %v8964_v37  ;;  %v7654_v51 = vld [vmem:[%s12033_s10 + $0x118] sm:$0xff] }
 0xaa4   : > { %v11896_v57 = vadd.f32 %v9055_v1, %v6517_v16  ;;  %8967 = vmatpush3.bf16.msra.mxu0 %v8964_v37  ;;  %v7653_v1 = vld [vmem:[%s12033_s10 + $0x110] sm:$0xff]  ;;  %v7655_v16 = vld [vmem:[%s12033_s10 + $0x120] sm:$0xff] }
 0xaa5   : > { %v11898_v10 = vadd.f32 %v9057_v26, %v6512_v5  ;;  %v8968_v36 = vpack.c.bf16 %v6541_v21, %v6540_v24  ;;  %v6591_v29 = vpop.permute.xlu0 %6590  ;;  %v7652_v21 = vld [vmem:[%s12033_s10 + $0x108] sm:$0xff]  ;;  %v7657_v26 = vld [vmem:[%s12033_s10 + $0x130] sm:$0xff]  ;;  %v7658_v5 = vld [vmem:[%s12033_s10 + $0x138] sm:$0xff] }
 0xaa6   : > { %v6543_v8 = vmax.f32 %v11896_v57, 0.0  ;;  %v6586_v63 = vpop.permute.xlu1 %6585  ;;  %v7656_v24 = vld [vmem:[%s12033_s10 + $0x128] sm:$0xff] }
 0xaa7   : > { %v6542_v35 = vmax.f32 %v11898_v10, 0.0  ;;  %8969 = vmatprep.subr.bf16.mxu0 %v8968_v36 }
 0xaa8   : > { %8971 = vmatpush3.bf16.msra.mxu0 %v8968_v36 }
 0xaa9   : > { %v8972_v40 = vpack.c.bf16 %v6543_v8, %v6542_v35  ;;  %v6756_v8 = vpop.permute.xlu0 %6755 }
 0xaaa   : > { %v6751_v36 = vpop.permute.xlu1 %6750 }
 0xaab   : > { %8973 = vmatprep.subr.bf16.mxu0 %v8972_v40 }
 0xaac   : > { %8975 = vmatpush3.bf16.msra.mxu0 %v8972_v40 }
 0xaad   : > { %v6766_v40 = vpop.permute.xlu0 %6765 }
 0xaae   : > { %v6761_v35 = vpop.permute.xlu1 %6760 }
 0xaaf   : > { %8741 = vmatmul.mubr.msk.f32.vlgmr.msra.gmra.mrb[132].mxu0 %vm4190_vm4, %v7628_v34 }
 0xab0   : > { %8743 = vmatprep.mubr.msk.f32.mxu0 %vm4190_vm4, %v7629_v39 }
 0xab1   : > { %v6944_v39 = vpop.permute.xlu0 %6943 }
 0xab2   : > { %v6771_v34 = vpop.permute.xlu1 %6770 }
 0xab3   : > { %8744 = vmatmul.mubr.msk.f32.gmra.mrb[134].mxu0 %vm4190_vm4, %v7630_v14 }
 0xab4   : > { %8746 = vmatprep.mubr.msk.f32.mxu0 %vm4190_vm4, %v7631_v48 }
 0xab5   : > { %v6776_v48 = vpop.permute.xlu0 %6775 }
 0xab6   : > { %v6949_v14 = vpop.permute.xlu1 %6948 }
 0xab7   : > { %8747 = vmatmul.mubr.msk.f32.gmra.mrb[136].mxu0 %vm4190_vm4, %v7632_v62 }
 0xab8   : > { %8749 = vmatprep.mubr.msk.f32.mxu0 %vm4190_vm4, %v7633_v15 }
 0xaba   : > { %v6954_v15 = vpop.permute.xlu1 %6953 }
 0xabb   : > { %8750 = vmatmul.mubr.msk.f32.gmra.mrb[138].mxu0 %vm4190_vm4, %v7634_v25 }
 0xabc   : > { %8768 = vmatprep.mubr.msk.f32.mxu0 %vm4190_vm4, %v7651_v31 }
 0xb82   : > { %v8742_v55 = vpop.f32.mrb[132].mxu0 }
 0xb83   : > { %v6689_v33 = vadd.f32 %v8742_v55, %v6561_v32  ;;  %v6683_v2 = vpop.f32.mrb[133].mxu0 }
 0xb84   : > { %v6684_v6 = vadd.f32 %v6683_v2, %v6556_v12  ;;  %v6781_v12 = vpop.permute.xlu0 %6780 }
 0xb85   : > { %v6732_v17 = vmax.f32 %v6689_v33, 0.0 }
 0xb86   : > { %v6731_v0 = vmax.f32 %v6684_v6, 0.0  ;;  %v8745_v28 = vpop.f32.mrb[134].mxu0 }
 0xb87   : > { %v6699_v59 = vadd.f32 %v8745_v28, %v6571_v45  ;;  %v6693_v11 = vpop.f32.mrb[135].mxu0  ;;  %v6959_v28 = vpop.permute.xlu1 %6958 }
 0xb88   : > { %v8976_v20 = vpack.c.bf16 %v6732_v17, %v6731_v0  ;;  %v6694_v22 = vadd.f32 %v6693_v11, %v6566_v42 }
 0xb89   : > { %v6734_v19 = vmax.f32 %v6699_v59, 0.0 }
 0xb8a   : > { %v6733_v47 = vmax.f32 %v6694_v22, 0.0  ;;  %v8748_v9 = vpop.f32.mrb[136].mxu0  ;;  %8977 = vmatprep.subr.bf16.mxu0 %v8976_v20 }
 0xb8b   : > { %v6709_v54 = vadd.f32 %v8748_v9, %v6581_v3  ;;  %v6703_v23 = vpop.f32.mrb[137].mxu0  ;;  %8979 = vmatpush3.bf16.msra.mxu0 %v8976_v20 }
 0xb8c   : > { %v8980_v4 = vpack.c.bf16 %v6734_v19, %v6733_v47  ;;  %v6704_v50 = vadd.f32 %v6703_v23, %v6576_v41  ;;  %v6786_v41 = vpop.permute.xlu0 %6785 }
 0xb8d   : > { %v6736_v43 = vmax.f32 %v6709_v54, 0.0 }
 0xb8e   : > { %v6735_v61 = vmax.f32 %v6704_v50, 0.0  ;;  %v8751_v44 = vpop.f32.mrb[138].mxu0  ;;  %8981 = vmatprep.subr.bf16.mxu0 %v8980_v4 }
 0xb8f   : > { %v6719_v60 = vadd.f32 %v8751_v44, %v6591_v29  ;;  %v6713_v13 = vpop.f32.mrb[139].mxu0  ;;  %8983 = vmatpush3.bf16.msra.mxu0 %v8980_v4  ;;  %v6964_v29 = vpop.permute.xlu1 %6963 }
 0xb90   : > { %v8984_v56 = vpack.c.bf16 %v6736_v43, %v6735_v61  ;;  %v6714_v7 = vadd.f32 %v6713_v13, %v6586_v63 }
 0xb91   : > { %v6738_v18 = vmax.f32 %v6719_v60, 0.0 }
 0xb92   : > { %v6737_v58 = vmax.f32 %v6714_v7, 0.0  ;;  %8985 = vmatprep.subr.bf16.mxu0 %v8984_v56 }
 0xb93   : > { %8987 = vmatpush3.bf16.msra.mxu0 %v8984_v56  ;;  %v6969_v56 = vpop.permute.xlu0 %6968 }
 0xb94   : > { %v8988_v37 = vpack.c.bf16 %v6738_v18, %v6737_v58 }
 0xb96   : > { %8989 = vmatprep.subr.bf16.mxu0 %v8988_v37 }
 0xb97   : > { %8991 = vmatpush3.bf16.msra.mxu0 %v8988_v37 }
 0xb9a   : > { %8769 = vmatmul.mubr.msk.f32.vlgmr.msra.gmra.mrb[140].mxu0 %vm4190_vm4, %v7652_v21 }
 0xb9b   : > { %8771 = vmatprep.mubr.msk.f32.mxu0 %vm4190_vm4, %v7653_v1 }
 0xb9e   : > { %8772 = vmatmul.mubr.msk.f32.gmra.mrb[142].mxu0 %vm4190_vm4, %v7654_v51  ;;  %v6974_v51 = vpop.permute.xlu1 %6973 }
 0xb9f   : > { %8774 = vmatprep.mubr.msk.f32.mxu0 %vm4190_vm4, %v7655_v16 }
 0xba2   : > { %8775 = vmatmul.mubr.msk.f32.gmra.mrb[144].mxu0 %vm4190_vm4, %v7656_v24 }
 0xba3   : > { %8777 = vmatprep.mubr.msk.f32.mxu0 %vm4190_vm4, %v7657_v26  ;;  %v6979_v26 = vpop.permute.xlu0 %6978 }
 0xba6   : > { %8778 = vmatmul.mubr.msk.f32.gmra.mrb[146].mxu0 %vm4190_vm4, %v7658_v5 }
 0xc6d   : > { %v8770_v62 = vpop.f32.mrb[140].mxu0 }
 0xc6e   : > { %v6884_v25 = vadd.f32 %v8770_v62, %v6756_v8  ;;  %v6878_v31 = vpop.f32.mrb[141].mxu0 }
 0xc6f   : > { %v6879_v32 = vadd.f32 %v6878_v31, %v6751_v36 }
 0xc70   : > { %v6918_v45 = vadd.f32 %v6884_v25, %v11872_v52 }
 0xc71   : > { %v6917_v55 = vadd.f32 %v6879_v32, %v11875_v49  ;;  %v8773_v42 = vpop.f32.mrb[142].mxu0 }
 0xc72   : > { %v6926_v33 = vmax.f32 %v6918_v45, 0.0  ;;  %v6894_v2 = vadd.f32 %v8773_v42, %v6766_v40  ;;  %v6888_v6 = vpop.f32.mrb[143].mxu0 }
 0xc73   : > { %v6925_v17 = vmax.f32 %v6917_v55, 0.0  ;;  %v6889_v0 = vadd.f32 %v6888_v6, %v6761_v35 }
 0xc74   : > { %v6982_v59 = vmul.f32 %v6949_v14, %v6926_v33  ;;  %v6920_v11 = vadd.f32 %v6894_v2, %v11880_v30 }
 0xc75   : > { %v6981_v3 = vmul.f32 %v6944_v39, %v6925_v17  ;;  %v6919_v20 = vadd.f32 %v6889_v0, %v11883_v27  ;;  %v8776_v22 = vpop.f32.mrb[144].mxu0  ;;  %v7006_v39 = vpop.permute.xlu1 %7005 }
 0xc76   : > { %v6928_v19 = vmax.f32 %v6920_v11, 0.0  ;;  %v6904_v47 = vadd.f32 %v8776_v22, %v6776_v48  ;;  %v6898_v52 = vpop.f32.mrb[145].mxu0  ;;  %v7011_v14 = vrot.slane %v7006_v39, %v12135_v38 }
 0xc77   : > { %v6989_v9 = vadd.f32 %v6982_v59, %v6981_v3  ;;  %v6927_v49 = vmax.f32 %v6919_v20, 0.0  ;;  %v6899_v54 = vadd.f32 %v6898_v52, %v6771_v34 }
 0xc78   : > { %v6922_v23 = vadd.f32 %v6904_v47, %v11888_v46  ;;  %v6984_v61 = vmul.f32 %v6959_v28, %v6928_v19 }
 0xc79   : > { %v6983_v4 = vmul.f32 %v6954_v15, %v6927_v49  ;;  %v6921_v50 = vadd.f32 %v6899_v54, %v11891_v53  ;;  %v8779_v43 = vpop.f32.mrb[146].mxu0 }
 0xc7a   : > { %v6914_v30 = vadd.f32 %v8779_v43, %v6786_v41  ;;  %v6908_v44 = vpop.f32.mrb[147].mxu0  ;;  %v6930_v27 = vmax.f32 %v6922_v23, 0.0 }
 0xc7b   : > { %v6990_v63 = vadd.f32 %v6989_v9, %v6983_v4  ;;  %v6929_v60 = vmax.f32 %v6921_v50, 0.0  ;;  %v6909_v13 = vadd.f32 %v6908_v44, %v6781_v12 }
 0xc7c   : > { %v6924_v7 = vadd.f32 %v6914_v30, %v11896_v57  ;;  %v6986_v37 = vmul.f32 %v6969_v56, %v6930_v27 }
 0xc7d   : > { %v6985_v18 = vmul.f32 %v6964_v29, %v6929_v60  ;;  %v6991_v58 = vadd.f32 %v6990_v63, %v6984_v61  ;;  %v6923_v46 = vadd.f32 %v6909_v13, %v11898_v10 }
 0xc7e   : > { %v6932_v53 = vmax.f32 %v6924_v7, 0.0 }
 0xc7f   : > { %v6992_v21 = vadd.f32 %v6991_v58, %v6985_v18  ;;  %v6931_v1 = vmax.f32 %v6923_v46, 0.0 }
 0xc80   : > { %v6988_v5 = vmul.f32 %v6979_v26, %v6932_v53 }
 0xc81   : > { %v6987_v16 = vmul.f32 %v6974_v51, %v6931_v1  ;;  %v6993_v24 = vadd.f32 %v6992_v21, %v6986_v37 }
 0xc83   : > { %v6994_v36 = vadd.f32 %v6993_v24, %v6987_v16 }
 0xc85   : > { %v6995_v8 = vadd.f32 %v6994_v36, %v6988_v5 }
 0xc87   : > { %v6996_v35 = vrot.slane %v6995_v8, 4 }
 0xc89   : > { %v6997_v40 = vadd.f32 %v6996_v35, %v6995_v8 }
 0xc8b   : > { %v6998_v57 = vrot.slane %v6997_v40, 2 }
 0xc8d   : > { %v6999_v34 = vadd.f32 %v6998_v57, %v6997_v40 }
 0xc8f   : > { %v7000_v10 = vrot.slane %v6999_v34, 1 }
 0xc91   : > { %v7001_v48 = vadd.f32 %v7000_v10, %v6999_v34 }
 0xc93   : > { %v7012_v62 = vadd.f32 %v7011_v14, %v7001_v48 }
 0xc95   : > { %7013 = vst [vmem:[%s528_s13] sm:$0x1] %v7012_v62 }
 0xc96   : > { %9182 = shalt.err (!%p9179_p5)
}
 0xc97   : > { %s9183_s28 = scalar_lea.hbm %s11976_s23, 16  ;;  %s9187_s19 = scalar_lea.hbm %s12037_s14, 32 }
 0xc98   : > { %p9184_p6 = scmp.ne.s32.totalorder %s11976_s23, %s9183_s28  ;;  %p9188_p10 = scmp.lt.u32.totalorder %s11976_s23, %s12037_s14 }
 0xc99   : > { %p9189_p11 = scmp.lt.u32.totalorder %s9187_s19, %s9183_s28  ;;  %p9191_p13 = scmp.lt.u32.totalorder %s9183_s28, %s11976_s23 }
 0xc9a   : > { %p9185_p7 = pnand %p9184_p6, %p9372_p4 }
 0xc9b   : > { %p9190_p12 = por %p9189_p11, %p9188_p10 }
 0xc9c   : > { %p9186_p9 = pneg %p9185_p7 }
 0xc9d   : > { %p9192_p0 = por %p9191_p13, %p9190_p12 }
 0xc9f   : > { %p9193_p1 = pnand %p9192_p0, %p9186_p9 }
 0xca1   : > { %9196 = shalt.err (!%p9193_p1)
}
 0xca2   : > { %9094 = dma.vmem_to_hbm [thread:$0]  (%p9372_p4), %s11978_s25, 16, %s11976_s23, %s7015_s22  }
 0xca3 PF: > { %p9100_p2 = scmp.ge.s32.totalorder %s9247_s20, 2  ;;  %s7040_s1 = sand.u32 1, %s9227_s15  }
 0xca4   : > { %s7041_s29 = scalar_lea.sflag [#allocation4], %s7040_s1 }
 0xca5   : > { %p9097_p3 = pnand %p9100_p2, %p9379_p8 }
 0xca7   : > { %9222 = dma.done.wait (!%p9097_p3), %s7041_s29, 16  }
 0xca8   : > { %9224 = vsyncadd (!%p9097_p3), %s7041_s29, 4294967280  ;;  %s29_s20 = sadd.s32 1, %s9247_s20   ;;  %s12177_s18 = sld [smem:[#allocation6_spill]] }
 0xca9   : > { %p26_p5 = scmp.ge.s32.totalorder %s29_s20, 4   ;;  %s12178_s19 = sld [smem:[#allocation7_spill]] }
 0xcaa   : > { %s12179_s15 = smov %s9231_s16  ;;  %s12180_s16 = smov %s9235_s17 }
 0xcab   : > { %s12181_s17 = smov %s9385_s27  ;;  %28 = sbr.rel (!%p26_p5) target bundleno = 7 (0x7), region = 144 }
 0xcb2   :  { %7045 = vsyncpa [#allocation4], 1 }
 0xcb3   :  { %7047 = vsyncpa [#allocation4 + $0x1], 1 }

</bundles_post_ra>
